<compile_context>
chip_gen: v7x
topology: tpu7x:2x2x1
jax: 0.10.0
libtpu: 0.0.40
codegen_flags: <defaults>
</compile_context>

<pallas_src>
import functools

import numpy as np
import jax
import jax.numpy as jnp
from jax.experimental import pallas as pl
from jax.experimental.pallas import tpu as pltpu


BEST_CONFIG = {
    "num_gcn_layers": 4,
    "num_hidden_layers": 4,
    "GCN_output_per_layer": [100, 420, 140, 140],
    "hidden_neurons_per_layer": [260, 60, 180, 100],
    "dropout_rate": 0.2,            # nn.Dropout is identity in eval/inference mode
    "activation_function": "relu",
}

LANE = 128


def _round_up(v, m):
    return (v + m - 1) // m * m


def _layer_dims(num_features):
    """(fan_in, fan_out) of every linear map in the model, in execution order."""
    dims = []
    f = num_features
    for d in BEST_CONFIG["GCN_output_per_layer"]:
        dims.append((f, d)); f = d
    for d in BEST_CONFIG["hidden_neurons_per_layer"]:
        dims.append((f, d)); f = d
    dims.append((f, 3))             # antonine_coeff: Linear(..., 3) -> (A, B, C)
    return dims


def _activation(v, kind):
    if kind == "relu":
        return jnp.maximum(v, 0.0)
    if kind == "sigmoid":
        return 1.0 / (1.0 + jnp.exp(-v))
    if kind == "tanh":
        return jnp.tanh(v)
    raise ValueError(kind)


def _mm_f32(a, b):
    return jnp.dot(a, b, preferred_element_type=jnp.float32)


def _wdot(a, w_bf16):
    # bf16 operands, f32 accumulation on the MXU.
    return jnp.dot(a.astype(jnp.bfloat16), w_bf16, preferred_element_type=jnp.float32)


# ----------------------------------------------------------------------------- kernel
def gnn_sat_pressure_kernel(*refs, n_w, layer_meta, n_gcn, n_dense, act):
    w_refs = refs[:n_w]
    (b_ref, a_hat_ref, pool_ref, x_ref, temp_ref, stats_ref, out_ref) = refs[n_w:]

    a_hat = a_hat_ref[...]                               # (Nb, Nb) f32 diagonal block

    # ---- GCN stack: h = act(A_hat @ (h W) + b) ----
    h = x_ref[...]                                       # (Nb, padded_F) zero-padded
    li = 0
    for _ in range(n_gcn):
        sidx, roff, r, c, boff = layer_meta[li]
        w = w_refs[sidx][roff:roff + r, :]               # bf16, static aligned slice
        b = b_ref[0:1, boff:boff + c]                    # f32 (1, c)
        if r <= c:                                       # cheaper contraction order
            z = _wdot(_mm_f32(a_hat, h), w)
        else:
            z = _mm_f32(a_hat, _wdot(h, w))
        h = _activation(z + b, act)
        li += 1

    # ---- global_add_pool + activation (matches the reference model) ----
    g = _activation(_mm_f32(pool_ref[...], h), act)      # (Gb, c_last_gcn)

    # ---- dense stack (Dropout == identity at inference) ----
    for _ in range(n_dense):
        sidx, roff, r, c, boff = layer_meta[li]
        w = w_refs[sidx][roff:roff + r, :]
        b = b_ref[0:1, boff:boff + c]
        g = _activation(_wdot(g, w) + b, act)
        li += 1

    # ---- antonine_coeff (Linear -> 3, no activation) ----
    sidx, roff, r, c, boff = layer_meta[li]
    coeff = _wdot(g, w_refs[sidx][roff:roff + r, :]) + b_ref[0:1, boff:boff + c]
    A_c = coeff[:, 0:1]
    B_c = coeff[:, 1:2]
    C_c = coeff[:, 2:3]

    # ---- AntoineEquationLayer + normalization ----
    temp = temp_ref[...]                                 # (Gb, 1) per-graph temperature
    log_P = A_c - B_c / (temp + C_c)
    mean = stats_ref[0]
    inv_std = 1.0 / stats_ref[1]
    out_ref[...] = (log_P - mean) * inv_std


# ----------------------------------------------------------------------------- host-side packing
def init_params(key, num_features):
    """Deterministic synthetic parameters, [in, out] weights + (out,) biases."""
    dims = _layer_dims(num_features)
    Ws, Bs = [], []
    for k, (fi, fo) in zip(jax.random.split(key, len(dims)), dims):
        k1, k2 = jax.random.split(k)
        Ws.append(np.asarray(jax.random.normal(k1, (fi, fo), jnp.float32)) / np.sqrt(fi))
        Bs.append(np.asarray(jax.random.normal(k2, (fo,), jnp.float32)) * 0.01)
    return Ws, Bs


def pack_params(Ws, Bs, dims):
    """Pack weights into per-padded-width bf16 slabs; lane-concatenate f32 biases.

    Returns (w_slabs, b_slab, layer_meta) with
      layer_meta[i] = (slab_idx, row_off, padded_rows, padded_cols, bias_col_off).
    """
    prows = [_round_up(fi, LANE) for fi, _ in dims]
    pcols = [_round_up(fo, LANE) for _, fo in dims]

    widths = sorted(set(pcols))
    slab_of_width = {w: i for i, w in enumerate(widths)}
    slab_rows = [0] * len(widths)
    meta, boffs, bacc = [], [], 0
    for r, c in zip(prows, pcols):
        s = slab_of_width[c]
        meta.append([s, slab_rows[s], r, c])
        slab_rows[s] += r
        boffs.append(bacc); bacc += c

    slabs = [np.zeros((slab_rows[s], widths[s]), np.float32) for s in range(len(widths))]
    b_slab = np.zeros((1, bacc), np.float32)
    for i, ((fi, fo), W, b) in enumerate(zip(dims, Ws, Bs)):
        s, roff, r, c = meta[i]
        slabs[s][roff:roff + fi, :fo] = W
        b_slab[0, boffs[i]:boffs[i] + fo] = b
        meta[i] = (s, roff, r, c, boffs[i])

    w_slabs = tuple(jnp.asarray(sl, jnp.bfloat16) for sl in slabs)
    return w_slabs, jnp.asarray(b_slab), tuple(tuple(m) for m in meta)


# ----------------------------------------------------------------------------- cost estimate
def _cost_estimate(nodes_per_block, graphs_per_block, num_blocks, layer_meta, n_gcn,
                   w_slabs, b_slab, x_bytes):
    Nb, Gb = nodes_per_block, graphs_per_block
    flops = 0
    for li, (_, _, r, c, _) in enumerate(layer_meta):
        if li < n_gcn:
            flops += 2 * (Nb * Nb * r + Nb * r * c) if r <= c else 2 * (Nb * r * c + Nb * Nb * c)
        else:
            flops += 2 * Gb * r * c
    flops += 2 * Gb * Nb * layer_meta[n_gcn - 1][3]       # global_add_pool matmul
    flops *= num_blocks
    bytes_accessed = (sum(int(w.size) * 2 for w in w_slabs)
                      + int(b_slab.size) * 4
                      + num_blocks * Nb * Nb * 4           # diagonal A_hat blocks only
                      + num_blocks * Gb * Nb * 4           # diagonal pool blocks only
                      + x_bytes
                      + num_blocks * Gb * 4 * 2            # temperature + output
                      + 8)                                  # stats
    return pl.CostEstimate(flops=flops, transcendentals=0, bytes_accessed=bytes_accessed)


# ----------------------------------------------------------------------------- wrapper
def gnn_saturation_pressure(x, a_hat, pool, temperature, stats,
                            w_slabs, b_slab, layer_meta,
                            graphs_per_block, nodes_per_block):
    N, F = x.shape
    B = pool.shape[0]
    num_blocks = N // nodes_per_block
    assert nodes_per_block * num_blocks == N
    assert graphs_per_block * num_blocks == B
    assert nodes_per_block % LANE == 0 or nodes_per_block == N
    assert graphs_per_block % 8 == 0 or graphs_per_block == B

    Fp = layer_meta[0][2]                                # padded fan-in of first GCN layer
    x_pad = jnp.zeros((N, Fp), jnp.float32).at[:, :F].set(x)

    n_gcn = BEST_CONFIG["num_gcn_layers"]
    n_dense = BEST_CONFIG["num_hidden_layers"]
    kernel = functools.partial(
        gnn_sat_pressure_kernel, n_w=len(w_slabs), layer_meta=layer_meta,
        n_gcn=n_gcn, n_dense=n_dense, act=BEST_CONFIG["activation_function"])

    def const_spec(arr):                                  # resident across the whole grid
        return pl.BlockSpec(arr.shape, lambda g: (0, 0))

    in_specs = (
        [const_spec(w) for w in w_slabs]
        + [const_spec(b_slab),
           pl.BlockSpec((nodes_per_block, nodes_per_block), lambda g: (g, g)),   # A_hat diag
           pl.BlockSpec((graphs_per_block, nodes_per_block), lambda g: (g, g)),  # pool diag
           pl.BlockSpec((nodes_per_block, Fp), lambda g: (g, 0)),                # features
           pl.BlockSpec((graphs_per_block, 1), lambda g: (g, 0)),                # temperature
           pl.BlockSpec(memory_space=pltpu.MemorySpace.SMEM)])                   # mean/std
    out_specs = pl.BlockSpec((graphs_per_block, 1), lambda g: (g, 0))
    # TODO(synk): emit the output lane-major ((1, Btile) blocks) once B is large enough
    # for the 1-lane masked stores to matter.

    cost = _cost_estimate(nodes_per_block, graphs_per_block, num_blocks, layer_meta,
                          n_gcn, w_slabs, b_slab, x_bytes=N * Fp * 4)

    out = pl.pallas_call(
        kernel,
        out_shape=jax.ShapeDtypeStruct((B, 1), jnp.float32),
        grid=(num_blocks,),
        in_specs=in_specs,
        out_specs=out_specs,
        compiler_params=pltpu.CompilerParams(dimension_semantics=("parallel",)),
        cost_estimate=cost,
    )(*w_slabs, b_slab, a_hat, pool, x_pad, temperature, stats)
    return out[:, 0]


# ----------------------------------------------------------------------------- reference (numpy)
def reference_forward(a_hat, pool, x, temperature, Ws, Bs, mean, std):
    h = np.asarray(x, np.float32)
    li = 0
    for _ in range(BEST_CONFIG["num_gcn_layers"]):
        h = np.maximum(a_hat @ (h @ Ws[li]) + Bs[li], 0.0); li += 1
    g = np.maximum(pool @ h, 0.0)
    for _ in range(BEST_CONFIG["num_hidden_layers"]):
        g = np.maximum(g @ Ws[li] + Bs[li], 0.0); li += 1
    coeff = g @ Ws[li] + Bs[li]
    A_c, B_c, C_c = coeff[:, 0], coeff[:, 1], coeff[:, 2]
    t = np.asarray(temperature)[:, 0]
    log_P = A_c - B_c / (t + C_c)
    return (log_P - mean) / std


# ----------------------------------------------------------------------------- demo
if __name__ == "__main__":
    key = jax.random.PRNGKey(0)
    N_PER_GRAPH, B_GRAPHS, N_FEAT = 8, 32, 8
    GRAPHS_PER_BLOCK = 16
    NODES_PER_BLOCK = N_PER_GRAPH * GRAPHS_PER_BLOCK      # 128 -> lane-aligned A_hat blocks
    N_NODES = N_PER_GRAPH * B_GRAPHS                      # 256 nodes, 2 grid steps

    # ring-topology molecular graphs, undirected edges (disjoint per graph)
    src, dst = [], []
    for gidx in range(B_GRAPHS):
        base = gidx * N_PER_GRAPH
        for i in range(N_PER_GRAPH):
            a, b = base + i, base + (i + 1) % N_PER_GRAPH
            src += [a, b]; dst += [b, a]
    edge_index = np.array([src, dst], np.int32)
    batch_mapping = np.repeat(np.arange(B_GRAPHS), N_PER_GRAPH)

    # dense GCNConv propagation matrix: D^-1/2 (A + I) D^-1/2 (block diagonal per graph)
    A = np.zeros((N_NODES, N_NODES), np.float32)
    A[edge_index[1], edge_index[0]] = 1.0
    A += np.eye(N_NODES, dtype=np.float32)
    dinv = 1.0 / np.sqrt(A.sum(axis=1))
    a_hat_np = A * dinv[:, None] * dinv[None, :]

    # global_add_pool as a one-hot pooling matrix
    pool_np = (batch_mapping[None, :] == np.arange(B_GRAPHS)[:, None]).astype(np.float32)

    kx, kp = jax.random.split(key)
    x_np = np.asarray(jax.random.normal(kx, (N_NODES, N_FEAT), jnp.float32))
    dims = _layer_dims(N_FEAT)
    Ws, Bs = init_params(kp, N_FEAT)
    w_slabs, b_slab, layer_meta = pack_params(Ws, Bs, dims)

    temperature_np = np.linspace(20.0, 90.0, B_GRAPHS, dtype=np.float32)[:, None]
    mean_gcn, std_gcn = 1.5, 0.4
    stats = jnp.array([mean_gcn, std_gcn], jnp.float32)

    out = gnn_saturation_pressure(
        jnp.asarray(x_np), jnp.asarray(a_hat_np), jnp.asarray(pool_np),
        jnp.asarray(temperature_np), stats, w_slabs, b_slab, layer_meta,
        GRAPHS_PER_BLOCK, NODES_PER_BLOCK)
    out = jax.block_until_ready(out)

    assert out.shape == (B_GRAPHS,) and out.dtype == jnp.float32
    assert np.all(np.isfinite(np.asarray(out)))

    # Reference with bf16-quantized weight storage (same quantization as the kernel's
    # slabs); activations/accumulation remain f32 in the reference.
    Ws_q = [np.asarray(jnp.asarray(W).astype(jnp.bfloat16).astype(jnp.float32)) for W in Ws]
    ref = reference_forward(a_hat_np, pool_np, x_np, temperature_np, Ws_q, Bs,
                            mean_gcn, std_gcn)
    # loose tolerance for bf16-operand MXU passes across 9 chained matmuls
    np.testing.assert_allclose(np.asarray(out), ref, rtol=1e-1, atol=1e-1)
    print("KERNEL_OK")
</pallas_src>

<mosaic_0001>
module attributes {stable_mosaic.version = 11 : i64} {
  func.func @gnn_sat_pressure_kernel(%arg0: i32, %arg1: memref<896x128xbf16, #tpu.memory_space<vmem>>, %arg2: memref<896x256xbf16, #tpu.memory_space<vmem>>, %arg3: memref<256x384xbf16, #tpu.memory_space<vmem>>, %arg4: memref<128x512xbf16, #tpu.memory_space<vmem>>, %arg5: memref<1x2176xf32, #tpu.memory_space<vmem>>, %arg6: memref<128x128xf32, #tpu.memory_space<vmem>>, %arg7: memref<16x128xf32, #tpu.memory_space<vmem>>, %arg8: memref<128x128xf32, #tpu.memory_space<vmem>>, %arg9: memref<16x1xf32, #tpu.memory_space<vmem>>, %arg10: memref<2xf32, #tpu.memory_space<smem>>, %arg11: memref<16x1xf32, #tpu.memory_space<vmem>>) attributes {dimension_semantics = [#tpu.dimension_semantics<parallel>], iteration_bounds = array<i64: 2>, scalar_prefetch = 0 : i64, scratch_operands = 0 : i64, tpu.core_type = #tpu.core_type<tc>, window_params = [{pipeline_mode = #tpu.pipeline_mode<synchronous>, transform_indices = @transform_0, window_bounds = array<i64: 896, 128>}, {pipeline_mode = #tpu.pipeline_mode<synchronous>, transform_indices = @transform_1, window_bounds = array<i64: 896, 256>}, {pipeline_mode = #tpu.pipeline_mode<synchronous>, transform_indices = @transform_2, window_bounds = array<i64: 256, 384>}, {pipeline_mode = #tpu.pipeline_mode<synchronous>, transform_indices = @transform_3, window_bounds = array<i64: 128, 512>}, {pipeline_mode = #tpu.pipeline_mode<synchronous>, transform_indices = @transform_4, window_bounds = array<i64: 1, 2176>}, {transform_indices = @transform_5, window_bounds = array<i64: 128, 128>}, {transform_indices = @transform_6, window_bounds = array<i64: 16, 128>}, {transform_indices = @transform_7, window_bounds = array<i64: 128, 128>}, {transform_indices = @transform_8, window_bounds = array<i64: 16, 1>}, {transform_indices = @transform_9, window_bounds = array<i64: 2>}, {transform_indices = @transform_10, window_bounds = array<i64: 16, 1>}]} {
    %c0 = arith.constant 0 : index
    %c0_0 = arith.constant 0 : index
    %0 = vector.load %arg6[%c0, %c0_0] : memref<128x128xf32, #tpu.memory_space<vmem>>, vector<128x128xf32>
    %c0_1 = arith.constant 0 : index
    %c0_2 = arith.constant 0 : index
    %1 = vector.load %arg8[%c0_1, %c0_2] : memref<128x128xf32, #tpu.memory_space<vmem>>, vector<128x128xf32>
    %c0_3 = arith.constant 0 : index
    %c0_4 = arith.constant 0 : index
    %2 = vector.load %arg1[%c0_3, %c0_4] : memref<896x128xbf16, #tpu.memory_space<vmem>>, vector<128x128xbf16>
    %c0_5 = arith.constant 0 : index
    %c0_6 = arith.constant 0 : index
    %3 = vector.load %arg5[%c0_5, %c0_6] : memref<1x2176xf32, #tpu.memory_space<vmem>>, vector<1x128xf32>
    %cst = arith.constant dense<0.000000e+00> : vector<128x128xf32>
    %4 = tpu.matmul %0, %1, %cst {dimension_numbers = #tpu.dot_dimension_numbers<[1], [0], [0], [1], [0, 0, 1, 1], [], []>} : vector<128x128xf32>, vector<128x128xf32>, vector<128x128xf32> -> vector<128x128xf32>
    %5 = arith.truncf %4 : vector<128x128xf32> to vector<128x128xbf16>
    %cst_7 = arith.constant dense<0.000000e+00> : vector<128x128xf32>
    %6 = tpu.matmul %5, %2, %cst_7 {dimension_numbers = #tpu.dot_dimension_numbers<[1], [0], [0], [1], [0, 0, 1, 1], [], []>} : vector<128x128xbf16>, vector<128x128xbf16>, vector<128x128xf32> -> vector<128x128xf32>
    %7 = vector.broadcast %3 : vector<1x128xf32> to vector<128x128xf32>
    %8 = arith.addf %6, %7 : vector<128x128xf32>
    %cst_8 = arith.constant 0.000000e+00 : f32
    %9 = vector.broadcast %cst_8 : f32 to vector<128x128xf32>
    %10 = arith.maximumf %8, %9 : vector<128x128xf32>
    %c0_9 = arith.constant 0 : index
    %c0_10 = arith.constant 0 : index
    %11 = vector.load %arg4[%c0_9, %c0_10] : memref<128x512xbf16, #tpu.memory_space<vmem>>, vector<128x512xbf16>
    %c0_11 = arith.constant 0 : index
    %c128 = arith.constant 128 : index
    %12 = vector.load %arg5[%c0_11, %c128] : memref<1x2176xf32, #tpu.memory_space<vmem>>, vector<1x512xf32>
    %cst_12 = arith.constant dense<0.000000e+00> : vector<128x128xf32>
    %13 = tpu.matmul %0, %10, %cst_12 {dimension_numbers = #tpu.dot_dimension_numbers<[1], [0], [0], [1], [0, 0, 1, 1], [], []>} : vector<128x128xf32>, vector<128x128xf32>, vector<128x128xf32> -> vector<128x128xf32>
    %14 = arith.truncf %13 : vector<128x128xf32> to vector<128x128xbf16>
    %cst_13 = arith.constant dense<0.000000e+00> : vector<128x512xf32>
    %15 = tpu.matmul %14, %11, %cst_13 {dimension_numbers = #tpu.dot_dimension_numbers<[1], [0], [0], [1], [0, 0, 1, 1], [], []>} : vector<128x128xbf16>, vector<128x512xbf16>, vector<128x512xf32> -> vector<128x512xf32>
    %16 = vector.broadcast %12 : vector<1x512xf32> to vector<128x512xf32>
    %17 = arith.addf %15, %16 : vector<128x512xf32>
    %cst_14 = arith.constant 0.000000e+00 : f32
    %18 = vector.broadcast %cst_14 : f32 to vector<128x512xf32>
    %19 = arith.maximumf %17, %18 : vector<128x512xf32>
    %c0_15 = arith.constant 0 : index
    %c0_16 = arith.constant 0 : index
    %20 = vector.load %arg2[%c0_15, %c0_16] : memref<896x256xbf16, #tpu.memory_space<vmem>>, vector<512x256xbf16>
    %c0_17 = arith.constant 0 : index
    %c640 = arith.constant 640 : index
    %21 = vector.load %arg5[%c0_17, %c640] : memref<1x2176xf32, #tpu.memory_space<vmem>>, vector<1x256xf32>
    %22 = arith.truncf %19 : vector<128x512xf32> to vector<128x512xbf16>
    %cst_18 = arith.constant dense<0.000000e+00> : vector<128x256xf32>
    %23 = tpu.matmul %22, %20, %cst_18 {dimension_numbers = #tpu.dot_dimension_numbers<[1], [0], [0], [1], [0, 0, 1, 1], [], []>} : vector<128x512xbf16>, vector<512x256xbf16>, vector<128x256xf32> -> vector<128x256xf32>
    %cst_19 = arith.constant dense<0.000000e+00> : vector<128x256xf32>
    %24 = tpu.matmul %0, %23, %cst_19 {dimension_numbers = #tpu.dot_dimension_numbers<[1], [0], [0], [1], [0, 0, 1, 1], [], []>} : vector<128x128xf32>, vector<128x256xf32>, vector<128x256xf32> -> vector<128x256xf32>
    %25 = vector.broadcast %21 : vector<1x256xf32> to vector<128x256xf32>
    %26 = arith.addf %24, %25 : vector<128x256xf32>
    %cst_20 = arith.constant 0.000000e+00 : f32
    %27 = vector.broadcast %cst_20 : f32 to vector<128x256xf32>
    %28 = arith.maximumf %26, %27 : vector<128x256xf32>
    %c512 = arith.constant 512 : index
    %c0_21 = arith.constant 0 : index
    %29 = vector.load %arg2[%c512, %c0_21] : memref<896x256xbf16, #tpu.memory_space<vmem>>, vector<256x256xbf16>
    %c0_22 = arith.constant 0 : index
    %c896 = arith.constant 896 : index
    %30 = vector.load %arg5[%c0_22, %c896] : memref<1x2176xf32, #tpu.memory_space<vmem>>, vector<1x256xf32>
    %cst_23 = arith.constant dense<0.000000e+00> : vector<128x256xf32>
    %31 = tpu.matmul %0, %28, %cst_23 {dimension_numbers = #tpu.dot_dimension_numbers<[1], [0], [0], [1], [0, 0, 1, 1], [], []>} : vector<128x128xf32>, vector<128x256xf32>, vector<128x256xf32> -> vector<128x256xf32>
    %32 = arith.truncf %31 : vector<128x256xf32> to vector<128x256xbf16>
    %cst_24 = arith.constant dense<0.000000e+00> : vector<128x256xf32>
    %33 = tpu.matmul %32, %29, %cst_24 {dimension_numbers = #tpu.dot_dimension_numbers<[1], [0], [0], [1], [0, 0, 1, 1], [], []>} : vector<128x256xbf16>, vector<256x256xbf16>, vector<128x256xf32> -> vector<128x256xf32>
    %34 = vector.broadcast %30 : vector<1x256xf32> to vector<128x256xf32>
    %35 = arith.addf %33, %34 : vector<128x256xf32>
    %cst_25 = arith.constant 0.000000e+00 : f32
    %36 = vector.broadcast %cst_25 : f32 to vector<128x256xf32>
    %37 = arith.maximumf %35, %36 : vector<128x256xf32>
    %c0_26 = arith.constant 0 : index
    %c0_27 = arith.constant 0 : index
    %38 = vector.load %arg7[%c0_26, %c0_27] : memref<16x128xf32, #tpu.memory_space<vmem>>, vector<16x128xf32>
    %cst_28 = arith.constant dense<0.000000e+00> : vector<16x256xf32>
    %39 = tpu.matmul %38, %37, %cst_28 {dimension_numbers = #tpu.dot_dimension_numbers<[1], [0], [0], [1], [0, 0, 1, 1], [], []>} : vector<16x128xf32>, vector<128x256xf32>, vector<16x256xf32> -> vector<16x256xf32>
    %cst_29 = arith.constant 0.000000e+00 : f32
    %40 = vector.broadcast %cst_29 : f32 to vector<16x256xf32>
    %41 = arith.maximumf %39, %40 : vector<16x256xf32>
    %c0_30 = arith.constant 0 : index
    %c0_31 = arith.constant 0 : index
    %42 = vector.load %arg3[%c0_30, %c0_31] : memref<256x384xbf16, #tpu.memory_space<vmem>>, vector<256x384xbf16>
    %c0_32 = arith.constant 0 : index
    %c1152 = arith.constant 1152 : index
    %43 = vector.load %arg5[%c0_32, %c1152] : memref<1x2176xf32, #tpu.memory_space<vmem>>, vector<1x384xf32>
    %44 = arith.truncf %41 : vector<16x256xf32> to vector<16x256xbf16>
    %cst_33 = arith.constant dense<0.000000e+00> : vector<16x384xf32>
    %45 = tpu.matmul %44, %42, %cst_33 {dimension_numbers = #tpu.dot_dimension_numbers<[1], [0], [0], [1], [0, 0, 1, 1], [], []>} : vector<16x256xbf16>, vector<256x384xbf16>, vector<16x384xf32> -> vector<16x384xf32>
    %46 = vector.broadcast %43 : vector<1x384xf32> to vector<16x384xf32>
    %47 = arith.addf %45, %46 : vector<16x384xf32>
    %cst_34 = arith.constant 0.000000e+00 : f32
    %48 = vector.broadcast %cst_34 : f32 to vector<16x384xf32>
    %49 = arith.maximumf %47, %48 : vector<16x384xf32>
    %c128_35 = arith.constant 128 : index
    %c0_36 = arith.constant 0 : index
    %50 = vector.load %arg1[%c128_35, %c0_36] : memref<896x128xbf16, #tpu.memory_space<vmem>>, vector<384x128xbf16>
    %c0_37 = arith.constant 0 : index
    %c1536 = arith.constant 1536 : index
    %51 = vector.load %arg5[%c0_37, %c1536] : memref<1x2176xf32, #tpu.memory_space<vmem>>, vector<1x128xf32>
    %52 = arith.truncf %49 : vector<16x384xf32> to vector<16x384xbf16>
    %cst_38 = arith.constant dense<0.000000e+00> : vector<16x128xf32>
    %53 = tpu.matmul %52, %50, %cst_38 {dimension_numbers = #tpu.dot_dimension_numbers<[1], [0], [0], [1], [0, 0, 1, 1], [], []>} : vector<16x384xbf16>, vector<384x128xbf16>, vector<16x128xf32> -> vector<16x128xf32>
    %54 = vector.broadcast %51 : vector<1x128xf32> to vector<16x128xf32>
    %55 = arith.addf %53, %54 : vector<16x128xf32>
    %cst_39 = arith.constant 0.000000e+00 : f32
    %56 = vector.broadcast %cst_39 : f32 to vector<16x128xf32>
    %57 = arith.maximumf %55, %56 : vector<16x128xf32>
    %c768 = arith.constant 768 : index
    %c0_40 = arith.constant 0 : index
    %58 = vector.load %arg2[%c768, %c0_40] : memref<896x256xbf16, #tpu.memory_space<vmem>>, vector<128x256xbf16>
    %c0_41 = arith.constant 0 : index
    %c1664 = arith.constant 1664 : index
    %59 = vector.load %arg5[%c0_41, %c1664] : memref<1x2176xf32, #tpu.memory_space<vmem>>, vector<1x256xf32>
    %60 = arith.truncf %57 : vector<16x128xf32> to vector<16x128xbf16>
    %cst_42 = arith.constant dense<0.000000e+00> : vector<16x256xf32>
    %61 = tpu.matmul %60, %58, %cst_42 {dimension_numbers = #tpu.dot_dimension_numbers<[1], [0], [0], [1], [0, 0, 1, 1], [], []>} : vector<16x128xbf16>, vector<128x256xbf16>, vector<16x256xf32> -> vector<16x256xf32>
    %62 = vector.broadcast %59 : vector<1x256xf32> to vector<16x256xf32>
    %63 = arith.addf %61, %62 : vector<16x256xf32>
    %cst_43 = arith.constant 0.000000e+00 : f32
    %64 = vector.broadcast %cst_43 : f32 to vector<16x256xf32>
    %65 = arith.maximumf %63, %64 : vector<16x256xf32>
    %c512_44 = arith.constant 512 : index
    %c0_45 = arith.constant 0 : index
    %66 = vector.load %arg1[%c512_44, %c0_45] : memref<896x128xbf16, #tpu.memory_space<vmem>>, vector<256x128xbf16>
    %c0_46 = arith.constant 0 : index
    %c1920 = arith.constant 1920 : index
    %67 = vector.load %arg5[%c0_46, %c1920] : memref<1x2176xf32, #tpu.memory_space<vmem>>, vector<1x128xf32>
    %68 = arith.truncf %65 : vector<16x256xf32> to vector<16x256xbf16>
    %cst_47 = arith.constant dense<0.000000e+00> : vector<16x128xf32>
    %69 = tpu.matmul %68, %66, %cst_47 {dimension_numbers = #tpu.dot_dimension_numbers<[1], [0], [0], [1], [0, 0, 1, 1], [], []>} : vector<16x256xbf16>, vector<256x128xbf16>, vector<16x128xf32> -> vector<16x128xf32>
    %70 = vector.broadcast %67 : vector<1x128xf32> to vector<16x128xf32>
    %71 = arith.addf %69, %70 : vector<16x128xf32>
    %cst_48 = arith.constant 0.000000e+00 : f32
    %72 = vector.broadcast %cst_48 : f32 to vector<16x128xf32>
    %73 = arith.maximumf %71, %72 : vector<16x128xf32>
    %c768_49 = arith.constant 768 : index
    %c0_50 = arith.constant 0 : index
    %74 = vector.load %arg1[%c768_49, %c0_50] : memref<896x128xbf16, #tpu.memory_space<vmem>>, vector<128x128xbf16>
    %75 = arith.truncf %73 : vector<16x128xf32> to vector<16x128xbf16>
    %cst_51 = arith.constant dense<0.000000e+00> : vector<16x128xf32>
    %76 = tpu.matmul %75, %74, %cst_51 {dimension_numbers = #tpu.dot_dimension_numbers<[1], [0], [0], [1], [0, 0, 1, 1], [], []>} : vector<16x128xbf16>, vector<128x128xbf16>, vector<16x128xf32> -> vector<16x128xf32>
    %c0_52 = arith.constant 0 : index
    %c2048 = arith.constant 2048 : index
    %77 = vector.load %arg5[%c0_52, %c2048] : memref<1x2176xf32, #tpu.memory_space<vmem>>, vector<1x128xf32>
    %78 = vector.broadcast %77 : vector<1x128xf32> to vector<16x128xf32>
    %79 = arith.addf %76, %78 : vector<16x128xf32>
    %80 = vector.extract_strided_slice %79 {offsets = [0, 0], sizes = [16, 1], strides = [1, 1]} : vector<16x128xf32> to vector<16x1xf32>
    %81 = vector.extract_strided_slice %79 {offsets = [0, 1], sizes = [16, 1], strides = [1, 1]} : vector<16x128xf32> to vector<16x1xf32>
    %82 = vector.extract_strided_slice %79 {offsets = [0, 2], sizes = [16, 1], strides = [1, 1]} : vector<16x128xf32> to vector<16x1xf32>
    %c0_53 = arith.constant 0 : index
    %c0_54 = arith.constant 0 : index
    %83 = vector.load %arg9[%c0_53, %c0_54] : memref<16x1xf32, #tpu.memory_space<vmem>>, vector<16x1xf32>
    %84 = arith.addf %83, %82 : vector<16x1xf32>
    %85 = arith.divf %81, %84 : vector<16x1xf32>
    %86 = arith.subf %80, %85 : vector<16x1xf32>
    %c0_55 = arith.constant 0 : index
    %87 = memref.load %arg10[%c0_55] : memref<2xf32, #tpu.memory_space<smem>>
    %c1 = arith.constant 1 : index
    %88 = memref.load %arg10[%c1] : memref<2xf32, #tpu.memory_space<smem>>
    %cst_56 = arith.constant 1.000000e+00 : f32
    %89 = arith.divf %cst_56, %88 : f32
    %90 = vector.broadcast %87 : f32 to vector<16x1xf32>
    %91 = arith.subf %86, %90 : vector<16x1xf32>
    %92 = vector.broadcast %89 : f32 to vector<16x1xf32>
    %93 = arith.mulf %91, %92 : vector<16x1xf32>
    %c0_57 = arith.constant 0 : index
    %c0_58 = arith.constant 0 : index
    %94 = vector.load %arg11[%c0_57, %c0_58] : memref<16x1xf32, #tpu.memory_space<vmem>>, vector<16x1xf32>
    tpu.vector_store %arg11[%c0_57, %c0_58], %93 {strides = array<i32>} : memref<16x1xf32, #tpu.memory_space<vmem>>, vector<16x1xf32>,
    return
  }
  func.func @transform_0(%arg0: i32) -> (i32, i32) {
    %c0_i32 = arith.constant 0 : i32
    %c0_i32_0 = arith.constant 0 : i32
    %c0_i32_1 = arith.constant 0 : i32
    return %c0_i32, %c0_i32_0 : i32, i32
  }
  func.func @transform_1(%arg0: i32) -> (i32, i32) {
    %c0_i32 = arith.constant 0 : i32
    %c0_i32_0 = arith.constant 0 : i32
    %c0_i32_1 = arith.constant 0 : i32
    return %c0_i32, %c0_i32_0 : i32, i32
  }
  func.func @transform_2(%arg0: i32) -> (i32, i32) {
    %c0_i32 = arith.constant 0 : i32
    %c0_i32_0 = arith.constant 0 : i32
    %c0_i32_1 = arith.constant 0 : i32
    return %c0_i32, %c0_i32_0 : i32, i32
  }
  func.func @transform_3(%arg0: i32) -> (i32, i32) {
    %c0_i32 = arith.constant 0 : i32
    %c0_i32_0 = arith.constant 0 : i32
    %c0_i32_1 = arith.constant 0 : i32
    return %c0_i32, %c0_i32_0 : i32, i32
  }
  func.func @transform_4(%arg0: i32) -> (i32, i32) {
    %c0_i32 = arith.constant 0 : i32
    %c0_i32_0 = arith.constant 0 : i32
    %c0_i32_1 = arith.constant 0 : i32
    return %c0_i32, %c0_i32_0 : i32, i32
  }
  func.func @transform_5(%arg0: i32) -> (i32, i32) {
    %c0_i32 = arith.constant 0 : i32
    return %arg0, %arg0 : i32, i32
  }
  func.func @transform_6(%arg0: i32) -> (i32, i32) {
    %c0_i32 = arith.constant 0 : i32
    return %arg0, %arg0 : i32, i32
  }
  func.func @transform_7(%arg0: i32) -> (i32, i32) {
    %c0_i32 = arith.constant 0 : i32
    %c0_i32_0 = arith.constant 0 : i32
    return %arg0, %c0_i32 : i32, i32
  }
  func.func @transform_8(%arg0: i32) -> (i32, i32) {
    %c0_i32 = arith.constant 0 : i32
    %c0_i32_0 = arith.constant 0 : i32
    return %arg0, %c0_i32 : i32, i32
  }
  func.func @transform_9(%arg0: i32) -> i32 {
    %c0_i32 = arith.constant 0 : i32
    %c0_i32_0 = arith.constant 0 : i32
    return %c0_i32 : i32
  }
  func.func @transform_10(%arg0: i32) -> (i32, i32) {
    %c0_i32 = arith.constant 0 : i32
    %c0_i32_0 = arith.constant 0 : i32
    return %arg0, %c0_i32 : i32, i32
  }
}

</mosaic_0001>

<bundles_post_ra>
// kernel: tpu_custom_call.1
= control target key start
LH: loop header
LB: loop body
LE: loop exit
PB: predicated region body
PF: predicated region fallthrough
CT: control target
= control target key end

     0   :  { %s7024_s0 = inlined_call_operand.hbm [shape: bf16[896,128], index: 0, kind: input, shape index: {}]   ;;  %s7025_s1 = inlined_call_operand.hbm [shape: bf16[896,256], index: 1, kind: input, shape index: {}]   ;;  %s7026_s2 = inlined_call_operand.hbm [shape: bf16[256,384], index: 2, kind: input, shape index: {}]   ;;  %s7027_s3 = inlined_call_operand.hbm [shape: bf16[128,512], index: 3, kind: input, shape index: {}]   ;;  %s7028_s4 = inlined_call_operand.vmem [shape: f32[1,2176], index: 4, kind: input, shape index: {}]   ;;  %s7029_s5 = inlined_call_operand.hbm [shape: f32[256,256], index: 5, kind: input, shape index: {}]   ;;  %s7030_s6 = inlined_call_operand.hbm [shape: f32[32,256], index: 6, kind: input, shape index: {}]   ;;  %s7031_s7 = inlined_call_operand.hbm [shape: f32[256,128], index: 7, kind: input, shape index: {}]   ;;  %s7032_s8 = inlined_call_operand.vmem [shape: f32[32,1], index: 8, kind: input, shape index: {}]   ;;  %s7033_s9 = inlined_call_operand.vmem [shape: f32[2], index: 9, kind: input, shape index: {}]   ;;  %s7034_s10 = inlined_call_operand.vmem [shape: f32[32,1], index: 10, kind: output, shape index: {}]  }
   0x1   :  { %7053 = sst [smem:[#allocation25_spill]] %s7024_s0 }
   0x2   :  { %7054 = sst [smem:[#allocation26_spill]] %s7025_s1 }
   0x3   :  { %7055 = sst [smem:[#allocation27_spill]] %s7028_s4 }
   0x4   :  { %7056 = sst [smem:[#allocation28_spill]] %s7029_s5 }
   0x5   :  { %7057 = sst [smem:[#allocation29_spill]] %s7032_s8 }
   0x6   :  { %7058 = sst [smem:[#allocation30_spill]] %s7034_s10 }
   0x7   :  { %15 = vsyncpa [#allocation3], 0 }
   0x8   :  { %16 = vsyncpa [#allocation6], 0 }
   0x9   :  { %17 = vsyncpa [#allocation9], 0 }
   0xa   :  { %18 = vsyncpa [#allocation4], 0  ;;  %s6129_s13 = smov 0   ;;  %s6131_s14 = smov 0  }
   0xb   :  { %s6133_s15 = smov 0   ;;  %s6135_s16 = smov 0  }
   0xc   :  { %s6137_s17 = smov 0   ;;  %s6139_s18 = smov 0  }
   0xd   :  { %s6141_s19 = smov 0  }
   0xe LB: > { %7059 = sst [smem:[#allocation20_spill]] %s6042_s17  ;;  %s6052_s20 = smov [#allocation2]   ;;  %s6050_s19 = sphi %s6141_s19, %s7099_s19   ;;  %s6046_s18 = sphi %s6139_s18, %s7102_s18   ;;  %s6042_s17 = sphi %s6137_s17, %s7101_s17   ;;  %s6038_s16 = sphi %s6135_s16, %s7100_s16   ;;  %s6034_s15 = sphi %s6133_s15, %s7105_s15   ;;  %s6030_s14 = sphi %s6131_s14, %s7104_s14   ;;  %s6026_s13 = sphi %s6129_s13, %s7103_s13  }
   0xf   : > { %7060 = sst [smem:[#allocation21_spill]] %s6046_s18  ;;  %s301_s21 = sshll.u32 %s6052_s20, 4  ;;  %s302_s21 = int_to_ptr.vmem [resolvable:$true] %s301_s21 }
  0x10   : > { %s6165_s22 = sadd.s32 4294967295, %s6050_s19   ;;  %p4428_p0 = scmp.ge.s32.totalorder %s6050_s19, 1 }
  0x11   : > { %p7035_p1 = scmp.eq.s32.totalorder %s6165_s22, 0  ;;  %p289_p2 = scmp.lt.s32.totalorder %s6050_s19, 3 }
  0x12   : > { %s6183_s25 = sadd.s32 1, %s6050_s19   ;;  %s7064_s0 = sld [smem:[#allocation25_spill]] }
  0x13   : > { %p6170_p3 = pnand %p4428_p0, %p289_p2  ;;  %7063 = sst [smem:[#allocation22_spill]] %s6183_s25 }
  0x15   : > { %s7061_s23 = scalar_select %p6170_p3, 1, 0 }
  0x16   : > { %p5285_p4 = pneg %p6170_p3 }
  0x18   : > { %p6178_p5 = pnand %p5285_p4, %p7035_p1  ;;  %s5755_s28 = scalar_lea.hbm %s7064_s0, 7168 }
  0x19   : > { %p5756_p6 = scmp.ne.s32.totalorder %s7064_s0, %s5755_s28  ;;  %p5762_p10 = scmp.lt.u32.totalorder %s5755_s28, %s7064_s0 }
  0x1a   : > { %s7062_s24 = scalar_select %p6178_p5, 1, 0 }
  0x1b   : > { %p6193_p7 = pneg %p6178_p5 }
  0x1d   : > { %p5758_p8 = pnand %p6193_p7, %p5756_p6 }
  0x1f   : > { %p5759_p9 = pneg %p5758_p8 }
  0x21   : > { %p5764_p11 = pnand %p5762_p10, %p5759_p9 }
  0x23   : > { %5767 = shalt.err (!%p5764_p11)
}
  0x24   : > { %s5768_s26 = scalar_lea.vmem %s302_s21, 7168  ;;  %p5776_p2 = scmp.lt.s32.totalorder %s302_s21, %s302_s21 }
  0x25   : > { %p5769_p12 = scmp.ne.s32.totalorder %s302_s21, %s5768_s26  ;;  %p5777_p4 = scmp.lt.s32.totalorder %s5768_s26, %s5768_s26 }
  0x27   : > { %p5771_p13 = pnand %p5769_p12, %p6193_p7  ;;  %p5778_p1 = por %p5777_p4, %p5776_p2 }
  0x29   : > { %p5772_p0 = pneg %p5771_p13 }
  0x2b   : > { %p5779_p3 = pnand %p5778_p1, %p5772_p0 }
  0x2d   : > { %5782 = shalt.err (!%p5779_p3)
}
  0x2e   : > { %s6053_s27 = smov 64   ;;  %s6054_s28 = smov 4  }
  0x2f   : > { %5288 = dma.hbm_to_vmem [thread:$0]  (!%p6178_p5), %s7064_s0, 7168, %s302_s21, [#allocation3], %s6053_s27, %s6053_s27, %s6054_s28  }
  0x30   : > { %s6211_s12 = ssub.s32 %s6050_s19, %s6183_s25  ;;  %s138_s20 = sadd.s32 1, %s6046_s18 }
  0x31   : > { %s135_s26 = sor.u32 %s6211_s12, %s6211_s12  ;;  %p145_p1 = scmp.ne.s32.totalorder %s6046_s18, %s6042_s17 }
  0x32   : > { %p136_p3 = scmp.eq.s32.totalorder %s135_s26, 0  ;;  %p7044_p6 = scmp.eq.s32.totalorder %s6050_s19, 0 }
  0x33   : > { %p151_p8 = scmp.ne.s32.totalorder %s6042_s17, %s6038_s16  ;;  %p7068_p10 = scmp.eq.s32.totalorder %s6165_s22, 0 }
  0x34   : > { %s6222_s10 = scalar_select %p136_p3, %s6046_s18, %s138_s20  }
  0x35   : > { %p6226_p9 = por %p7044_p6, %p145_p1  ;;  %p6232_p11 = por %p7068_p10, %p151_p8 }
  0x36   : > { %7066 = sst [smem:[#allocation23_spill]] %s6222_s10  ;;  %p7043_p12 = scmp.lt.s32.totalorder %s6050_s19, 2 }
  0x37   : > { %s7069_s21 = scalar_select %p6232_p11, 1, 0 }
  0x38   : > { %s368_s27 = sand.u32 1, %s6050_s19   ;;  %s370_s28 = sand.u32 1, %s6046_s18  }
  0x39   : > { %7070 = sst [smem:[#allocation24_spill]] %s7069_s21  ;;  %s4435_s29 = sshll.u32 %s370_s28, 7 }
  0x3a   : > { %s4714_s30 = sshll.u32 %s6050_s19, 5  ;;  %s372_s20 = scalar_lea.vmem [#allocation10], %s4435_s29 }
  0x3b   : > { %s378_s26 = sadd.s32 %s6050_s19, %s4714_s30  ;;  %s381_s0 = sshll.u32 %s372_s20, 4  ;;  %s6246_s0 = int_to_ptr.vmem [resolvable:$true] %s381_s0 }
  0x3c   : > { %s4438_s16 = sshll.u32 %s378_s26, 7  ;;  %s7071_s5 = sld [smem:[#allocation28_spill]] }
  0x3d   : > { %p6252_p13 = pnand %p7043_p12, %p6226_p9  ;;  %s6055_s29 = smov [#allocation5]  }
  0x3e   : > { %s314_s30 = sshll.u32 %s6055_s29, 4  ;;  %s6256_s26 = sshll.u32 %s370_s28, 4  ;;  %s6258_s30 = int_to_ptr.vmem [resolvable:$true] %s314_s30 }
  0x3f   : > { %s6260_s10 = scalar_lea.sflag [#allocation3], %s368_s27  ;;  %p5785_p2 = pneg %p6252_p13 }
  0x42   : > { %s6244_s4 = scalar_lea.hbm %s7071_s5, %s4438_s16  ;;  %s5788_s20 = scalar_lea.hbm %s7071_s5, 8192 }
  0x43   : > { %s5783_s25 = scalar_lea.hbm %s6244_s4, 2048  ;;  %p5789_p3 = scmp.lt.u32.totalorder %s6244_s4, %s7071_s5 }
  0x44   : > { %p5784_p0 = scmp.ne.s32.totalorder %s6244_s4, %s5783_s25  ;;  %p5790_p8 = scmp.lt.u32.totalorder %s5788_s20, %s5783_s25 }
  0x45   : > { %p5792_p10 = scmp.lt.u32.totalorder %s5783_s25, %s6244_s4 }
  0x46   : > { %p5786_p4 = pnand %p5785_p2, %p5784_p0  ;;  %p5791_p9 = por %p5790_p8, %p5789_p3 }
  0x48   : > { %p5787_p1 = pneg %p5786_p4  ;;  %p5793_p12 = por %p5792_p10, %p5791_p9 }
  0x4a   : > { %p5794_p6 = pnand %p5793_p12, %p5787_p1 }
  0x4c   : > { %5797 = shalt.err (!%p5794_p6)
}
  0x4d   : > { %s5798_s27 = scalar_lea.vmem %s6246_s0, 2048  ;;  %s6056_s28 = smov [#allocation10]  }
  0x4e   : > { %p5799_p0 = scmp.ne.s32.totalorder %s6246_s0, %s5798_s27  ;;  %s5803_s8 = sshll.u32 %s6056_s28, 4  ;;  %s5804_s8 = int_to_ptr.vmem [resolvable:$false] %s5803_s8 }
  0x4f   : > { %s5805_s21 = scalar_lea.vmem %s5804_s8, 4096  ;;  %p5806_p5 = scmp.lt.s32.totalorder %s6246_s0, %s5804_s8 }
  0x50   : > { %p5801_p4 = pnand %p5799_p0, %p5785_p2  ;;  %p5807_p3 = scmp.lt.s32.totalorder %s5805_s21, %s5798_s27 }
  0x52   : > { %p5802_p11 = pneg %p5801_p4  ;;  %p5808_p8 = por %p5807_p3, %p5806_p5 }
  0x54   : > { %p5809_p9 = pnand %p5808_p8, %p5802_p11 }
  0x56   : > { %5812 = shalt.err (!%p5809_p9)
}
  0x57   : > { %s7049_s25 = smov 256   ;;  %s7051_s16 = smov 128  }
  0x58   : > { %s7052_s20 = smov 8   ;;  %s7073_s1 = sld [smem:[#allocation26_spill]] }
  0x59   : > { %5304 = dma.hbm_to_vmem [thread:$0]  (!%p6252_p13), %s6244_s4, 2048, %s6246_s0, %s6260_s10, %s7049_s25, %s7051_s16, %s7052_s20  }
  0x5e   : > { %s5813_s27 = scalar_lea.hbm %s7073_s1, 14336 }
  0x5f   : > { %p5814_p5 = scmp.ne.s32.totalorder %s7073_s1, %s5813_s27  ;;  %p5820_p12 = scmp.lt.u32.totalorder %s5813_s27, %s7073_s1 }
  0x61   : > { %p5816_p6 = pnand %p5814_p5, %p6193_p7 }
  0x63   : > { %p5817_p11 = pneg %p5816_p6 }
  0x65   : > { %p5822_p1 = pnand %p5820_p12, %p5817_p11 }
  0x67   : > { %5825 = shalt.err (!%p5822_p1)
}
  0x68   : > { %s5826_s0 = scalar_lea.vmem %s6258_s30, 14336  ;;  %p5834_p3 = scmp.lt.s32.totalorder %s6258_s30, %s6258_s30 }
  0x69   : > { %p5827_p10 = scmp.ne.s32.totalorder %s6258_s30, %s5826_s0  ;;  %p5835_p8 = scmp.lt.s32.totalorder %s5826_s0, %s5826_s0 }
  0x6b   : > { %p5829_p0 = pnand %p5827_p10, %p6193_p7  ;;  %p5836_p9 = por %p5835_p8, %p5834_p3 }
  0x6d   : > { %p5830_p4 = pneg %p5829_p0 }
  0x6f   : > { %p5837_p5 = pnand %p5836_p9, %p5830_p4 }
  0x71   : > { %5840 = shalt.err (!%p5837_p5)
}
  0x72   : > { %p7074_p6 = scmp.ne.s32.totalorder %s7062_s24, 0  ;;  %s4715_s17 = sshll.u32 %s6050_s19, 2 }
  0x73   : > { %s401_s29 = sadd.s32 %s6050_s19, %s4715_s17  ;;  %s395_s28 = scalar_lea.vmem [#allocation11], %s6256_s26 }
  0x74   : > { %5291 = dma.hbm_to_vmem [thread:$0]  (!%p7074_p6), %s7073_s1, 14336, %s6258_s30, [#allocation6], %s7051_s16, %s7051_s16, %s7052_s20  }
  0x75   : > { %s404_s27 = sshll.u32 %s395_s28, 4  ;;  %s4442_s8 = sshll.u32 %s401_s29, 7  ;;  %s6320_s27 = int_to_ptr.vmem [resolvable:$true] %s404_s27 }
  0x76   : > { %s6325_s25 = scalar_lea.hbm %s7030_s6, %s4442_s8  ;;  %s5846_s5 = scalar_lea.hbm %s7030_s6, 1024 }
  0x77   : > { %s5841_s4 = scalar_lea.hbm %s6325_s25, 256  ;;  %p5847_p10 = scmp.lt.u32.totalorder %s6325_s25, %s7030_s6 }
  0x78   : > { %p5842_p11 = scmp.ne.s32.totalorder %s6325_s25, %s5841_s4  ;;  %p5848_p0 = scmp.lt.u32.totalorder %s5846_s5, %s5841_s4 }
  0x79   : > { %p5850_p3 = scmp.lt.u32.totalorder %s5841_s4, %s6325_s25 }
  0x7a   : > { %p5844_p12 = pnand %p5842_p11, %p5785_p2  ;;  %p5849_p4 = por %p5848_p0, %p5847_p10 }
  0x7c   : > { %p5845_p1 = pneg %p5844_p12  ;;  %p5851_p8 = por %p5850_p3, %p5849_p4 }
  0x7e   : > { %p5852_p9 = pnand %p5851_p8, %p5845_p1 }
  0x80   : > { %5855 = shalt.err (!%p5852_p9)
}
  0x81   : > { %s5856_s28 = scalar_lea.vmem %s6320_s27, 256  ;;  %s6060_s8 = smov [#allocation11]  }
  0x82   : > { %p5857_p5 = scmp.ne.s32.totalorder %s6320_s27, %s5856_s28  ;;  %s5861_s21 = sshll.u32 %s6060_s8, 4  ;;  %s5862_s21 = int_to_ptr.vmem [resolvable:$false] %s5861_s21 }
  0x83   : > { %s5863_s0 = scalar_lea.vmem %s5862_s21, 512  ;;  %p5864_p6 = scmp.lt.s32.totalorder %s6320_s27, %s5862_s21 }
  0x84   : > { %p5859_p11 = pnand %p5857_p5, %p5785_p2  ;;  %p5865_p10 = scmp.lt.s32.totalorder %s5863_s0, %s5856_s28 }
  0x86   : > { %p5860_p12 = pneg %p5859_p11  ;;  %p5866_p0 = por %p5865_p10, %p5864_p6 }
  0x88   : > { %p5867_p4 = pnand %p5866_p0, %p5860_p12 }
  0x8a   : > { %5870 = shalt.err (!%p5867_p4)
}
  0x8b   : > { %s7075_s4 = smov 256   ;;  %s6061_s30 = smov [#allocation7]  }
  0x8c   : > { %5307 = dma.hbm_to_vmem [thread:$0]  (!%p6252_p13), %s6325_s25, 256, %s6320_s27, %s6260_s10, %s7075_s4, %s7051_s16, %s7052_s20  }
  0x8d   : > { %s327_s26 = sshll.u32 %s6061_s30, 4  ;;  %s5871_s29 = scalar_lea.hbm %s7026_s2, 6144  ;;  %s328_s26 = int_to_ptr.vmem [resolvable:$true] %s327_s26 }
  0x8e   : > { %p5872_p2 = scmp.ne.s32.totalorder %s7026_s2, %s5871_s29  ;;  %p5878_p3 = scmp.lt.u32.totalorder %s5871_s29, %s7026_s2 }
  0x90   : > { %p5874_p6 = pnand %p5872_p2, %p6193_p7 }
  0x92   : > { %p5875_p1 = pneg %p5874_p6 }
  0x94   : > { %p5880_p8 = pnand %p5878_p3, %p5875_p1 }
  0x96   : > { %5883 = shalt.err (!%p5880_p8)
}
  0x97   : > { %s5884_s25 = scalar_lea.vmem %s328_s26, 6144  ;;  %p5892_p11 = scmp.lt.s32.totalorder %s328_s26, %s328_s26 }
  0x98   : > { %p5885_p13 = scmp.ne.s32.totalorder %s328_s26, %s5884_s25  ;;  %p5893_p12 = scmp.lt.s32.totalorder %s5884_s25, %s5884_s25 }
  0x9a   : > { %p5887_p9 = pnand %p5885_p13, %p6193_p7  ;;  %p5894_p10 = por %p5893_p12, %p5892_p11 }
  0x9c   : > { %p5888_p5 = pneg %p5887_p9 }
  0x9e   : > { %p5895_p0 = pnand %p5894_p10, %p5888_p5 }
  0xa0   : > { %5898 = shalt.err (!%p5895_p0)
}
  0xa1   : > { %s6062_s27 = smov 192   ;;  %s6063_s0 = smov 12  }
  0xa2   : > { %p7076_p4 = scmp.ne.s32.totalorder %s7062_s24, 0  ;;  %s6064_s17 = smov [#allocation8]  }
  0xa3   : > { %s340_s29 = sshll.u32 %s6064_s17, 4  ;;  %s357_s18 = sshll.u32 %s7033_s9, 4  ;;  %s341_s29 = int_to_ptr.vmem [resolvable:$true] %s340_s29  ;;  %s6375_s18 = int_to_ptr.vmem [resolvable:$true] %s357_s18 }
  0xa4   : > { %5294 = dma.hbm_to_vmem [thread:$0]  (!%p7076_p4), %s7026_s2, 6144, %s328_s26, [#allocation6], %s6062_s27, %s6062_s27, %s6063_s0  }
  0xa5   : > { %s5899_s16 = scalar_lea.hbm %s7027_s3, 4096 }
  0xa6   : > { %p5900_p2 = scmp.ne.s32.totalorder %s7027_s3, %s5899_s16  ;;  %p5906_p3 = scmp.lt.u32.totalorder %s5899_s16, %s7027_s3 }
  0xa8   : > { %p5902_p6 = pnand %p5900_p2, %p6193_p7 }
  0xaa   : > { %p5903_p1 = pneg %p5902_p6 }
  0xac   : > { %p5908_p8 = pnand %p5906_p3, %p5903_p1 }
  0xae   : > { %5911 = shalt.err (!%p5908_p8)
}
  0xaf   : > { %s5912_s0 = scalar_lea.vmem %s341_s29, 4096  ;;  %p5920_p11 = scmp.lt.s32.totalorder %s341_s29, %s341_s29 }
  0xb0   : > { %p5913_p13 = scmp.ne.s32.totalorder %s341_s29, %s5912_s0  ;;  %p5921_p12 = scmp.lt.s32.totalorder %s5912_s0, %s5912_s0 }
  0xb2   : > { %p5915_p9 = pnand %p5913_p13, %p6193_p7  ;;  %p5922_p10 = por %p5921_p12, %p5920_p11 }
  0xb4   : > { %p5916_p5 = pneg %p5915_p9 }
  0xb6   : > { %p5923_p0 = pnand %p5922_p10, %p5916_p5 }
  0xb8   : > { %5926 = shalt.err (!%p5923_p0)
}
  0xb9   : > { %s6065_s1 = smov 16   ;;  %s5927_s30 = scalar_lea.vmem %s6375_s18, 16 }
  0xba   : > { %5297 = dma.hbm_to_vmem [thread:$0]  (!%p7076_p4), %s7027_s3, 4096, %s341_s29, [#allocation9], %s7075_s4, %s7075_s4, %s6065_s1  }
  0xbb   : > { %p5928_p2 = scmp.ne.s32.totalorder %s6375_s18, %s5927_s30  ;;  %p5935_p3 = scmp.lt.s32.totalorder %s6375_s18, %s6375_s18 }
  0xbc   : > { %p5936_p8 = scmp.lt.s32.totalorder %s5927_s30, %s5927_s30 }
  0xbd   : > { %p5930_p6 = pnand %p5928_p2, %p6193_p7 }
  0xbe   : > { %p5937_p13 = por %p5936_p8, %p5935_p3 }
  0xbf   : > { %p5931_p1 = pneg %p5930_p6 }
  0xc1   : > { %p5938_p9 = pnand %p5937_p13, %p5931_p1 }
  0xc3   : > { %5941 = shalt.err (!%p5938_p9)
}
  0xc4   : > { %s6066_s5 = smov [#allocation13]   ;;  %p190_p7 = scmp.eq.s32.totalorder %s6211_s12, 0 }
  0xc5   : > { %5300 = dma.vmem_to_smem (!%p7076_p4), %s6375_s18, 16, %s6066_s5, [#allocation4]  }
  0xc6   : > { %s192_s11 = sadd.s32 1, %s6034_s15  ;;  %p199_p5 = scmp.ne.s32.totalorder %s6034_s15, %s6030_s14 }
  0xc7   : > { %s6411_s4 = scalar_select %p190_p7, %s6034_s15, %s192_s11  }
  0xc8   : > { %p7077_p11 = scmp.eq.s32.totalorder %s6050_s19, 0  ;;  %p205_p10 = scmp.ne.s32.totalorder %s6030_s14, %s6026_s13 }
  0xc9   : > { %s416_s24 = sand.u32 1, %s6034_s15   ;;  %s4716_s17 = sshll.u32 %s6050_s19, 11 }
  0xca   : > { %p201_p12 = por %p199_p5, %p7077_p11  ;;  %p7078_p0 = scmp.eq.s32.totalorder %s6165_s22, 0 }
  0xcb   : > { %s4443_s28 = sshll.u32 %s416_s24, 7  ;;  %s6428_s18 = scalar_lea.hbm %s7031_s7, %s4716_s17 }
  0xcc   : > { %p6421_p2 = por %p205_p10, %p7078_p0  ;;  %s418_s12 = scalar_lea.vmem [#allocation12], %s4443_s28 }
  0xcd   : > { %s425_s25 = sshll.u32 %s418_s12, 4  ;;  %p7080_p4 = scmp.lt.s32.totalorder %s6050_s19, 2  ;;  %s6436_s25 = int_to_ptr.vmem [resolvable:$true] %s425_s25 }
  0xce   : > { %s5942_s26 = scalar_lea.hbm %s6428_s18, 2048  ;;  %s5947_s19 = scalar_lea.hbm %s7031_s7, 4096 }
  0xcf   : > { %p6432_p6 = pnand %p7080_p4, %p201_p12  ;;  %p5943_p1 = scmp.ne.s32.totalorder %s6428_s18, %s5942_s26 }
  0xd0   : > { %p5948_p9 = scmp.lt.u32.totalorder %s6428_s18, %s7031_s7  ;;  %p5949_p7 = scmp.lt.u32.totalorder %s5947_s19, %s5942_s26 }
  0xd1   : > { %p5944_p3 = pneg %p6432_p6  ;;  %p5951_p11 = scmp.lt.u32.totalorder %s5942_s26, %s6428_s18 }
  0xd2   : > { %p5950_p5 = por %p5949_p7, %p5948_p9 }
  0xd3   : > { %p5945_p8 = pnand %p5944_p3, %p5943_p1 }
  0xd4   : > { %p5952_p12 = por %p5951_p11, %p5950_p5 }
  0xd5   : > { %p5946_p13 = pneg %p5945_p8 }
  0xd7   : > { %p5953_p10 = pnand %p5952_p12, %p5946_p13 }
  0xd9   : > { %5956 = shalt.err (!%p5953_p10)
}
  0xda   : > { %s5957_s16 = scalar_lea.vmem %s6436_s25, 2048  ;;  %s6067_s30 = smov [#allocation12]  }
  0xdb   : > { %p5958_p0 = scmp.ne.s32.totalorder %s6436_s25, %s5957_s16  ;;  %s5962_s5 = sshll.u32 %s6067_s30, 4  ;;  %s5963_s5 = int_to_ptr.vmem [resolvable:$false] %s5962_s5 }
  0xdc   : > { %s5964_s11 = scalar_lea.vmem %s5963_s5, 4096  ;;  %p5965_p8 = scmp.lt.s32.totalorder %s6436_s25, %s5963_s5 }
  0xdd   : > { %p5960_p4 = pnand %p5958_p0, %p5944_p3  ;;  %p5966_p9 = scmp.lt.s32.totalorder %s5964_s11, %s5957_s16 }
  0xdf   : > { %p5961_p1 = pneg %p5960_p4  ;;  %p5967_p7 = por %p5966_p9, %p5965_p8 }
  0xe1   : > { %p5968_p5 = pnand %p5967_p7, %p5961_p1 }
  0xe3   : > { %5971 = shalt.err (!%p5968_p5)
}
  0xe4   : > { %s7082_s24 = smov 8   ;;  %s7083_s17 = smov 128  }
  0xe5   : > { %5310 = dma.hbm_to_vmem [thread:$0]  (!%p6432_p6), %s6428_s18, 2048, %s6436_s25, %s6260_s10, %s7083_s17, %s7083_s17, %s7082_s24  }
  0xe6   : > { %p7084_p3 = scmp.ne.s32.totalorder %s7061_s23, 0 }
  0xe7   : > { %p7085_p13 = scmp.eq.s32.totalorder (!%p7084_p3), %s6165_s22, 0 }
  0xe8   : > { %446 = sbr.rel (%p7084_p3) target bundleno = 4034 (0xfc2), region = 60 }
  0xef   : > { %6001 = dma.done.wait (%p7085_p13), [#allocation3], 7168   ;;  %p7086_p11 = pmov %p7085_p13 }
  0xf1   : > { %6003 = vsyncadd (%p7086_p11), [#allocation3], 4294960128  ;;  %p7087_p12 = pmov %p7086_p11 }
  0xf2   : > { %p7088_p10 = pmov %p7086_p11 }
  0xf3   : > { %6005 = dma.done.wait (%p7087_p12), [#allocation6], 20480  }
  0xf4   : > { %6007 = vsyncadd (%p7088_p10), [#allocation6], 4294946816  ;;  %p7089_p0 = pmov %p7088_p10 }
  0xf6   : > { %6009 = dma.done.wait (%p7089_p0), [#allocation9], 4096   ;;  %p7090_p6 = pmov %p7089_p0 }
  0xf7   : > { %s7091_s23 = sld [smem:[#allocation20_spill]]  ;;  %s7092_s10 = sld [smem:[#allocation24_spill]] }
  0xf8   : > { %6011 = vsyncadd (%p7090_p6), [#allocation9], 4294963200  ;;  %s464_s28 = sand.u32 1, %s6165_s22  }
  0xf9   : > { %s465_s18 = scalar_lea.sflag [#allocation3], %s464_s28 }
  0xfd   : > { %s466_s8 = sand.u32 1, %s7091_s23   ;;  %p7093_p4 = scmp.ne.s32.totalorder %s7092_s10, 0 }
  0xfe   : > { %s4451_s21 = sshll.u32 %s466_s8, 7 }
  0xff   : > { %s6483_s12 = scalar_lea.vmem [#allocation10], %s4451_s21 }
 0x100   : > { %6013 = dma.done.wait (%p7093_p4), %s465_s18, 2304  }
 0x101   : > { %6015 = vsyncadd (%p7093_p4), %s465_s18, 4294964992  ;;  %s6489_s25 = sshll.u32 %s466_s8, 4  ;;  %s484_s13 = sand.u32 1, %s6030_s14  }
 0x102   : > { %s4453_s26 = sshll.u32 %s484_s13, 7  ;;  %s477_s27 = scalar_lea.vmem [#allocation11], %s6489_s25 }
 0x103   : > { %s6493_s0 = scalar_lea.vmem [#allocation12], %s4453_s26 }
 0x104   : > { %6017 = dma.done.wait (%p6421_p2), %s465_s18, 2048  }
 0x105   : > { %6019 = vsyncadd (%p6421_p2), %s465_s18, 4294965248  ;;  %p7094_p1 = pmov %p7089_p0 }
 0x106   : > { %p7095_p8 = pmov %p7089_p0 }
 0x107   : > { %6021 = dma.done.wait (%p7094_p1), [#allocation4], 16  }
 0x108   : > { %6023 = vsyncadd (%p7095_p8), [#allocation4], 4294967280 }
 0x109   : > { %495 = sfence }
 0x10a   : > { %v575_v0 = vld [vmem:[%s6493_s0] sm:$0xff]  ;;  %v576_v1 = vld [vmem:[%s6493_s0 + $0x8] sm:$0xff]  ;;  %v577_v2 = vld [vmem:[%s6493_s0 + $0x10] sm:$0xff]  ;;  %s7096_s1 = sld [smem:[#allocation27_spill]]  ;;  %vm6070_vm0 = vmmov 0   ;;  %s6071_s26 = smov 126  }
 0x10b   : > { %v5065_v3 = vpack.c.bf16 %v576_v1, %v575_v0  ;;  %v578_v4 = vld [vmem:[%s6493_s0 + $0x18] sm:$0xff]  ;;  %v579_v6 = vld [vmem:[%s6493_s0 + $0x20] sm:$0xff]  ;;  %v580_v7 = vld [vmem:[%s6493_s0 + $0x28] sm:$0xff]  ;;  %s7097_s20 = sld [smem:[#allocation29_spill]]  ;;  %s6072_s30 = smov 1   ;;  %vm4250_vm1 = vcmask 7168  }
 0x10c   : > { %v5069_v5 = vpack.c.bf16 %v578_v4, %v577_v2  ;;  %v5073_v8 = vpack.c.bf16 %v580_v7, %v579_v6  ;;  %v6510_v9 = vld [vmem:[%s6483_s12] sm:$0xff]  ;;  %v581_v10 = vld [vmem:[%s6493_s0 + $0x30] sm:$0xff]  ;;  %v582_v11 = vld [vmem:[%s6493_s0 + $0x38] sm:$0xff]  ;;  %s6073_s5 = smov 127   ;;  %s4239_s11 = sld [smem:[#allocation13]] }
 0x10d   : > { %5066 = vmatprep.subr.bf16.mxu0 %v5065_v3  ;;  %4913 = vmatprep.mubr.f32.mxu0 %v6510_v9  ;;  %v5077_v12 = vpack.c.bf16 %v582_v11, %v581_v10  ;;  %v583_v13 = vld [vmem:[%s6493_s0 + $0x40] sm:$0xff]  ;;  %v584_v14 = vld [vmem:[%s6493_s0 + $0x48] sm:$0xff]  ;;  %v585_v18 = vld [vmem:[%s6493_s0 + $0x50] sm:$0xff]  ;;  %s7098_s10 = sld [smem:[#allocation30_spill]] }
 0x10e   : > { %5068 = vmatpush3.bf16.msra.mxu0 %v5065_v3  ;;  %v5397_v15 = vld [vmem:[#allocation2] sm:$0xff]   ;;  %v5398_v16 = vld [vmem:[#allocation2 + $0x8] sm:$0xff]   ;;  %v5081_v17 = vpack.c.bf16 %v584_v14, %v583_v13  ;;  %v586_v19 = vld [vmem:[%s6493_s0 + $0x58] sm:$0xff] }
 0x10f   : > { %5070 = vmatprep.subr.bf16.mxu0 %v5069_v5  ;;  %4937 = vmatprep.subr.bf16.mxu1 %v5397_v15  ;;  %v5399_v20 = vld [vmem:[#allocation2 + $0x10] sm:$0xff]   ;;  %v587_v21 = vld [vmem:[%s6493_s0 + $0x60] sm:$0xff]  ;;  %v588_v22 = vld [vmem:[%s6493_s0 + $0x68] sm:$0xff]  ;;  %v5085_v23 = vpack.c.bf16 %v586_v19, %v585_v18 }
 0x110   : > { %4938 = vmatpush3.bf16.msra.mxu1 %v5397_v15  ;;  %v5400_v24 = vld [vmem:[#allocation2 + $0x18] sm:$0xff]   ;;  %v589_v25 = vld [vmem:[%s6493_s0 + $0x70] sm:$0xff]  ;;  %v5089_v27 = vpack.c.bf16 %v588_v22, %v587_v21  ;;  %v5401_v28 = vld [vmem:[#allocation2 + $0x20] sm:$0xff]  }
 0x111   : > { %4939 = vmatprep.subr.bf16.mxu1 %v5398_v16  ;;  %v590_v26 = vld [vmem:[%s6493_s0 + $0x78] sm:$0xff]  ;;  %v5402_v30 = vld [vmem:[#allocation2 + $0x28] sm:$0xff]   ;;  %v6527_v32 = vld [vmem:[%s6483_s12 + $0x10] sm:$0xff] }
 0x112   : > { %5072 = vmatpush3.bf16.msra.mxu0 %v5069_v5  ;;  %v5093_v29 = vpack.c.bf16 %v590_v26, %v589_v25  ;;  %v6524_v31 = vld [vmem:[%s6483_s12 + $0x8] sm:$0xff]  ;;  %v6530_v33 = vld [vmem:[%s6483_s12 + $0x18] sm:$0xff]  ;;  %v6534_v34 = vld [vmem:[%s6483_s12 + $0x20] sm:$0xff] }
 0x113   : > { %5074 = vmatprep.subr.bf16.mxu0 %v5073_v8  ;;  %v6538_v35 = vld [vmem:[%s6483_s12 + $0x28] sm:$0xff]  ;;  %v6542_v36 = vld [vmem:[%s6483_s12 + $0x30] sm:$0xff]  ;;  %v6546_v37 = vld [vmem:[%s6483_s12 + $0x38] sm:$0xff] }
 0x114   : > { %4940 = vmatpush3.bf16.msra.mxu1 %v5398_v16  ;;  %v6550_v38 = vld [vmem:[%s6483_s12 + $0x40] sm:$0xff]  ;;  %v6554_v39 = vld [vmem:[%s6483_s12 + $0x48] sm:$0xff]  ;;  %v6558_v40 = vld [vmem:[%s6483_s12 + $0x50] sm:$0xff] }
 0x115   : > { %4941 = vmatprep.subr.bf16.mxu1 %v5399_v20  ;;  %v6562_v41 = vld [vmem:[%s6483_s12 + $0x58] sm:$0xff]  ;;  %v6566_v42 = vld [vmem:[%s6483_s12 + $0x60] sm:$0xff]  ;;  %v6570_v43 = vld [vmem:[%s6483_s12 + $0x68] sm:$0xff] }
 0x116   : > { %5076 = vmatpush3.bf16.msra.mxu0 %v5073_v8  ;;  %v6574_v44 = vld [vmem:[%s6483_s12 + $0x70] sm:$0xff]  ;;  %v6578_v45 = vld [vmem:[%s6483_s12 + $0x78] sm:$0xff]  ;;  %v4459_v22 = vld [vmem:[%s7096_s1] ss:$0 sm:$0xff] }
 0x117   : > { %5078 = vmatprep.subr.bf16.mxu0 %v5077_v12  ;;  %v5403_v46 = vld [vmem:[#allocation2 + $0x30] sm:$0xff]   ;;  %v5404_v47 = vld [vmem:[#allocation2 + $0x38] sm:$0xff]  }
 0x118   : > { %4942 = vmatpush3.bf16.msra.mxu1 %v5399_v20  ;;  %v5405_v8 = vld [vmem:[#allocation8] ss:$16 sps:$4 sm:$0xff]   ;;  %v5413_v10 = vld [vmem:[#allocation8 + $0x24] ss:$16 sps:$4 sm:$0xff]  }
 0x119   : > { %4943 = vmatprep.subr.bf16.mxu1 %v5400_v24  ;;  %v5411_v11 = vld [vmem:[#allocation8 + $0x20] ss:$16 sps:$4 sm:$0xff]   ;;  %v5425_v14 = vld [vmem:[#allocation8 + $0x64] ss:$16 sps:$4 sm:$0xff]  }
 0x11a   : > { %5080 = vmatpush3.bf16.msra.mxu0 %v5077_v12  ;;  %v5419_v12 = vld [vmem:[#allocation8 + $0x44] ss:$16 sps:$4 sm:$0xff]   ;;  %v5417_v13 = vld [vmem:[#allocation8 + $0x40] ss:$16 sps:$4 sm:$0xff]  }
 0x11b   : > { %5082 = vmatprep.subr.bf16.mxu0 %v5081_v17  ;;  %v5423_v15 = vld [vmem:[#allocation8 + $0x60] ss:$16 sps:$4 sm:$0xff]   ;;  %v5431_v16 = vld [vmem:[#allocation8 + $0x84] ss:$16 sps:$4 sm:$0xff]  }
 0x11c   : > { %4944 = vmatpush3.bf16.msra.mxu1 %v5400_v24  ;;  %v5437_v18 = vld [vmem:[#allocation8 + $0xa4] ss:$16 sps:$4 sm:$0xff]   ;;  %v5435_v19 = vld [vmem:[#allocation8 + $0xa0] ss:$16 sps:$4 sm:$0xff]  }
 0x11d   : > { %4945 = vmatprep.subr.bf16.mxu1 %v5401_v28  ;;  %v5443_v20 = vld [vmem:[#allocation8 + $0xc4] ss:$16 sps:$4 sm:$0xff]   ;;  %v5441_v21 = vld [vmem:[#allocation8 + $0xc0] ss:$16 sps:$4 sm:$0xff]  }
 0x11e   : > { %5084 = vmatpush3.bf16.msra.mxu0 %v5081_v17  ;;  %v5429_v17 = vld [vmem:[#allocation8 + $0x80] ss:$16 sps:$4 sm:$0xff]  }
 0x11f   : > { %5086 = vmatprep.subr.bf16.mxu0 %v5085_v23 }
 0x120   : > { %4946 = vmatpush3.bf16.msra.mxu1 %v5401_v28 }
 0x121   : > { %4947 = vmatprep.subr.bf16.mxu1 %v5402_v30 }
 0x122   : > { %5088 = vmatpush3.bf16.msra.mxu0 %v5085_v23 }
 0x123   : > { %5090 = vmatprep.subr.bf16.mxu0 %v5089_v27 }
 0x124   : > { %4948 = vmatpush3.bf16.msra.mxu1 %v5402_v30 }
 0x125   : > { %4949 = vmatprep.subr.bf16.mxu1 %v5403_v46 }
 0x126   : > { %5092 = vmatpush3.bf16.msra.mxu0 %v5089_v27 }
 0x127   : > { %5094 = vmatprep.subr.bf16.mxu0 %v5093_v29 }
 0x128   : > { %4950 = vmatpush3.bf16.msra.mxu1 %v5403_v46 }
 0x129   : > { %4951 = vmatprep.subr.bf16.mxu1 %v5404_v47 }
 0x12a   : > { %5096 = vmatpush3.bf16.msra.mxu0 %v5093_v29 }
 0x12c   : > { %4952 = vmatpush3.bf16.msra.mxu1 %v5404_v47 }
 0x12d   : > { %4914 = vmatmul.mubr.f32.vlgmr.msra.gmra.mrb[0].mxu0 %v6524_v31 }
 0x12e   : > { %4916 = vmatprep.mubr.f32.mxu0 %v6527_v32 }
 0x131   : > { %4917 = vmatmul.mubr.f32.gmra.mrb[2].mxu0 %v6530_v33 }
 0x132   : > { %4919 = vmatprep.mubr.f32.mxu0 %v6534_v34 }
 0x135   : > { %4920 = vmatmul.mubr.f32.gmra.mrb[4].mxu0 %v6538_v35 }
 0x136   : > { %4922 = vmatprep.mubr.f32.mxu0 %v6542_v36 }
 0x139   : > { %4923 = vmatmul.mubr.f32.gmra.mrb[6].mxu0 %v6546_v37 }
 0x13a   : > { %4925 = vmatprep.mubr.f32.mxu0 %v6550_v38 }
 0x13d   : > { %4926 = vmatmul.mubr.f32.gmra.mrb[8].mxu0 %v6554_v39 }
 0x13e   : > { %4928 = vmatprep.mubr.f32.mxu0 %v6558_v40 }
 0x141   : > { %4929 = vmatmul.mubr.f32.gmra.mrb[10].mxu0 %v6562_v41 }
 0x142   : > { %4931 = vmatprep.mubr.f32.mxu0 %v6566_v42 }
 0x145   : > { %4932 = vmatmul.mubr.f32.gmra.mrb[12].mxu0 %v6570_v43 }
 0x146   : > { %4934 = vmatprep.mubr.f32.mxu0 %v6574_v44 }
 0x149   : > { %4935 = vmatmul.mubr.f32.gmra.mrb[14].mxu0 %v6578_v45 }
 0x14a   : > { %5001 = vmatprep.mubr.f32.mxu0 %v6510_v9  ;;  %v5407_v9 = vld [vmem:[#allocation8 + $0x4] ss:$16 sps:$4 sm:$0xff]  }
 0x14b   : > { %1295 = vmatprep.subr.bf16.mxu1 %v5407_v9 }
 0x200   : > { %v4915_v48 = vpop.f32.mrb[0].mxu0 }
 0x201   : > { %v674_v49 = vpop.f32.mrb[1].mxu0 }
 0x202   : > { %v753_v50 = vpack.c.bf16 %v4915_v48, %v674_v49 }
 0x204   : > { %v4918_v51 = vpop.f32.mrb[2].mxu0  ;;  %4953 = vmatprep.mubr.bf16.mxu1 %v753_v50 }
 0x205   : > { %v684_v52 = vpop.f32.mrb[3].mxu0 }
 0x206   : > { %v754_v53 = vpack.c.bf16 %v4918_v51, %v684_v52 }
 0x208   : > { %v4921_v54 = vpop.f32.mrb[4].mxu0  ;;  %4954 = vmatmul.mubr.bf16.vlgmr.msra.gmra.mrb[0].mxu1 %v754_v53 }
 0x209   : > { %v694_v55 = vpop.f32.mrb[5].mxu0  ;;  %1296 = vmatpush1.bf16.msra.mxu1 %v5405_v8 }
 0x20a   : > { %v755_v56 = vpack.c.bf16 %v4921_v54, %v694_v55  ;;  %1297 = vmatprep.subr.bf16.mxu1 %v5413_v10 }
 0x20c   : > { %v4924_v57 = vpop.f32.mrb[6].mxu0  ;;  %4957 = vmatprep.mubr.bf16.mxu1 %v755_v56 }
 0x20d   : > { %v704_v58 = vpop.f32.mrb[7].mxu0  ;;  %1298 = vmatpush1.bf16.msra.mxu1 %v5411_v11 }
 0x20e   : > { %v756_v59 = vpack.c.bf16 %v4924_v57, %v704_v58  ;;  %1299 = vmatprep.subr.bf16.mxu1 %v5419_v12 }
 0x210   : > { %v4927_v60 = vpop.f32.mrb[8].mxu0  ;;  %4958 = vmatmul.mubr.bf16.gmra.mrb[4].mxu1 %v756_v59 }
 0x211   : > { %v714_v61 = vpop.f32.mrb[9].mxu0  ;;  %1300 = vmatpush1.bf16.msra.mxu1 %v5417_v13 }
 0x212   : > { %v757_v62 = vpack.c.bf16 %v4927_v60, %v714_v61  ;;  %1301 = vmatprep.subr.bf16.mxu1 %v5425_v14 }
 0x214   : > { %v4930_v63 = vpop.f32.mrb[10].mxu0  ;;  %4961 = vmatprep.mubr.bf16.mxu1 %v757_v62 }
 0x215   : > { %v724_v0 = vpop.f32.mrb[11].mxu0  ;;  %1302 = vmatpush1.bf16.msra.mxu1 %v5423_v15 }
 0x216   : > { %v758_v1 = vpack.c.bf16 %v4930_v63, %v724_v0  ;;  %1303 = vmatprep.subr.bf16.mxu1 %v5431_v16 }
 0x218   : > { %v4933_v2 = vpop.f32.mrb[12].mxu0  ;;  %4962 = vmatmul.mubr.bf16.gmra.mrb[8].mxu1 %v758_v1 }
 0x219   : > { %v734_v3 = vpop.f32.mrb[13].mxu0  ;;  %1304 = vmatpush1.bf16.msra.mxu1 %v5429_v17 }
 0x21a   : > { %v759_v4 = vpack.c.bf16 %v4933_v2, %v734_v3  ;;  %1305 = vmatprep.subr.bf16.mxu1 %v5437_v18 }
 0x21c   : > { %v4936_v5 = vpop.f32.mrb[14].mxu0  ;;  %4965 = vmatprep.mubr.bf16.mxu1 %v759_v4 }
 0x21d   : > { %v744_v6 = vpop.f32.mrb[15].mxu0  ;;  %1306 = vmatpush1.bf16.msra.mxu1 %v5435_v19 }
 0x21e   : > { %v760_v7 = vpack.c.bf16 %v4936_v5, %v744_v6  ;;  %1307 = vmatprep.subr.bf16.mxu1 %v5443_v20 }
 0x220   : > { %4966 = vmatmul.mubr.bf16.gmra.mrb[12].mxu1 %v760_v7 }
 0x221   : > { %1308 = vmatpush1.bf16.msra.mxu1 %v5441_v21 }
 0x2db   : > { %v4955_v23 = vpop.f32.mrb[0].mxu1 }
 0x2dc   : > { %v858_v24 = vadd.f32 %v4955_v23, %v4459_v22  ;;  %v849_v25 = vpop.f32.mrb[1].mxu1 }
 0x2dd   : > { %v850_v26 = vadd.f32 %v4459_v22, %v849_v25  ;;  %v4956_v27 = vpop.f32.mrb[2].mxu1 }
 0x2de   : > { %v861_v28 = vadd.f32 %v4956_v27, %v4459_v22  ;;  %v852_v29 = vpop.f32.mrb[3].mxu1  ;;  %v914_v46 = vmax.f32 %v858_v24, 0.0 }
 0x2df   : > { %v853_v30 = vadd.f32 %v4459_v22, %v852_v29  ;;  %v912_v48 = vmax.f32 %v850_v26, 0.0 }
 0x2e0   : > { %v915_v47 = vmax.f32 %v861_v28, 0.0 }
 0x2e1   : > { %v913_v49 = vmax.f32 %v853_v30, 0.0 }
 0x2e2   : > { %v5101_v50 = vpack.c.bf16 %v915_v47, %v914_v46  ;;  %v5410_v46 = vld [vmem:[#allocation8 + $0xc] ss:$16 sps:$4 sm:$0xff]   ;;  %v5408_v47 = vld [vmem:[#allocation8 + $0x8] ss:$16 sps:$4 sm:$0xff]  }
 0x2e3   : > { %v5097_v51 = vpack.c.bf16 %v913_v49, %v912_v48  ;;  %v4959_v52 = vpop.f32.mrb[4].mxu1  ;;  %v5416_v48 = vld [vmem:[#allocation8 + $0x2c] ss:$16 sps:$4 sm:$0xff]  }
 0x2e4   : > { %v874_v53 = vadd.f32 %v4959_v52, %v4459_v22  ;;  %v865_v54 = vpop.f32.mrb[5].mxu1  ;;  %v5422_v49 = vld [vmem:[#allocation8 + $0x4c] ss:$16 sps:$4 sm:$0xff]   ;;  %v5450_v52 = vld [vmem:[#allocation8 + $0xe8] ss:$16 sps:$4 sm:$0xff]  }
 0x2e5   : > { %v866_v55 = vadd.f32 %v4459_v22, %v865_v54  ;;  %v4960_v56 = vpop.f32.mrb[6].mxu1  ;;  %5098 = vmatprep.subr.bf16.mxu0 %v5097_v51  ;;  %v5453_v54 = vld [vmem:[#allocation5] ss:$8 sps:$4 sm:$0xff]  }
 0x2e6   : > { %v877_v57 = vadd.f32 %v4960_v56, %v4459_v22  ;;  %v868_v58 = vpop.f32.mrb[7].mxu1  ;;  %5100 = vmatpush3.bf16.msra.mxu0 %v5097_v51  ;;  %v918_v60 = vmax.f32 %v874_v53, 0.0  ;;  %v5428_v51 = vld [vmem:[#allocation8 + $0x6c] ss:$16 sps:$4 sm:$0xff]  }
 0x2e7   : > { %v869_v59 = vadd.f32 %v4459_v22, %v868_v58  ;;  %5102 = vmatprep.subr.bf16.mxu0 %v5101_v50  ;;  %v916_v62 = vmax.f32 %v866_v55, 0.0  ;;  %v5456_v58 = vld [vmem:[#allocation5 + $0x10] ss:$8 sps:$4 sm:$0xff]  }
 0x2e8   : > { %v919_v61 = vmax.f32 %v877_v57, 0.0 }
 0x2e9   : > { %v917_v63 = vmax.f32 %v869_v59, 0.0  ;;  %v5461_v59 = vld [vmem:[#allocation5 + $0x24] ss:$8 sps:$4 sm:$0xff]  }
 0x2ea   : > { %v5109_v0 = vpack.c.bf16 %v919_v61, %v918_v60  ;;  %5104 = vmatpush3.bf16.msra.mxu0 %v5101_v50  ;;  %v5420_v50 = vld [vmem:[#allocation8 + $0x48] ss:$16 sps:$4 sm:$0xff]  }
 0x2eb   : > { %v5105_v1 = vpack.c.bf16 %v917_v63, %v916_v62  ;;  %v4963_v2 = vpop.f32.mrb[8].mxu1  ;;  %v5459_v63 = vld [vmem:[#allocation5 + $0x20] ss:$8 sps:$4 sm:$0xff]  }
 0x2ec   : > { %v890_v3 = vadd.f32 %v4963_v2, %v4459_v22  ;;  %v881_v4 = vpop.f32.mrb[9].mxu1 }
 0x2ed   : > { %v882_v5 = vadd.f32 %v4459_v22, %v881_v4  ;;  %v4964_v6 = vpop.f32.mrb[10].mxu1  ;;  %5106 = vmatprep.subr.bf16.mxu0 %v5105_v1  ;;  %v5462_v4 = vld [vmem:[#allocation5 + $0x30] ss:$8 sps:$4 sm:$0xff]  }
 0x2ee   : > { %v893_v7 = vadd.f32 %v4964_v6, %v4459_v22  ;;  %v884_v8 = vpop.f32.mrb[11].mxu1  ;;  %5108 = vmatpush3.bf16.msra.mxu0 %v5105_v1  ;;  %v922_v10 = vmax.f32 %v890_v3, 0.0 }
 0x2ef   : > { %v885_v9 = vadd.f32 %v4459_v22, %v884_v8  ;;  %5110 = vmatprep.subr.bf16.mxu0 %v5109_v0  ;;  %v920_v12 = vmax.f32 %v882_v5, 0.0  ;;  %v5467_v5 = vld [vmem:[#allocation5 + $0x44] ss:$8 sps:$4 sm:$0xff]  }
 0x2f0   : > { %v923_v11 = vmax.f32 %v893_v7, 0.0 }
 0x2f1   : > { %v921_v13 = vmax.f32 %v885_v9, 0.0  ;;  %v5465_v9 = vld [vmem:[#allocation5 + $0x40] ss:$8 sps:$4 sm:$0xff]  }
 0x2f2   : > { %v5117_v14 = vpack.c.bf16 %v923_v11, %v922_v10  ;;  %5112 = vmatpush3.bf16.msra.mxu0 %v5109_v0  ;;  %v5464_v0 = vld [vmem:[#allocation5 + $0x34] ss:$8 sps:$4 sm:$0xff]  }
 0x2f3   : > { %v5113_v15 = vpack.c.bf16 %v921_v13, %v920_v12  ;;  %v4967_v16 = vpop.f32.mrb[12].mxu1  ;;  %v5470_v10 = vld [vmem:[#allocation5 + $0x54] ss:$8 sps:$4 sm:$0xff]  }
 0x2f4   : > { %v906_v17 = vadd.f32 %v4967_v16, %v4459_v22  ;;  %v897_v18 = vpop.f32.mrb[13].mxu1 }
 0x2f5   : > { %v898_v19 = vadd.f32 %v4459_v22, %v897_v18  ;;  %v4968_v20 = vpop.f32.mrb[14].mxu1  ;;  %5114 = vmatprep.subr.bf16.mxu0 %v5113_v15 }
 0x2f6   : > { %v909_v21 = vadd.f32 %v4968_v20, %v4459_v22  ;;  %v900_v23 = vpop.f32.mrb[15].mxu1  ;;  %5116 = vmatpush3.bf16.msra.mxu0 %v5113_v15  ;;  %v926_v25 = vmax.f32 %v906_v17, 0.0  ;;  %v5473_v15 = vld [vmem:[#allocation5 + $0x64] ss:$8 sps:$4 sm:$0xff]   ;;  %v5476_v20 = vld [vmem:[#allocation5 + $0x74] ss:$8 sps:$4 sm:$0xff]  }
 0x2f7   : > { %v901_v24 = vadd.f32 %v4459_v22, %v900_v23  ;;  %5118 = vmatprep.subr.bf16.mxu0 %v5117_v14  ;;  %v924_v27 = vmax.f32 %v898_v19, 0.0  ;;  %v5414_v22 = vld [vmem:[#allocation8 + $0x28] ss:$16 sps:$4 sm:$0xff]  }
 0x2f8   : > { %v927_v26 = vmax.f32 %v909_v21, 0.0  ;;  %v5471_v19 = vld [vmem:[#allocation5 + $0x60] ss:$8 sps:$4 sm:$0xff]  }
 0x2f9   : > { %v925_v28 = vmax.f32 %v901_v24, 0.0 }
 0x2fa   : > { %v5125_v29 = vpack.c.bf16 %v927_v26, %v926_v25  ;;  %5120 = vmatpush3.bf16.msra.mxu0 %v5117_v14  ;;  %v5468_v14 = vld [vmem:[#allocation5 + $0x50] ss:$8 sps:$4 sm:$0xff]   ;;  %v5479_v26 = vld [vmem:[#allocation5 + $0x84] ss:$8 sps:$4 sm:$0xff]  }
 0x2fb   : > { %v5121_v30 = vpack.c.bf16 %v925_v28, %v924_v27  ;;  %v5474_v25 = vld [vmem:[#allocation5 + $0x70] ss:$8 sps:$4 sm:$0xff]   ;;  %v5477_v27 = vld [vmem:[#allocation5 + $0x80] ss:$8 sps:$4 sm:$0xff]   ;;  %v5482_v28 = vld [vmem:[#allocation5 + $0x94] ss:$8 sps:$4 sm:$0xff]  }
 0x2fd   : > { %5122 = vmatprep.subr.bf16.mxu0 %v5121_v30 }
 0x2fe   : > { %5124 = vmatpush3.bf16.msra.mxu0 %v5121_v30  ;;  %v5485_v30 = vld [vmem:[#allocation5 + $0xa4] ss:$8 sps:$4 sm:$0xff]  }
 0x2ff   : > { %5126 = vmatprep.subr.bf16.mxu0 %v5125_v29 }
 0x302   : > { %5128 = vmatpush3.bf16.msra.mxu0 %v5125_v29  ;;  %v5480_v29 = vld [vmem:[#allocation5 + $0x90] ss:$8 sps:$4 sm:$0xff]  }
 0x303   : > { %1408 = vmatprep.subr.bf16.mxu0 %v5410_v46  ;;  %v5483_v46 = vld [vmem:[#allocation5 + $0xa0] ss:$8 sps:$4 sm:$0xff]  }
 0x305   : > { %5002 = vmatmul.mubr.f32.vlgmr.msra.gmra.mrb[16].mxu0 %v6524_v31  ;;  %v5426_v31 = vld [vmem:[#allocation8 + $0x68] ss:$16 sps:$4 sm:$0xff]  }
 0x306   : > { %5004 = vmatprep.mubr.f32.mxu0 %v6527_v32  ;;  %1409 = vmatpush1.bf16.msra.mxu0 %v5408_v47  ;;  %v5434_v32 = vld [vmem:[#allocation8 + $0x8c] ss:$16 sps:$4 sm:$0xff]  }
 0x307   : > { %1410 = vmatprep.subr.bf16.mxu0 %v5416_v48  ;;  %v5488_v47 = vld [vmem:[#allocation5 + $0xb4] ss:$8 sps:$4 sm:$0xff]   ;;  %v5486_v48 = vld [vmem:[#allocation5 + $0xb0] ss:$8 sps:$4 sm:$0xff]  }
 0x309   : > { %5005 = vmatmul.mubr.f32.gmra.mrb[18].mxu0 %v6530_v33  ;;  %v5432_v33 = vld [vmem:[#allocation8 + $0x88] ss:$16 sps:$4 sm:$0xff]  }
 0x30a   : > { %5007 = vmatprep.mubr.f32.mxu0 %v6534_v34  ;;  %1411 = vmatpush1.bf16.msra.mxu0 %v5414_v22  ;;  %v5440_v34 = vld [vmem:[#allocation8 + $0xac] ss:$16 sps:$4 sm:$0xff]  }
 0x30b   : > { %1412 = vmatprep.subr.bf16.mxu0 %v5422_v49  ;;  %v5491_v22 = vld [vmem:[#allocation5 + $0xc4] ss:$8 sps:$4 sm:$0xff]   ;;  %v5489_v49 = vld [vmem:[#allocation5 + $0xc0] ss:$8 sps:$4 sm:$0xff]  }
 0x30d   : > { %5008 = vmatmul.mubr.f32.gmra.mrb[20].mxu0 %v6538_v35  ;;  %v5438_v35 = vld [vmem:[#allocation8 + $0xa8] ss:$16 sps:$4 sm:$0xff]  }
 0x30e   : > { %5010 = vmatprep.mubr.f32.mxu0 %v6542_v36  ;;  %1413 = vmatpush1.bf16.msra.mxu0 %v5420_v50  ;;  %v5446_v36 = vld [vmem:[#allocation8 + $0xcc] ss:$16 sps:$4 sm:$0xff]  }
 0x30f   : > { %1414 = vmatprep.subr.bf16.mxu0 %v5428_v51  ;;  %v5494_v50 = vld [vmem:[#allocation5 + $0xd4] ss:$8 sps:$4 sm:$0xff]   ;;  %v5492_v51 = vld [vmem:[#allocation5 + $0xd0] ss:$8 sps:$4 sm:$0xff]  }
 0x311   : > { %5011 = vmatmul.mubr.f32.gmra.mrb[22].mxu0 %v6546_v37  ;;  %v5444_v37 = vld [vmem:[#allocation8 + $0xc8] ss:$16 sps:$4 sm:$0xff]  }
 0x312   : > { %5013 = vmatprep.mubr.f32.mxu0 %v6550_v38  ;;  %1415 = vmatpush1.bf16.msra.mxu0 %v5426_v31  ;;  %v5449_v38 = vld [vmem:[#allocation8 + $0xe4] ss:$16 sps:$4 sm:$0xff]  }
 0x313   : > { %1416 = vmatprep.subr.bf16.mxu0 %v5434_v32  ;;  %1309 = vmatprep.subr.bf16.mxu1 %v5449_v38  ;;  %v5497_v31 = vld [vmem:[#allocation5 + $0xe4] ss:$8 sps:$4 sm:$0xff]   ;;  %v5495_v32 = vld [vmem:[#allocation5 + $0xe0] ss:$8 sps:$4 sm:$0xff]  }
 0x315   : > { %5014 = vmatmul.mubr.f32.gmra.mrb[24].mxu0 %v6554_v39  ;;  %v5452_v39 = vld [vmem:[#allocation8 + $0xec] ss:$16 sps:$4 sm:$0xff]  }
 0x316   : > { %5016 = vmatprep.mubr.f32.mxu0 %v6558_v40  ;;  %1417 = vmatpush1.bf16.msra.mxu0 %v5432_v33  ;;  %v5447_v40 = vld [vmem:[#allocation8 + $0xe0] ss:$16 sps:$4 sm:$0xff]   ;;  %v5500_v33 = vld [vmem:[#allocation5 + $0xf4] ss:$8 sps:$4 sm:$0xff]  }
 0x317   : > { %1418 = vmatprep.subr.bf16.mxu0 %v5440_v34  ;;  %1310 = vmatpush1.bf16.msra.mxu1 %v5447_v40  ;;  %v5498_v34 = vld [vmem:[#allocation5 + $0xf0] ss:$8 sps:$4 sm:$0xff]   ;;  %v960_v40 = vld [vmem:[%s7096_s1 + $0x1] sm:$0xf] }
 0x319   : > { %5017 = vmatmul.mubr.f32.gmra.mrb[26].mxu0 %v6562_v41  ;;  %v6068_v41 = vmov 0  }
 0x31a   : > { %5019 = vmatprep.mubr.f32.mxu0 %v6566_v42  ;;  %1419 = vmatpush1.bf16.msra.mxu0 %v5438_v35  ;;  %v5455_v42 = vld [vmem:[#allocation5 + $0x4] ss:$8 sps:$4 sm:$0xff]  }
 0x31b   : > { %1420 = vmatprep.subr.bf16.mxu0 %v5446_v36  ;;  %1327 = vmatprep.mubr.bf16.mxu1 %v6068_v41  ;;  %v5503_v35 = vld [vmem:[#allocation5 + $0x104] ss:$8 sps:$4 sm:$0xff]   ;;  %v1115_v36 = vlaneseq }
 0x31c   : > { %2002 = vmatprep.subr.bf16.mxu1 %v5455_v42 }
 0x31d   : > { %5020 = vmatmul.mubr.f32.gmra.mrb[28].mxu0 %v6570_v43 }
 0x31e   : > { %5022 = vmatprep.mubr.f32.mxu0 %v6574_v44  ;;  %1421 = vmatpush1.bf16.msra.mxu0 %v5444_v37  ;;  %v6618_v37 = vshrl.u32 %v1115_v36, 7 }
 0x31f   : > { %1422 = vmatprep.subr.bf16.mxu0 %v5452_v39 }
 0x320   : > { %v6621_v38 = vsub.s32 0, %v6618_v37  ;;  %v1125_v39 = vsub.s32 2, %v6618_v37  ;;  %v1129_v42 = vsub.s32 3, %v6618_v37 }
 0x321   : > { %5023 = vmatmul.mubr.f32.gmra.mrb[30].mxu0 %v6578_v45  ;;  %v5458_v45 = vld [vmem:[#allocation5 + $0x14] ss:$8 sps:$4 sm:$0xff]  }
 0x322   : > { %1423 = vmatpush1.bf16.msra.mxu0 %v5450_v52  ;;  %1440 = vmatprep.mubr.bf16.mxu0 %v6068_v41  ;;  %v6628_v52 = vsub.s32 1, %v6618_v37 }
 0x3d8   : > { %v5003_v43 = vpop.f32.mrb[16].mxu0 }
 0x3d9   : > { %v1027_v44 = vpop.f32.mrb[17].mxu0 }
 0x3da   : > { %v1106_v53 = vpack.c.bf16 %v5003_v43, %v1027_v44  ;;  %v6632_v43 = vrot.slane %v960_v40, %v6621_v38  ;;  %v6636_v44 = vrot.slane %v960_v40, %v1125_v39 }
 0x3dc   : > { %1328 = vmatmul.mubr.bf16.vlgmr.msra.gmra.mrb[16].mxu1 %v1106_v53  ;;  %1441 = vmatmul.mubr.bf16.vlgmr.msra.gmra.mrb[32].mxu0 %v1106_v53  ;;  %v5006_v55 = vpop.f32.mrb[18].mxu0  ;;  %v6639_v53 = vrot.slane %v960_v40, %v6628_v52 }
 0x3dd   : > { %v1037_v56 = vpop.f32.mrb[19].mxu0  ;;  %1337 = vmatprep.mubr.bf16.mxu1 %v6068_v41  ;;  %1450 = vmatprep.mubr.bf16.mxu0 %v6068_v41 }
 0x3de   : > { %v1107_v57 = vpack.c.bf16 %v5006_v55, %v1037_v56  ;;  %2003 = vmatpush1.bf16.msra.mxu1 %v5453_v54  ;;  %v6641_v54 = vrot.slane %v960_v40, %v1129_v42 }
 0x3df   : > { %2004 = vmatprep.subr.bf16.mxu1 %v5458_v45 }
 0x3e0   : > { %v5009_v60 = vpop.f32.mrb[20].mxu0 }
 0x3e1   : > { %v1047_v61 = vpop.f32.mrb[21].mxu0 }
 0x3e2   : > { %v1108_v62 = vpack.c.bf16 %v5009_v60, %v1047_v61  ;;  %2005 = vmatpush1.bf16.msra.mxu1 %v5456_v58 }
 0x3e3   : > { %2006 = vmatprep.subr.bf16.mxu1 %v5461_v59 }
 0x3e4   : > { %1338 = vmatmul.mubr.bf16.gmra.mrb[20].mxu1 %v1107_v57  ;;  %1451 = vmatmul.mubr.bf16.gmra.mrb[36].mxu0 %v1107_v57  ;;  %v5012_v1 = vpop.f32.mrb[22].mxu0 }
 0x3e5   : > { %1347 = vmatprep.mubr.bf16.mxu1 %v6068_v41  ;;  %1460 = vmatprep.mubr.bf16.mxu0 %v6068_v41  ;;  %v1057_v2 = vpop.f32.mrb[23].mxu0 }
 0x3e6   : > { %v1109_v3 = vpack.c.bf16 %v5012_v1, %v1057_v2  ;;  %2007 = vmatpush1.bf16.msra.mxu1 %v5459_v63 }
 0x3e7   : > { %2008 = vmatprep.subr.bf16.mxu1 %v5464_v0 }
 0x3e8   : > { %v5015_v6 = vpop.f32.mrb[24].mxu0 }
 0x3e9   : > { %v1067_v7 = vpop.f32.mrb[25].mxu0 }
 0x3ea   : > { %v1110_v8 = vpack.c.bf16 %v5015_v6, %v1067_v7  ;;  %2009 = vmatpush1.bf16.msra.mxu1 %v5462_v4 }
 0x3eb   : > { %2010 = vmatprep.subr.bf16.mxu1 %v5467_v5 }
 0x3ec   : > { %1348 = vmatmul.mubr.bf16.gmra.mrb[24].mxu1 %v1108_v62  ;;  %1461 = vmatmul.mubr.bf16.gmra.mrb[40].mxu0 %v1108_v62  ;;  %v5018_v11 = vpop.f32.mrb[26].mxu0 }
 0x3ed   : > { %1357 = vmatprep.mubr.bf16.mxu1 %v6068_v41  ;;  %1470 = vmatprep.mubr.bf16.mxu0 %v6068_v41  ;;  %v1077_v12 = vpop.f32.mrb[27].mxu0 }
 0x3ee   : > { %v1111_v13 = vpack.c.bf16 %v5018_v11, %v1077_v12  ;;  %2011 = vmatpush1.bf16.msra.mxu1 %v5465_v9 }
 0x3ef   : > { %2012 = vmatprep.subr.bf16.mxu1 %v5470_v10 }
 0x3f0   : > { %v5021_v16 = vpop.f32.mrb[28].mxu0 }
 0x3f1   : > { %v1087_v17 = vpop.f32.mrb[29].mxu0 }
 0x3f2   : > { %v1112_v18 = vpack.c.bf16 %v5021_v16, %v1087_v17  ;;  %2013 = vmatpush1.bf16.msra.mxu1 %v5468_v14 }
 0x3f3   : > { %2014 = vmatprep.subr.bf16.mxu1 %v5473_v15 }
 0x3f4   : > { %1358 = vmatmul.mubr.bf16.gmra.mrb[28].mxu1 %v1109_v3  ;;  %1471 = vmatmul.mubr.bf16.gmra.mrb[44].mxu0 %v1109_v3  ;;  %v5024_v21 = vpop.f32.mrb[30].mxu0 }
 0x3f5   : > { %1367 = vmatprep.mubr.bf16.mxu1 %v6068_v41  ;;  %1480 = vmatprep.mubr.bf16.mxu0 %v6068_v41  ;;  %v1097_v23 = vpop.f32.mrb[31].mxu0 }
 0x3f6   : > { %v1113_v24 = vpack.c.bf16 %v5024_v21, %v1097_v23  ;;  %2015 = vmatpush1.bf16.msra.mxu1 %v5471_v19 }
 0x3f7   : > { %2016 = vmatprep.subr.bf16.mxu1 %v5476_v20  ;;  %v5501_v20 = vld [vmem:[#allocation5 + $0x100] ss:$8 sps:$4 sm:$0xff]  }
 0x3fa   : > { %2017 = vmatpush1.bf16.msra.mxu1 %v5474_v25 }
 0x3fb   : > { %2018 = vmatprep.subr.bf16.mxu1 %v5479_v26  ;;  %v5506_v26 = vld [vmem:[#allocation5 + $0x114] ss:$8 sps:$4 sm:$0xff]  }
 0x3fc   : > { %1368 = vmatmul.mubr.bf16.gmra.mrb[32].mxu1 %v1110_v8  ;;  %1481 = vmatmul.mubr.bf16.gmra.mrb[48].mxu0 %v1110_v8 }
 0x3fd   : > { %1377 = vmatprep.mubr.bf16.mxu1 %v6068_v41  ;;  %1490 = vmatprep.mubr.bf16.mxu0 %v6068_v41 }
 0x3fe   : > { %2019 = vmatpush1.bf16.msra.mxu1 %v5477_v27 }
 0x3ff   : > { %2020 = vmatprep.subr.bf16.mxu1 %v5482_v28 }
 0x402   : > { %2021 = vmatpush1.bf16.msra.mxu1 %v5480_v29 }
 0x403   : > { %2022 = vmatprep.subr.bf16.mxu1 %v5485_v30 }
 0x404   : > { %1378 = vmatmul.mubr.bf16.gmra.mrb[36].mxu1 %v1111_v13  ;;  %1491 = vmatmul.mubr.bf16.gmra.mrb[52].mxu0 %v1111_v13 }
 0x405   : > { %1387 = vmatprep.mubr.bf16.mxu1 %v6068_v41  ;;  %1500 = vmatprep.mubr.bf16.mxu0 %v6068_v41 }
 0x406   : > { %2023 = vmatpush1.bf16.msra.mxu1 %v5483_v46 }
 0x407   : > { %2024 = vmatprep.subr.bf16.mxu1 %v5488_v47 }
 0x40a   : > { %2025 = vmatpush1.bf16.msra.mxu1 %v5486_v48 }
 0x40b   : > { %2026 = vmatprep.subr.bf16.mxu1 %v5491_v22 }
 0x40c   : > { %1388 = vmatmul.mubr.bf16.gmra.mrb[40].mxu1 %v1112_v18  ;;  %1501 = vmatmul.mubr.bf16.gmra.mrb[56].mxu0 %v1112_v18 }
 0x40d   : > { %1397 = vmatprep.mubr.bf16.mxu1 %v6068_v41  ;;  %1510 = vmatprep.mubr.bf16.mxu0 %v6068_v41 }
 0x40e   : > { %2027 = vmatpush1.bf16.msra.mxu1 %v5489_v49 }
 0x40f   : > { %2028 = vmatprep.subr.bf16.mxu1 %v5494_v50 }
 0x412   : > { %2029 = vmatpush1.bf16.msra.mxu1 %v5492_v51  ;;  %v5504_v51 = vld [vmem:[#allocation5 + $0x110] ss:$8 sps:$4 sm:$0xff]  }
 0x413   : > { %2030 = vmatprep.subr.bf16.mxu1 %v5497_v31 }
 0x414   : > { %1398 = vmatmul.mubr.bf16.gmra.mrb[44].mxu1 %v1113_v24  ;;  %1511 = vmatmul.mubr.bf16.gmra.mrb[60].mxu0 %v1113_v24 }
 0x416   : > { %2031 = vmatpush1.bf16.msra.mxu1 %v5495_v32 }
 0x417   : > { %2032 = vmatprep.subr.bf16.mxu1 %v5500_v33 }
 0x41a   : > { %2033 = vmatpush1.bf16.msra.mxu1 %v5498_v34 }
 0x41b   : > { %2115 = vmatprep.subr.bf16.mxu1 %v5503_v35  ;;  %v5509_v35 = vld [vmem:[#allocation5 + $0x124] ss:$8 sps:$4 sm:$0xff]  }
 0x4af   : > { %v1329_v45 = vpop.f32.mrb[16].mxu1  ;;  %v1442_v55 = vpop.f32.mrb[32].mxu0 }
 0x4b0   : > { %v1330_v56 = vadd.f32 %v1329_v45, %v6632_v43  ;;  %v1443_v57 = vadd.f32 %v1442_v55, %v6636_v44  ;;  %v1331_v58 = vpop.f32.mrb[17].mxu1  ;;  %v1444_v59 = vpop.f32.mrb[33].mxu0 }
 0x4b1   : > { %v1332_v60 = vadd.f32 %v1331_v58, %v6639_v53  ;;  %v1445_v61 = vadd.f32 %v1444_v59, %v6641_v54  ;;  %v1333_v62 = vpop.f32.mrb[18].mxu1  ;;  %v1446_v63 = vpop.f32.mrb[34].mxu0 }
 0x4b2   : > { %v1334_v0 = vadd.f32 %v1333_v62, %v6632_v43  ;;  %v1447_v1 = vadd.f32 %v1446_v63, %v6636_v44  ;;  %v1335_v2 = vpop.f32.mrb[19].mxu1  ;;  %v1448_v3 = vpop.f32.mrb[35].mxu0  ;;  %v1521_v6 = vmax.f32 %v1330_v56, 0.0  ;;  %v1523_v7 = vmax.f32 %v1443_v57, 0.0 }
 0x4b3   : > { %v1336_v4 = vadd.f32 %v1335_v2, %v6639_v53  ;;  %v1449_v5 = vadd.f32 %v1448_v3, %v6641_v54  ;;  %v1522_v10 = vmax.f32 %v1332_v60, 0.0  ;;  %v1524_v11 = vmax.f32 %v1445_v61, 0.0  ;;  %v5507_v61 = vld [vmem:[#allocation5 + $0x120] ss:$8 sps:$4 sm:$0xff]   ;;  %v5512_v2 = vld [vmem:[#allocation5 + $0x134] ss:$8 sps:$4 sm:$0xff]  }
 0x4b4   : > { %v1525_v8 = vmax.f32 %v1334_v0, 0.0  ;;  %v1527_v9 = vmax.f32 %v1447_v1, 0.0 }
 0x4b5   : > { %v1526_v12 = vmax.f32 %v1336_v4, 0.0  ;;  %v1528_v13 = vmax.f32 %v1449_v5, 0.0 }
 0x4b6   : > { %v1650_v14 = vpack.c.bf16 %v1525_v8, %v1521_v6  ;;  %v6651_v15 = vpack.c.bf16 %v1527_v9, %v1523_v7 }
 0x4b7   : > { %v1651_v16 = vpack.c.bf16 %v1526_v12, %v1522_v10  ;;  %v6653_v17 = vpack.c.bf16 %v1528_v13, %v1524_v11  ;;  %v1339_v18 = vpop.f32.mrb[20].mxu1  ;;  %v1452_v19 = vpop.f32.mrb[36].mxu0  ;;  %v5510_v13 = vld [vmem:[#allocation5 + $0x130] ss:$8 sps:$4 sm:$0xff]  }
 0x4b8   : > { %v1340_v21 = vadd.f32 %v1339_v18, %v6632_v43  ;;  %v1453_v23 = vadd.f32 %v1452_v19, %v6636_v44  ;;  %v1341_v24 = vpop.f32.mrb[21].mxu1  ;;  %v1454_v25 = vpop.f32.mrb[37].mxu0 }
 0x4b9   : > { %v1342_v27 = vadd.f32 %v1341_v24, %v6639_v53  ;;  %v1455_v28 = vadd.f32 %v1454_v25, %v6641_v54  ;;  %v1343_v29 = vpop.f32.mrb[22].mxu1  ;;  %v1456_v30 = vpop.f32.mrb[38].mxu0  ;;  %2034 = vmatprep.mubr.bf16.mxu1 %v1651_v16 }
 0x4ba   : > { %v1344_v46 = vadd.f32 %v1343_v29, %v6632_v43  ;;  %v1457_v47 = vadd.f32 %v1456_v30, %v6636_v44  ;;  %v1345_v48 = vpop.f32.mrb[23].mxu1  ;;  %v1458_v22 = vpop.f32.mrb[39].mxu0  ;;  %2035 = vmatmul.mubr.bf16.vlgmr.msra.gmra.mrb[48].mxu1 %v1650_v14  ;;  %v1529_v31 = vmax.f32 %v1340_v21, 0.0  ;;  %v1531_v32 = vmax.f32 %v1453_v23, 0.0 }
 0x4bb   : > { %v1346_v49 = vadd.f32 %v1345_v48, %v6639_v53  ;;  %v1459_v50 = vadd.f32 %v1458_v22, %v6641_v54  ;;  %2116 = vmatpush1.bf16.msra.mxu1 %v5501_v20  ;;  %v1530_v36 = vmax.f32 %v1342_v27, 0.0  ;;  %v1532_v40 = vmax.f32 %v1455_v28, 0.0  ;;  %v5515_v20 = vld [vmem:[#allocation5 + $0x144] ss:$8 sps:$4 sm:$0xff]  }
 0x4bc   : > { %v1533_v33 = vmax.f32 %v1344_v46, 0.0  ;;  %v1535_v34 = vmax.f32 %v1457_v47, 0.0  ;;  %2117 = vmatprep.subr.bf16.mxu1 %v5506_v26  ;;  %v5513_v47 = vld [vmem:[#allocation5 + $0x140] ss:$8 sps:$4 sm:$0xff]  }
 0x4bd   : > { %v1534_v42 = vmax.f32 %v1346_v49, 0.0  ;;  %v1536_v45 = vmax.f32 %v1459_v50, 0.0 }
 0x4be   : > { %v1654_v55 = vpack.c.bf16 %v1533_v33, %v1529_v31  ;;  %v6663_v56 = vpack.c.bf16 %v1535_v34, %v1531_v32 }
 0x4bf   : > { %v1655_v57 = vpack.c.bf16 %v1534_v42, %v1530_v36  ;;  %v6665_v58 = vpack.c.bf16 %v1536_v45, %v1532_v40  ;;  %v1349_v59 = vpop.f32.mrb[24].mxu1  ;;  %v1462_v60 = vpop.f32.mrb[40].mxu0  ;;  %2118 = vmatpush1.bf16.msra.mxu1 %v5504_v51  ;;  %v5518_v51 = vld [vmem:[#allocation5 + $0x154] ss:$8 sps:$4 sm:$0xff]  }
 0x4c0   : > { %v1350_v62 = vadd.f32 %v1349_v59, %v6632_v43  ;;  %v1463_v63 = vadd.f32 %v1462_v60, %v6636_v44  ;;  %v1351_v0 = vpop.f32.mrb[25].mxu1  ;;  %v1464_v1 = vpop.f32.mrb[41].mxu0  ;;  %2119 = vmatprep.subr.bf16.mxu1 %v5509_v35 }
 0x4c1   : > { %v1352_v3 = vadd.f32 %v1351_v0, %v6639_v53  ;;  %v1465_v4 = vadd.f32 %v1464_v1, %v6641_v54  ;;  %v1353_v5 = vpop.f32.mrb[26].mxu1  ;;  %v1466_v6 = vpop.f32.mrb[42].mxu0  ;;  %2044 = vmatprep.mubr.bf16.mxu1 %v1655_v57  ;;  %v5516_v57 = vld [vmem:[#allocation5 + $0x150] ss:$8 sps:$4 sm:$0xff]  }
 0x4c2   : > { %v1354_v7 = vadd.f32 %v1353_v5, %v6632_v43  ;;  %v1467_v8 = vadd.f32 %v1466_v6, %v6636_v44  ;;  %v1355_v9 = vpop.f32.mrb[27].mxu1  ;;  %v1468_v10 = vpop.f32.mrb[43].mxu0  ;;  %2045 = vmatmul.mubr.bf16.gmra.mrb[52].mxu1 %v1654_v55  ;;  %v1537_v14 = vmax.f32 %v1350_v62, 0.0  ;;  %v1539_v16 = vmax.f32 %v1463_v63, 0.0  ;;  %v5521_v63 = vld [vmem:[#allocation5 + $0x164] ss:$8 sps:$4 sm:$0xff]  }
 0x4c3   : > { %v1356_v11 = vadd.f32 %v1355_v9, %v6639_v53  ;;  %v1469_v12 = vadd.f32 %v1468_v10, %v6641_v54  ;;  %2120 = vmatpush1.bf16.msra.mxu1 %v5507_v61  ;;  %v1538_v21 = vmax.f32 %v1352_v3, 0.0  ;;  %v1540_v23 = vmax.f32 %v1465_v4, 0.0  ;;  %v5519_v10 = vld [vmem:[#allocation5 + $0x160] ss:$8 sps:$4 sm:$0xff]  }
 0x4c4   : > { %v1541_v18 = vmax.f32 %v1354_v7, 0.0  ;;  %v1543_v19 = vmax.f32 %v1467_v8, 0.0  ;;  %2121 = vmatprep.subr.bf16.mxu1 %v5512_v2 }
 0x4c5   : > { %v1542_v24 = vmax.f32 %v1356_v11, 0.0  ;;  %v1544_v25 = vmax.f32 %v1469_v12, 0.0 }
 0x4c6   : > { %v1658_v26 = vpack.c.bf16 %v1541_v18, %v1537_v14  ;;  %v6675_v27 = vpack.c.bf16 %v1543_v19, %v1539_v16  ;;  %v5524_v16 = vld [vmem:[#allocation5 + $0x174] ss:$8 sps:$4 sm:$0xff]  }
 0x4c7   : > { %v1659_v28 = vpack.c.bf16 %v1542_v24, %v1538_v21  ;;  %v6677_v29 = vpack.c.bf16 %v1544_v25, %v1540_v23  ;;  %v1359_v30 = vpop.f32.mrb[28].mxu1  ;;  %v1472_v46 = vpop.f32.mrb[44].mxu0  ;;  %2122 = vmatpush1.bf16.msra.mxu1 %v5510_v13 }
 0x4c8   : > { %v1360_v48 = vadd.f32 %v1359_v30, %v6632_v43  ;;  %v1473_v22 = vadd.f32 %v1472_v46, %v6636_v44  ;;  %v1361_v49 = vpop.f32.mrb[29].mxu1  ;;  %v1474_v50 = vpop.f32.mrb[45].mxu0  ;;  %2123 = vmatprep.subr.bf16.mxu1 %v5515_v20  ;;  %v5522_v46 = vld [vmem:[#allocation5 + $0x170] ss:$8 sps:$4 sm:$0xff]  }
 0x4c9   : > { %v1362_v31 = vadd.f32 %v1361_v49, %v6639_v53  ;;  %v1475_v32 = vadd.f32 %v1474_v50, %v6641_v54  ;;  %v1363_v33 = vpop.f32.mrb[30].mxu1  ;;  %v1476_v34 = vpop.f32.mrb[46].mxu0  ;;  %2054 = vmatprep.mubr.bf16.mxu1 %v1659_v28  ;;  %v5527_v50 = vld [vmem:[#allocation5 + $0x184] ss:$8 sps:$4 sm:$0xff]  }
 0x4ca   : > { %v1364_v35 = vadd.f32 %v1363_v33, %v6632_v43  ;;  %v1477_v36 = vadd.f32 %v1476_v34, %v6636_v44  ;;  %v1365_v40 = vpop.f32.mrb[31].mxu1  ;;  %v1478_v42 = vpop.f32.mrb[47].mxu0  ;;  %2055 = vmatmul.mubr.bf16.gmra.mrb[56].mxu1 %v1658_v26  ;;  %v1545_v59 = vmax.f32 %v1360_v48, 0.0  ;;  %v1547_v60 = vmax.f32 %v1473_v22, 0.0 }
 0x4cb   : > { %v1366_v45 = vadd.f32 %v1365_v40, %v6639_v53  ;;  %v1479_v55 = vadd.f32 %v1478_v42, %v6641_v54  ;;  %2124 = vmatpush1.bf16.msra.mxu1 %v5513_v47  ;;  %v1546_v0 = vmax.f32 %v1362_v31, 0.0  ;;  %v1548_v1 = vmax.f32 %v1475_v32, 0.0 }
 0x4cc   : > { %v1549_v61 = vmax.f32 %v1364_v35, 0.0  ;;  %v1551_v62 = vmax.f32 %v1477_v36, 0.0  ;;  %2125 = vmatprep.subr.bf16.mxu1 %v5518_v51 }
 0x4cd   : > { %v1550_v2 = vmax.f32 %v1366_v45, 0.0  ;;  %v1552_v3 = vmax.f32 %v1479_v55, 0.0  ;;  %v5525_v55 = vld [vmem:[#allocation5 + $0x180] ss:$8 sps:$4 sm:$0xff]  }
 0x4ce   : > { %v1662_v4 = vpack.c.bf16 %v1549_v61, %v1545_v59  ;;  %v6687_v5 = vpack.c.bf16 %v1551_v62, %v1547_v60  ;;  %v5530_v62 = vld [vmem:[#allocation5 + $0x194] ss:$8 sps:$4 sm:$0xff]  }
 0x4cf   : > { %v1663_v6 = vpack.c.bf16 %v1550_v2, %v1546_v0  ;;  %v6689_v7 = vpack.c.bf16 %v1552_v3, %v1548_v1  ;;  %v1369_v8 = vpop.f32.mrb[32].mxu1  ;;  %v1482_v9 = vpop.f32.mrb[48].mxu0  ;;  %2126 = vmatpush1.bf16.msra.mxu1 %v5516_v57 }
 0x4d0   : > { %v1370_v11 = vadd.f32 %v1369_v8, %v6632_v43  ;;  %v1483_v12 = vadd.f32 %v1482_v9, %v6636_v44  ;;  %v1371_v13 = vpop.f32.mrb[33].mxu1  ;;  %v1484_v14 = vpop.f32.mrb[49].mxu0  ;;  %2127 = vmatprep.subr.bf16.mxu1 %v5521_v63 }
 0x4d1   : > { %v1372_v18 = vadd.f32 %v1371_v13, %v6639_v53  ;;  %v1485_v19 = vadd.f32 %v1484_v14, %v6641_v54  ;;  %v1373_v20 = vpop.f32.mrb[34].mxu1  ;;  %v1486_v21 = vpop.f32.mrb[50].mxu0  ;;  %2064 = vmatprep.mubr.bf16.mxu1 %v1663_v6 }
 0x4d2   : > { %v1374_v23 = vadd.f32 %v1373_v20, %v6632_v43  ;;  %v1487_v24 = vadd.f32 %v1486_v21, %v6636_v44  ;;  %v1375_v25 = vpop.f32.mrb[35].mxu1  ;;  %v1488_v26 = vpop.f32.mrb[51].mxu0  ;;  %2065 = vmatmul.mubr.bf16.gmra.mrb[60].mxu1 %v1662_v4  ;;  %v1553_v47 = vmax.f32 %v1370_v11, 0.0  ;;  %v1555_v48 = vmax.f32 %v1483_v12, 0.0  ;;  %v5528_v11 = vld [vmem:[#allocation5 + $0x190] ss:$8 sps:$4 sm:$0xff]  }
 0x4d3   : > { %v1376_v28 = vadd.f32 %v1375_v25, %v6639_v53  ;;  %v1489_v30 = vadd.f32 %v1488_v26, %v6641_v54  ;;  %2128 = vmatpush1.bf16.msra.mxu1 %v5519_v10  ;;  %v1554_v51 = vmax.f32 %v1372_v18, 0.0  ;;  %v1556_v31 = vmax.f32 %v1485_v19, 0.0  ;;  %v5533_v18 = vld [vmem:[#allocation5 + $0x1a4] ss:$8 sps:$4 sm:$0xff]  }
 0x4d4   : > { %v1557_v22 = vmax.f32 %v1374_v23, 0.0  ;;  %v1559_v49 = vmax.f32 %v1487_v24, 0.0  ;;  %2129 = vmatprep.subr.bf16.mxu1 %v5524_v16 }
 0x4d5   : > { %v1558_v32 = vmax.f32 %v1376_v28, 0.0  ;;  %v1560_v33 = vmax.f32 %v1489_v30, 0.0 }
 0x4d6   : > { %v1666_v34 = vpack.c.bf16 %v1557_v22, %v1553_v47  ;;  %v6699_v35 = vpack.c.bf16 %v1559_v49, %v1555_v48  ;;  %v5531_v47 = vld [vmem:[#allocation5 + $0x1a0] ss:$8 sps:$4 sm:$0xff]  }
 0x4d7   : > { %v1667_v36 = vpack.c.bf16 %v1558_v32, %v1554_v51  ;;  %v6701_v40 = vpack.c.bf16 %v1560_v33, %v1556_v31  ;;  %v1379_v42 = vpop.f32.mrb[36].mxu1  ;;  %v1492_v45 = vpop.f32.mrb[52].mxu0  ;;  %2130 = vmatpush1.bf16.msra.mxu1 %v5522_v46  ;;  %v5536_v51 = vld [vmem:[#allocation5 + $0x1b4] ss:$8 sps:$4 sm:$0xff]  }
 0x4d8   : > { %v1380_v57 = vadd.f32 %v1379_v42, %v6632_v43  ;;  %v1493_v59 = vadd.f32 %v1492_v45, %v6636_v44  ;;  %v1381_v60 = vpop.f32.mrb[37].mxu1  ;;  %v1494_v61 = vpop.f32.mrb[53].mxu0  ;;  %2131 = vmatprep.subr.bf16.mxu1 %v5527_v50 }
 0x4d9   : > { %v1382_v63 = vadd.f32 %v1381_v60, %v6639_v53  ;;  %v1495_v0 = vadd.f32 %v1494_v61, %v6641_v54  ;;  %v1383_v1 = vpop.f32.mrb[38].mxu1  ;;  %v1496_v2 = vpop.f32.mrb[54].mxu0  ;;  %2074 = vmatprep.mubr.bf16.mxu1 %v1667_v36  ;;  %v5534_v60 = vld [vmem:[#allocation5 + $0x1b0] ss:$8 sps:$4 sm:$0xff]  }
 0x4da   : > { %v1384_v3 = vadd.f32 %v1383_v1, %v6632_v43  ;;  %v1497_v4 = vadd.f32 %v1496_v2, %v6636_v44  ;;  %v1385_v6 = vpop.f32.mrb[39].mxu1  ;;  %v1498_v8 = vpop.f32.mrb[55].mxu0  ;;  %2075 = vmatmul.mubr.bf16.gmra.mrb[64].mxu1 %v1666_v34  ;;  %v1561_v12 = vmax.f32 %v1380_v57, 0.0  ;;  %v1563_v13 = vmax.f32 %v1493_v59, 0.0  ;;  %v5539_v1 = vld [vmem:[#allocation5 + $0x1c4] ss:$8 sps:$4 sm:$0xff]  }
 0x4db   : > { %v1386_v9 = vadd.f32 %v1385_v6, %v6639_v53  ;;  %v1499_v10 = vadd.f32 %v1498_v8, %v6641_v54  ;;  %2132 = vmatpush1.bf16.msra.mxu1 %v5525_v55  ;;  %v1562_v19 = vmax.f32 %v1382_v63, 0.0  ;;  %v1564_v20 = vmax.f32 %v1495_v0, 0.0 }
 0x4dc   : > { %v1565_v14 = vmax.f32 %v1384_v3, 0.0  ;;  %v1567_v16 = vmax.f32 %v1497_v4, 0.0  ;;  %2133 = vmatprep.subr.bf16.mxu1 %v5530_v62 }
 0x4dd   : > { %v1566_v21 = vmax.f32 %v1386_v9, 0.0  ;;  %v1568_v23 = vmax.f32 %v1499_v10, 0.0 }
 0x4de   : > { %v1670_v24 = vpack.c.bf16 %v1565_v14, %v1561_v12  ;;  %v6711_v25 = vpack.c.bf16 %v1567_v16, %v1563_v13  ;;  %v5537_v14 = vld [vmem:[#allocation5 + $0x1c0] ss:$8 sps:$4 sm:$0xff]  }
 0x4df   : > { %v1671_v26 = vpack.c.bf16 %v1566_v21, %v1562_v19  ;;  %v6713_v28 = vpack.c.bf16 %v1568_v23, %v1564_v20  ;;  %v1389_v30 = vpop.f32.mrb[40].mxu1  ;;  %v1502_v46 = vpop.f32.mrb[56].mxu0  ;;  %2134 = vmatpush1.bf16.msra.mxu1 %v5528_v11  ;;  %v5542_v21 = vld [vmem:[#allocation5 + $0x1d4] ss:$8 sps:$4 sm:$0xff]  }
 0x4e0   : > { %v1390_v48 = vadd.f32 %v1389_v30, %v6632_v43  ;;  %v1503_v22 = vadd.f32 %v1502_v46, %v6636_v44  ;;  %v1391_v49 = vpop.f32.mrb[41].mxu1  ;;  %v1504_v50 = vpop.f32.mrb[57].mxu0  ;;  %2135 = vmatprep.subr.bf16.mxu1 %v5533_v18 }
 0x4e1   : > { %v1392_v31 = vadd.f32 %v1391_v49, %v6639_v53  ;;  %v1505_v32 = vadd.f32 %v1504_v50, %v6641_v54  ;;  %v1393_v33 = vpop.f32.mrb[42].mxu1  ;;  %v1506_v34 = vpop.f32.mrb[58].mxu0  ;;  %2084 = vmatprep.mubr.bf16.mxu1 %v1671_v26 }
 0x4e2   : > { %v1394_v36 = vadd.f32 %v1393_v33, %v6632_v43  ;;  %v1507_v42 = vadd.f32 %v1506_v34, %v6636_v44  ;;  %v1395_v45 = vpop.f32.mrb[43].mxu1  ;;  %v1508_v55 = vpop.f32.mrb[59].mxu0  ;;  %2085 = vmatmul.mubr.bf16.gmra.mrb[68].mxu1 %v1670_v24  ;;  %v1569_v61 = vmax.f32 %v1390_v48, 0.0  ;;  %v1571_v62 = vmax.f32 %v1503_v22, 0.0 }
 0x4e3   : > { %v1396_v57 = vadd.f32 %v1395_v45, %v6639_v53  ;;  %v1509_v59 = vadd.f32 %v1508_v55, %v6641_v54  ;;  %2136 = vmatpush1.bf16.msra.mxu1 %v5531_v47  ;;  %v1570_v2 = vmax.f32 %v1392_v31, 0.0  ;;  %v1572_v3 = vmax.f32 %v1505_v32, 0.0 }
 0x4e4   : > { %v1573_v63 = vmax.f32 %v1394_v36, 0.0  ;;  %v1575_v0 = vmax.f32 %v1507_v42, 0.0  ;;  %2137 = vmatprep.subr.bf16.mxu1 %v5536_v51  ;;  %v5540_v51 = vld [vmem:[#allocation5 + $0x1d0] ss:$8 sps:$4 sm:$0xff]   ;;  %v5545_v36 = vld [vmem:[#allocation5 + $0x1e4] ss:$8 sps:$4 sm:$0xff]  }
 0x4e5   : > { %v1574_v4 = vmax.f32 %v1396_v57, 0.0  ;;  %v1576_v6 = vmax.f32 %v1509_v59, 0.0 }
 0x4e6   : > { %v1674_v8 = vpack.c.bf16 %v1573_v63, %v1569_v61  ;;  %v6723_v9 = vpack.c.bf16 %v1575_v0, %v1571_v62  ;;  %v5546_v61 = vld [vmem:[#allocation5 + $0x1f0] ss:$8 sps:$4 sm:$0xff]  }
 0x4e7   : > { %v1675_v10 = vpack.c.bf16 %v1574_v4, %v1570_v2  ;;  %v1677_v11 = vpack.c.bf16 %v1576_v6, %v1572_v3  ;;  %v1399_v12 = vpop.f32.mrb[44].mxu1  ;;  %v1512_v13 = vpop.f32.mrb[60].mxu0  ;;  %2138 = vmatpush1.bf16.msra.mxu1 %v5534_v60 }
 0x4e8   : > { %v1400_v16 = vadd.f32 %v1399_v12, %v6632_v43  ;;  %v1513_v18 = vadd.f32 %v1512_v13, %v6636_v44  ;;  %v1401_v19 = vpop.f32.mrb[45].mxu1  ;;  %v1514_v20 = vpop.f32.mrb[61].mxu0  ;;  %2139 = vmatprep.subr.bf16.mxu1 %v5539_v1 }
 0x4e9   : > { %v1402_v23 = vadd.f32 %v1401_v19, %v6639_v53  ;;  %v1515_v24 = vadd.f32 %v1514_v20, %v6641_v54  ;;  %v1403_v26 = vpop.f32.mrb[46].mxu1  ;;  %v1516_v30 = vpop.f32.mrb[62].mxu0  ;;  %2094 = vmatprep.mubr.bf16.mxu1 %v1675_v10 }
 0x4ea   : > { %v1404_v46 = vadd.f32 %v1403_v26, %v6632_v43  ;;  %v1517_v47 = vadd.f32 %v1516_v30, %v6636_v44  ;;  %v1405_v48 = vpop.f32.mrb[47].mxu1  ;;  %v1518_v22 = vpop.f32.mrb[63].mxu0  ;;  %2095 = vmatmul.mubr.bf16.gmra.mrb[72].mxu1 %v1674_v8  ;;  %v1577_v31 = vmax.f32 %v1400_v16, 0.0  ;;  %v1579_v32 = vmax.f32 %v1513_v18, 0.0 }
 0x4eb   : > { %v1406_v49 = vadd.f32 %v1405_v48, %v6639_v53  ;;  %v1519_v50 = vadd.f32 %v1518_v22, %v6641_v54  ;;  %2140 = vmatpush1.bf16.msra.mxu1 %v5537_v14  ;;  %v1578_v42 = vmax.f32 %v1402_v23, 0.0  ;;  %v1580_v45 = vmax.f32 %v1515_v24, 0.0  ;;  %v5543_v53 = vld [vmem:[#allocation5 + $0x1e0] ss:$8 sps:$4 sm:$0xff]   ;;  %v5548_v54 = vld [vmem:[#allocation5 + $0x1f4] ss:$8 sps:$4 sm:$0xff]  }
 0x4ec   : > { %v1581_v33 = vmax.f32 %v1404_v46, 0.0  ;;  %v1583_v34 = vmax.f32 %v1517_v47, 0.0  ;;  %2141 = vmatprep.subr.bf16.mxu1 %v5542_v21 }
 0x4ed   : > { %v1582_v43 = vmax.f32 %v1406_v49, 0.0  ;;  %v1584_v55 = vmax.f32 %v1519_v50, 0.0 }
 0x4ee   : > { %v1678_v44 = vpack.c.bf16 %v1581_v33, %v1577_v31  ;;  %v1680_v57 = vpack.c.bf16 %v1583_v34, %v1579_v32 }
 0x4ef   : > { %v1679_v59 = vpack.c.bf16 %v1582_v43, %v1578_v42  ;;  %v1681_v60 = vpack.c.bf16 %v1584_v55, %v1580_v45  ;;  %2142 = vmatpush1.bf16.msra.mxu1 %v5540_v51  ;;  %v6748_v45 = vld [vmem:[%s6483_s12] sm:$0xff]  ;;  %v6753_v43 = vld [vmem:[%s6483_s12 + $0x8] sm:$0xff]  ;;  %v6758_v55 = vld [vmem:[%s6483_s12 + $0x10] sm:$0xff] }
 0x4f0   : > { %2143 = vmatprep.subr.bf16.mxu1 %v5545_v36 }
 0x4f1   : > { %2104 = vmatprep.mubr.bf16.mxu1 %v1679_v59  ;;  %v6773_v59 = vld [vmem:[%s6483_s12 + $0x28] sm:$0xff] }
 0x4f2   : > { %2105 = vmatmul.mubr.bf16.gmra.mrb[76].mxu1 %v1678_v44  ;;  %v6763_v44 = vld [vmem:[%s6483_s12 + $0x18] sm:$0xff] }
 0x4f3   : > { %2144 = vmatpush1.bf16.msra.mxu1 %v5543_v53  ;;  %2147 = vmatprep.mubr.bf16.mxu1 %v6653_v17  ;;  %v6783_v53 = vld [vmem:[%s6483_s12 + $0x38] sm:$0xff] }
 0x4f4   : > { %2145 = vmatprep.subr.bf16.mxu1 %v5548_v54  ;;  %v6788_v54 = vld [vmem:[%s6483_s12 + $0x40] sm:$0xff] }
 0x4f7   : > { %2146 = vmatpush1.bf16.msra.mxu1 %v5546_v61  ;;  %v6793_v61 = vld [vmem:[%s6483_s12 + $0x48] sm:$0xff] }
 0x4fa   : > { %2148 = vmatmul.mubr.bf16.vlgmr.msra.gmra.mrb[48].mxu1 %v6651_v15  ;;  %v6069_v15 = vmov 0.0  }
 0x4fb   : > { %2157 = vmatprep.mubr.bf16.mxu1 %v6665_v58  ;;  %2303 = vmatprep.mubr.f32.mxu0 %v6069_v15 }
 0x502   : > { %2158 = vmatmul.mubr.bf16.gmra.mrb[52].mxu1 %v6663_v56 }
 0x503   : > { %2167 = vmatprep.mubr.bf16.mxu1 %v6677_v29 }
 0x50a   : > { %2168 = vmatmul.mubr.bf16.gmra.mrb[56].mxu1 %v6675_v27 }
 0x50b   : > { %2177 = vmatprep.mubr.bf16.mxu1 %v6689_v7 }
 0x512   : > { %2178 = vmatmul.mubr.bf16.gmra.mrb[60].mxu1 %v6687_v5 }
 0x513   : > { %2187 = vmatprep.mubr.bf16.mxu1 %v6701_v40 }
 0x51a   : > { %2188 = vmatmul.mubr.bf16.gmra.mrb[64].mxu1 %v6699_v35 }
 0x51b   : > { %2197 = vmatprep.mubr.bf16.mxu1 %v6713_v28 }
 0x522   : > { %2198 = vmatmul.mubr.bf16.gmra.mrb[68].mxu1 %v6711_v25 }
 0x523   : > { %2207 = vmatprep.mubr.bf16.mxu1 %v1677_v11 }
 0x52a   : > { %2208 = vmatmul.mubr.bf16.gmra.mrb[72].mxu1 %v6723_v9 }
 0x52b   : > { %2217 = vmatprep.mubr.bf16.mxu1 %v1681_v60  ;;  %v6778_v60 = vld [vmem:[%s6483_s12 + $0x30] sm:$0xff] }
 0x532   : > { %2218 = vmatmul.mubr.bf16.gmra.mrb[76].mxu1 %v1680_v57  ;;  %v6768_v57 = vld [vmem:[%s6483_s12 + $0x20] sm:$0xff] }
 0x5cd   : > { %v2149_v17 = vpop.f32.mrb[48].mxu1 }
 0x5ce   : > { %v2151_v56 = vpop.f32.mrb[49].mxu1 }
 0x5cf   : > { %v2153_v58 = vpop.f32.mrb[50].mxu1 }
 0x5d0   : > { %v5131_v27 = vpack.c.bf16 %v2153_v58, %v2149_v17  ;;  %v2155_v29 = vpop.f32.mrb[51].mxu1  ;;  %v6798_v17 = vld [vmem:[%s6483_s12 + $0x50] sm:$0xff]  ;;  %v6808_v58 = vld [vmem:[%s6483_s12 + $0x60] sm:$0xff] }
 0x5d1   : > { %v5129_v5 = vpack.c.bf16 %v2155_v29, %v2151_v56  ;;  %v6803_v56 = vld [vmem:[%s6483_s12 + $0x58] sm:$0xff]  ;;  %v6818_v29 = vld [vmem:[%s6483_s12 + $0x70] sm:$0xff] }
 0x5d3   : > { %5130 = vmatprep.subr.bf16.mxu0 %v5129_v5  ;;  %v6823_v5 = vld [vmem:[%s6483_s12 + $0x78] sm:$0xff] }
 0x5d4   : > { %5132 = vmatpush1.bf16.msra.mxu0 %v5131_v27  ;;  %v6813_v27 = vld [vmem:[%s6483_s12 + $0x68] sm:$0xff] }
 0x5d5   : > { %v2159_v7 = vpop.f32.mrb[52].mxu1 }
 0x5d6   : > { %v2161_v35 = vpop.f32.mrb[53].mxu1 }
 0x5d7   : > { %v2163_v40 = vpop.f32.mrb[54].mxu1 }
 0x5d8   : > { %v5135_v25 = vpack.c.bf16 %v2163_v40, %v2159_v7  ;;  %v2165_v28 = vpop.f32.mrb[55].mxu1  ;;  %v1649_v7 = vld [vmem:[%s7096_s1 + $0x5] sm:$0x3] }
 0x5d9   : > { %v5133_v62 = vpack.c.bf16 %v2165_v28, %v2161_v35  ;;  %v6831_v35 = vrot.slane %v1649_v7, %v6621_v38 }
 0x5db   : > { %5134 = vmatprep.subr.bf16.mxu0 %v5133_v62 }
 0x5dc   : > { %5136 = vmatpush1.bf16.msra.mxu0 %v5135_v25  ;;  %v6834_v25 = vrot.slane %v1649_v7, %v6628_v52 }
 0x5dd   : > { %v2169_v63 = vpop.f32.mrb[56].mxu1 }
 0x5de   : > { %v2171_v0 = vpop.f32.mrb[57].mxu1 }
 0x5df   : > { %v2173_v1 = vpop.f32.mrb[58].mxu1 }
 0x5e0   : > { %v5139_v2 = vpack.c.bf16 %v2173_v1, %v2169_v63  ;;  %v2175_v3 = vpop.f32.mrb[59].mxu1  ;;  %v5549_v1 = vld [vmem:[#allocation5 + $0x200] ss:$8 sps:$4 sm:$0xff]  }
 0x5e1   : > { %v5137_v4 = vpack.c.bf16 %v2175_v3, %v2171_v0 }
 0x5e3   : > { %5138 = vmatprep.subr.bf16.mxu0 %v5137_v4 }
 0x5e4   : > { %5140 = vmatpush1.bf16.msra.mxu0 %v5139_v2  ;;  %v5551_v2 = vld [vmem:[#allocation5 + $0x204] ss:$8 sps:$4 sm:$0xff]  }
 0x5e5   : > { %v2179_v6 = vpop.f32.mrb[60].mxu1  ;;  %2813 = vmatprep.subr.bf16.mxu1 %v5551_v2 }
 0x5e6   : > { %v2181_v8 = vpop.f32.mrb[61].mxu1  ;;  %2814 = vmatpush1.bf16.msra.mxu1 %v5549_v1 }
 0x5e7   : > { %v2183_v9 = vpop.f32.mrb[62].mxu1 }
 0x5e8   : > { %v5143_v10 = vpack.c.bf16 %v2183_v9, %v2179_v6  ;;  %v2185_v11 = vpop.f32.mrb[63].mxu1  ;;  %v5554_v6 = vld [vmem:[#allocation5 + $0x214] ss:$8 sps:$4 sm:$0xff]  }
 0x5e9   : > { %v5141_v12 = vpack.c.bf16 %v2185_v11, %v2181_v8  ;;  %v5552_v11 = vld [vmem:[#allocation5 + $0x210] ss:$8 sps:$4 sm:$0xff]   ;;  %2815 = vmatprep.subr.bf16.mxu1 %v5554_v6 }
 0x5ea   : > { %2816 = vmatpush1.bf16.msra.mxu1 %v5552_v11  ;;  %v5564_v6 = vld [vmem:[#allocation5 + $0x250] ss:$8 sps:$4 sm:$0xff]   ;;  %v5569_v11 = vld [vmem:[#allocation5 + $0x264] ss:$8 sps:$4 sm:$0xff]  }
 0x5eb   : > { %5142 = vmatprep.subr.bf16.mxu0 %v5141_v12 }
 0x5ec   : > { %5144 = vmatpush1.bf16.msra.mxu0 %v5143_v10 }
 0x5ed   : > { %v2189_v13 = vpop.f32.mrb[64].mxu1 }
 0x5ee   : > { %v2191_v14 = vpop.f32.mrb[65].mxu1 }
 0x5ef   : > { %v2193_v16 = vpop.f32.mrb[66].mxu1 }
 0x5f0   : > { %v5147_v18 = vpack.c.bf16 %v2193_v16, %v2189_v13  ;;  %v2195_v19 = vpop.f32.mrb[67].mxu1  ;;  %v5557_v16 = vld [vmem:[#allocation5 + $0x224] ss:$8 sps:$4 sm:$0xff]  }
 0x5f1   : > { %v5145_v20 = vpack.c.bf16 %v2195_v19, %v2191_v14  ;;  %2817 = vmatprep.subr.bf16.mxu1 %v5557_v16 }
 0x5f3   : > { %5146 = vmatprep.subr.bf16.mxu0 %v5145_v20 }
 0x5f4   : > { %5148 = vmatpush1.bf16.msra.mxu0 %v5147_v18 }
 0x5f5   : > { %v2199_v21 = vpop.f32.mrb[68].mxu1 }
 0x5f6   : > { %v2201_v23 = vpop.f32.mrb[69].mxu1 }
 0x5f7   : > { %v2203_v24 = vpop.f32.mrb[70].mxu1 }
 0x5f8   : > { %v5151_v26 = vpack.c.bf16 %v2203_v24, %v2199_v21  ;;  %v2205_v30 = vpop.f32.mrb[71].mxu1 }
 0x5f9   : > { %v5149_v46 = vpack.c.bf16 %v2205_v30, %v2201_v23  ;;  %v5555_v23 = vld [vmem:[#allocation5 + $0x220] ss:$8 sps:$4 sm:$0xff]   ;;  %v5560_v30 = vld [vmem:[#allocation5 + $0x234] ss:$8 sps:$4 sm:$0xff]  }
 0x5fa   : > { %2818 = vmatpush1.bf16.msra.mxu1 %v5555_v23 }
 0x5fb   : > { %5150 = vmatprep.subr.bf16.mxu0 %v5149_v46  ;;  %2819 = vmatprep.subr.bf16.mxu1 %v5560_v30 }
 0x5fc   : > { %5152 = vmatpush1.bf16.msra.mxu0 %v5151_v26 }
 0x5fd   : > { %v2209_v47 = vpop.f32.mrb[72].mxu1 }
 0x5fe   : > { %v2211_v48 = vpop.f32.mrb[73].mxu1 }
 0x5ff   : > { %v2213_v22 = vpop.f32.mrb[74].mxu1 }
 0x600   : > { %v5155_v49 = vpack.c.bf16 %v2213_v22, %v2209_v47  ;;  %v2215_v50 = vpop.f32.mrb[75].mxu1 }
 0x601   : > { %v5153_v51 = vpack.c.bf16 %v2215_v50, %v2211_v48  ;;  %v5558_v50 = vld [vmem:[#allocation5 + $0x230] ss:$8 sps:$4 sm:$0xff]  }
 0x602   : > { %2820 = vmatpush1.bf16.msra.mxu1 %v5558_v50  ;;  %v5575_v50 = vld [vmem:[#allocation5 + $0x284] ss:$8 sps:$4 sm:$0xff]  }
 0x603   : > { %5154 = vmatprep.subr.bf16.mxu0 %v5153_v51 }
 0x604   : > { %5156 = vmatpush1.bf16.msra.mxu0 %v5155_v49 }
 0x605   : > { %v2219_v31 = vpop.f32.mrb[76].mxu1 }
 0x606   : > { %v2221_v32 = vpop.f32.mrb[77].mxu1 }
 0x607   : > { %v2223_v33 = vpop.f32.mrb[78].mxu1 }
 0x608   : > { %v5159_v34 = vpack.c.bf16 %v2223_v33, %v2219_v31  ;;  %v2225_v36 = vpop.f32.mrb[79].mxu1  ;;  %v5563_v33 = vld [vmem:[#allocation5 + $0x244] ss:$8 sps:$4 sm:$0xff]  }
 0x609   : > { %v5157_v42 = vpack.c.bf16 %v2225_v36, %v2221_v32  ;;  %2821 = vmatprep.subr.bf16.mxu1 %v5563_v33 }
 0x60b   : > { %5158 = vmatprep.subr.bf16.mxu0 %v5157_v42 }
 0x60c   : > { %5160 = vmatpush1.bf16.msra.mxu0 %v5159_v34 }
 0x60f   : > { %2304 = vmatmul.mubr.f32.vlgmr.msra.gmra.mrb[64].mxu0 %v6748_v45 }
 0x610   : > { %2309 = vmatprep.mubr.f32.mxu0 %v6069_v15 }
 0x613   : > { %2310 = vmatmul.mubr.f32.gmra.mrb[66].mxu0 %v6753_v43 }
 0x614   : > { %2315 = vmatprep.mubr.f32.mxu0 %v6069_v15 }
 0x617   : > { %2316 = vmatmul.mubr.f32.gmra.mrb[68].mxu0 %v6758_v55 }
 0x618   : > { %2321 = vmatprep.mubr.f32.mxu0 %v6069_v15 }
 0x61b   : > { %2322 = vmatmul.mubr.f32.gmra.mrb[70].mxu0 %v6763_v44 }
 0x61c   : > { %2327 = vmatprep.mubr.f32.mxu0 %v6069_v15 }
 0x61f   : > { %2328 = vmatmul.mubr.f32.gmra.mrb[72].mxu0 %v6768_v57 }
 0x620   : > { %2333 = vmatprep.mubr.f32.mxu0 %v6069_v15 }
 0x623   : > { %2334 = vmatmul.mubr.f32.gmra.mrb[74].mxu0 %v6773_v59 }
 0x624   : > { %2339 = vmatprep.mubr.f32.mxu0 %v6069_v15 }
 0x627   : > { %2340 = vmatmul.mubr.f32.gmra.mrb[76].mxu0 %v6778_v60 }
 0x628   : > { %2345 = vmatprep.mubr.f32.mxu0 %v6069_v15 }
 0x62b   : > { %2346 = vmatmul.mubr.f32.gmra.mrb[78].mxu0 %v6783_v53 }
 0x62c   : > { %2351 = vmatprep.mubr.f32.mxu0 %v6069_v15 }
 0x62f   : > { %2352 = vmatmul.mubr.f32.gmra.mrb[80].mxu0 %v6788_v54 }
 0x630   : > { %2357 = vmatprep.mubr.f32.mxu0 %v6069_v15 }
 0x633   : > { %2358 = vmatmul.mubr.f32.gmra.mrb[82].mxu0 %v6793_v61 }
 0x634   : > { %2363 = vmatprep.mubr.f32.mxu0 %v6069_v15 }
 0x637   : > { %2364 = vmatmul.mubr.f32.gmra.mrb[84].mxu0 %v6798_v17 }
 0x638   : > { %2369 = vmatprep.mubr.f32.mxu0 %v6069_v15 }
 0x63b   : > { %2370 = vmatmul.mubr.f32.gmra.mrb[86].mxu0 %v6803_v56 }
 0x63c   : > { %2375 = vmatprep.mubr.f32.mxu0 %v6069_v15 }
 0x63f   : > { %2376 = vmatmul.mubr.f32.gmra.mrb[88].mxu0 %v6808_v58 }
 0x640   : > { %2381 = vmatprep.mubr.f32.mxu0 %v6069_v15 }
 0x643   : > { %2382 = vmatmul.mubr.f32.gmra.mrb[90].mxu0 %v6813_v27 }
 0x644   : > { %2387 = vmatprep.mubr.f32.mxu0 %v6069_v15 }
 0x647   : > { %2388 = vmatmul.mubr.f32.gmra.mrb[92].mxu0 %v6818_v29 }
 0x648   : > { %2393 = vmatprep.mubr.f32.mxu0 %v6069_v15 }
 0x64b   : > { %2394 = vmatmul.mubr.f32.gmra.mrb[94].mxu0 %v6823_v5 }
 0x64c   : > { %2529 = vmatprep.mubr.f32.mxu0 %v6069_v15 }
 0x6e2   : > { %v2305_v40 = vpop.f32.mrb[64].mxu0 }
 0x6e3   : > { %v2307_v28 = vpop.f32.mrb[65].mxu0  ;;  %v2306_v62 = vadd.f32 %v2305_v40, %v6831_v35  ;;  %v5561_v40 = vld [vmem:[#allocation5 + $0x240] ss:$8 sps:$4 sm:$0xff]  }
 0x6e4   : > { %v2308_v63 = vadd.f32 %v2307_v28, %v6834_v25  ;;  %2822 = vmatpush1.bf16.msra.mxu1 %v5561_v40 }
 0x6e5   : > { %v2400_v9 = vmax.f32 %v2306_v62, 0.0 }
 0x6e6   : > { %v2311_v0 = vpop.f32.mrb[66].mxu0  ;;  %v2401_v12 = vmax.f32 %v2308_v63, 0.0  ;;  %v5566_v63 = vld [vmem:[#allocation5 + $0x254] ss:$8 sps:$4 sm:$0xff]  }
 0x6e7   : > { %v2312_v3 = vadd.f32 %v2311_v0, %v6831_v35  ;;  %v2313_v4 = vpop.f32.mrb[67].mxu0  ;;  %2823 = vmatprep.subr.bf16.mxu1 %v5566_v63 }
 0x6e8   : > { %v2314_v8 = vadd.f32 %v2313_v4, %v6834_v25  ;;  %2824 = vmatpush1.bf16.msra.mxu1 %v5564_v6  ;;  %v5581_v6 = vld [vmem:[#allocation5 + $0x2a4] ss:$8 sps:$4 sm:$0xff]  }
 0x6e9   : > { %v2402_v10 = vmax.f32 %v2312_v3, 0.0  ;;  %2825 = vmatprep.subr.bf16.mxu1 %v5569_v11 }
 0x6ea   : > { %v2403_v13 = vmax.f32 %v2314_v8, 0.0  ;;  %v2317_v14 = vpop.f32.mrb[68].mxu0 }
 0x6eb   : > { %v5163_v18 = vpack.c.bf16 %v2402_v10, %v2400_v9  ;;  %v2319_v19 = vpop.f32.mrb[69].mxu0  ;;  %v2318_v21 = vadd.f32 %v2317_v14, %v6831_v35 }
 0x6ec   : > { %v5161_v20 = vpack.c.bf16 %v2403_v13, %v2401_v12  ;;  %v2320_v24 = vadd.f32 %v2319_v19, %v6834_v25 }
 0x6ed   : > { %v2404_v22 = vmax.f32 %v2318_v21, 0.0  ;;  %v5572_v21 = vld [vmem:[#allocation5 + $0x274] ss:$8 sps:$4 sm:$0xff]  }
 0x6ee   : > { %v2323_v26 = vpop.f32.mrb[70].mxu0  ;;  %5162 = vmatprep.subr.bf16.mxu0 %v5161_v20  ;;  %v2405_v51 = vmax.f32 %v2320_v24, 0.0 }
 0x6ef   : > { %v2324_v46 = vadd.f32 %v2323_v26, %v6831_v35  ;;  %v2325_v47 = vpop.f32.mrb[71].mxu0  ;;  %5164 = vmatpush1.bf16.msra.mxu0 %v5163_v18  ;;  %v5567_v18 = vld [vmem:[#allocation5 + $0x260] ss:$8 sps:$4 sm:$0xff]  }
 0x6f0   : > { %v2326_v48 = vadd.f32 %v2325_v47, %v6834_v25  ;;  %2826 = vmatpush1.bf16.msra.mxu1 %v5567_v18  ;;  %v5570_v47 = vld [vmem:[#allocation5 + $0x270] ss:$8 sps:$4 sm:$0xff]  }
 0x6f1   : > { %v2406_v49 = vmax.f32 %v2324_v46, 0.0  ;;  %2827 = vmatprep.subr.bf16.mxu1 %v5572_v21 }
 0x6f2   : > { %v2407_v31 = vmax.f32 %v2326_v48, 0.0  ;;  %v2329_v32 = vpop.f32.mrb[72].mxu0 }
 0x6f3   : > { %v5167_v34 = vpack.c.bf16 %v2406_v49, %v2404_v22  ;;  %v2331_v36 = vpop.f32.mrb[73].mxu0  ;;  %v2330_v7 = vadd.f32 %v2329_v32, %v6831_v35 }
 0x6f4   : > { %v5165_v42 = vpack.c.bf16 %v2407_v31, %v2405_v51  ;;  %v2332_v28 = vadd.f32 %v2331_v36, %v6834_v25  ;;  %2828 = vmatpush1.bf16.msra.mxu1 %v5570_v47  ;;  %v5587_v47 = vld [vmem:[#allocation5 + $0x2c4] ss:$8 sps:$4 sm:$0xff]  }
 0x6f5   : > { %v2408_v3 = vmax.f32 %v2330_v7, 0.0  ;;  %2829 = vmatprep.subr.bf16.mxu1 %v5575_v50  ;;  %v5578_v7 = vld [vmem:[#allocation5 + $0x294] ss:$8 sps:$4 sm:$0xff]  }
 0x6f6   : > { %v2335_v62 = vpop.f32.mrb[74].mxu0  ;;  %5166 = vmatprep.subr.bf16.mxu0 %v5165_v42  ;;  %v2409_v8 = vmax.f32 %v2332_v28, 0.0 }
 0x6f7   : > { %v2336_v0 = vadd.f32 %v2335_v62, %v6831_v35  ;;  %v2337_v1 = vpop.f32.mrb[75].mxu0  ;;  %5168 = vmatpush1.bf16.msra.mxu0 %v5167_v34  ;;  %v5573_v34 = vld [vmem:[#allocation5 + $0x280] ss:$8 sps:$4 sm:$0xff]  }
 0x6f8   : > { %v2338_v2 = vadd.f32 %v2337_v1, %v6834_v25  ;;  %2830 = vmatpush1.bf16.msra.mxu1 %v5573_v34  ;;  %v5576_v1 = vld [vmem:[#allocation5 + $0x290] ss:$8 sps:$4 sm:$0xff]  }
 0x6f9   : > { %v2410_v4 = vmax.f32 %v2336_v0, 0.0  ;;  %2831 = vmatprep.subr.bf16.mxu1 %v5578_v7 }
 0x6fa   : > { %v2411_v9 = vmax.f32 %v2338_v2, 0.0  ;;  %v2341_v10 = vpop.f32.mrb[76].mxu0 }
 0x6fb   : > { %v5171_v12 = vpack.c.bf16 %v2410_v4, %v2408_v3  ;;  %v2343_v13 = vpop.f32.mrb[77].mxu0  ;;  %v2342_v16 = vadd.f32 %v2341_v10, %v6831_v35 }
 0x6fc   : > { %v5169_v14 = vpack.c.bf16 %v2411_v9, %v2409_v8  ;;  %v2344_v19 = vadd.f32 %v2343_v13, %v6834_v25  ;;  %2832 = vmatpush1.bf16.msra.mxu1 %v5576_v1 }
 0x6fd   : > { %v2412_v30 = vmax.f32 %v2342_v16, 0.0  ;;  %2833 = vmatprep.subr.bf16.mxu1 %v5581_v6  ;;  %v5584_v16 = vld [vmem:[#allocation5 + $0x2b4] ss:$8 sps:$4 sm:$0xff]  }
 0x6fe   : > { %v2347_v20 = vpop.f32.mrb[78].mxu0  ;;  %5170 = vmatprep.subr.bf16.mxu0 %v5169_v14  ;;  %v2413_v48 = vmax.f32 %v2344_v19, 0.0 }
 0x6ff   : > { %v2348_v23 = vadd.f32 %v2347_v20, %v6831_v35  ;;  %v2349_v24 = vpop.f32.mrb[79].mxu0  ;;  %5172 = vmatpush1.bf16.msra.mxu0 %v5171_v12  ;;  %v5579_v12 = vld [vmem:[#allocation5 + $0x2a0] ss:$8 sps:$4 sm:$0xff]  }
 0x700   : > { %v2350_v26 = vadd.f32 %v2349_v24, %v6834_v25  ;;  %2834 = vmatpush1.bf16.msra.mxu1 %v5579_v12  ;;  %v5582_v24 = vld [vmem:[#allocation5 + $0x2b0] ss:$8 sps:$4 sm:$0xff]  }
 0x701   : > { %v2414_v46 = vmax.f32 %v2348_v23, 0.0  ;;  %2835 = vmatprep.subr.bf16.mxu1 %v5584_v16 }
 0x702   : > { %v2415_v22 = vmax.f32 %v2350_v26, 0.0  ;;  %v2353_v49 = vpop.f32.mrb[80].mxu0 }
 0x703   : > { %v5175_v51 = vpack.c.bf16 %v2414_v46, %v2412_v30  ;;  %v2355_v31 = vpop.f32.mrb[81].mxu0  ;;  %v2354_v33 = vadd.f32 %v2353_v49, %v6831_v35 }
 0x704   : > { %v5173_v32 = vpack.c.bf16 %v2415_v22, %v2413_v48  ;;  %v2356_v36 = vadd.f32 %v2355_v31, %v6834_v25  ;;  %2836 = vmatpush1.bf16.msra.mxu1 %v5582_v24 }
 0x705   : > { %v2416_v63 = vmax.f32 %v2354_v33, 0.0  ;;  %2837 = vmatprep.subr.bf16.mxu1 %v5587_v47  ;;  %v5590_v33 = vld [vmem:[#allocation5 + $0x2d4] ss:$8 sps:$4 sm:$0xff]  }
 0x706   : > { %v2359_v42 = vpop.f32.mrb[82].mxu0  ;;  %5174 = vmatprep.subr.bf16.mxu0 %v5173_v32  ;;  %v2417_v2 = vmax.f32 %v2356_v36, 0.0 }
 0x707   : > { %v2360_v40 = vadd.f32 %v2359_v42, %v6831_v35  ;;  %v2361_v28 = vpop.f32.mrb[83].mxu0  ;;  %5176 = vmatpush1.bf16.msra.mxu0 %v5175_v51  ;;  %v5585_v51 = vld [vmem:[#allocation5 + $0x2c0] ss:$8 sps:$4 sm:$0xff]  }
 0x708   : > { %v2362_v62 = vadd.f32 %v2361_v28, %v6834_v25  ;;  %2838 = vmatpush1.bf16.msra.mxu1 %v5585_v51  ;;  %v5588_v28 = vld [vmem:[#allocation5 + $0x2d0] ss:$8 sps:$4 sm:$0xff]  }
 0x709   : > { %v2418_v0 = vmax.f32 %v2360_v40, 0.0  ;;  %2839 = vmatprep.subr.bf16.mxu1 %v5590_v33 }
 0x70a   : > { %v2419_v3 = vmax.f32 %v2362_v62, 0.0  ;;  %v2365_v4 = vpop.f32.mrb[84].mxu0 }
 0x70b   : > { %v5179_v8 = vpack.c.bf16 %v2418_v0, %v2416_v63  ;;  %v2367_v9 = vpop.f32.mrb[85].mxu0  ;;  %v2366_v11 = vadd.f32 %v2365_v4, %v6831_v35 }
 0x70c   : > { %v5177_v10 = vpack.c.bf16 %v2419_v3, %v2417_v2  ;;  %v2368_v13 = vadd.f32 %v2367_v9, %v6834_v25  ;;  %2840 = vmatpush1.bf16.msra.mxu1 %v5588_v28 }
 0x70d   : > { %v2420_v21 = vmax.f32 %v2366_v11, 0.0 }
 0x70e   : > { %v2371_v14 = vpop.f32.mrb[86].mxu0  ;;  %5178 = vmatprep.subr.bf16.mxu0 %v5177_v10  ;;  %v2421_v26 = vmax.f32 %v2368_v13, 0.0 }
 0x70f   : > { %v2372_v18 = vadd.f32 %v2371_v14, %v6831_v35  ;;  %v2373_v19 = vpop.f32.mrb[87].mxu0  ;;  %5180 = vmatpush1.bf16.msra.mxu0 %v5179_v8 }
 0x710   : > { %v2374_v20 = vadd.f32 %v2373_v19, %v6834_v25 }
 0x711   : > { %v2422_v23 = vmax.f32 %v2372_v18, 0.0 }
 0x712   : > { %v2423_v30 = vmax.f32 %v2374_v20, 0.0  ;;  %v2377_v46 = vpop.f32.mrb[88].mxu0 }
 0x713   : > { %v5183_v48 = vpack.c.bf16 %v2422_v23, %v2420_v21  ;;  %v2379_v22 = vpop.f32.mrb[89].mxu0  ;;  %v2378_v50 = vadd.f32 %v2377_v46, %v6831_v35 }
 0x714   : > { %v5181_v49 = vpack.c.bf16 %v2423_v30, %v2421_v26  ;;  %v2380_v31 = vadd.f32 %v2379_v22, %v6834_v25 }
 0x715   : > { %v2424_v7 = vmax.f32 %v2378_v50, 0.0 }
 0x716   : > { %v2383_v32 = vpop.f32.mrb[90].mxu0  ;;  %5182 = vmatprep.subr.bf16.mxu0 %v5181_v49  ;;  %v2425_v62 = vmax.f32 %v2380_v31, 0.0 }
 0x717   : > { %v2384_v34 = vadd.f32 %v2383_v32, %v6831_v35  ;;  %v2385_v36 = vpop.f32.mrb[91].mxu0  ;;  %5184 = vmatpush1.bf16.msra.mxu0 %v5183_v48 }
 0x718   : > { %v2386_v42 = vadd.f32 %v2385_v36, %v6834_v25 }
 0x719   : > { %v2426_v40 = vmax.f32 %v2384_v34, 0.0 }
 0x71a   : > { %v2427_v63 = vmax.f32 %v2386_v42, 0.0  ;;  %v2389_v0 = vpop.f32.mrb[92].mxu0 }
 0x71b   : > { %v5187_v1 = vpack.c.bf16 %v2426_v40, %v2424_v7  ;;  %v2391_v2 = vpop.f32.mrb[93].mxu0  ;;  %v2390_v4 = vadd.f32 %v2389_v0, %v6831_v35 }
 0x71c   : > { %v5185_v3 = vpack.c.bf16 %v2427_v63, %v2425_v62  ;;  %v2392_v6 = vadd.f32 %v2391_v2, %v6834_v25 }
 0x71d   : > { %v2428_v12 = vmax.f32 %v2390_v4, 0.0 }
 0x71e   : > { %v2395_v8 = vpop.f32.mrb[94].mxu0  ;;  %5186 = vmatprep.subr.bf16.mxu0 %v5185_v3  ;;  %v2429_v14 = vmax.f32 %v2392_v6, 0.0 }
 0x71f   : > { %v2396_v9 = vadd.f32 %v2395_v8, %v6831_v35  ;;  %v2397_v10 = vpop.f32.mrb[95].mxu0  ;;  %5188 = vmatpush1.bf16.msra.mxu0 %v5187_v1 }
 0x720   : > { %v2398_v11 = vadd.f32 %v2397_v10, %v6834_v25 }
 0x721   : > { %v2430_v13 = vmax.f32 %v2396_v9, 0.0 }
 0x722   : > { %v2431_v16 = vmax.f32 %v2398_v11, 0.0 }
 0x723   : > { %v5191_v18 = vpack.c.bf16 %v2430_v13, %v2428_v12  ;;  %v5597_v12 = vld [vmem:[#allocation7] ss:$12 sps:$4 sm:$0xff]   ;;  %v5599_v13 = vld [vmem:[#allocation7 + $0x4] ss:$12 sps:$4 sm:$0xff]  }
 0x724   : > { %v5189_v19 = vpack.c.bf16 %v2431_v16, %v2429_v14  ;;  %v5602_v14 = vld [vmem:[#allocation7 + $0x1c] ss:$12 sps:$4 sm:$0xff]   ;;  %v5600_v16 = vld [vmem:[#allocation7 + $0x18] ss:$12 sps:$4 sm:$0xff]  }
 0x726   : > { %5190 = vmatprep.subr.bf16.mxu0 %v5189_v19  ;;  %v5603_v19 = vld [vmem:[#allocation7 + $0x30] ss:$12 sps:$4 sm:$0xff]  }
 0x727   : > { %5192 = vmatpush1.bf16.msra.mxu0 %v5191_v18  ;;  %v5605_v18 = vld [vmem:[#allocation7 + $0x34] ss:$12 sps:$4 sm:$0xff]  }
 0x72a   : > { %2530 = vmatmul.mubr.f32.vlgmr.msra.gmra.mrb[96].mxu0 %v6748_v45  ;;  %v5593_v45 = vld [vmem:[#allocation5 + $0x2e4] ss:$8 sps:$4 sm:$0xff]  }
 0x72b   : > { %2535 = vmatprep.mubr.f32.mxu0 %v6069_v15  ;;  %2841 = vmatprep.subr.bf16.mxu1 %v5593_v45  ;;  %v5608_v45 = vld [vmem:[#allocation7 + $0x4c] ss:$12 sps:$4 sm:$0xff]  }
 0x72e   : > { %2536 = vmatmul.mubr.f32.gmra.mrb[98].mxu0 %v6753_v43  ;;  %v5591_v43 = vld [vmem:[#allocation5 + $0x2e0] ss:$8 sps:$4 sm:$0xff]  }
 0x72f   : > { %2541 = vmatprep.mubr.f32.mxu0 %v6069_v15  ;;  %2842 = vmatpush1.bf16.msra.mxu1 %v5591_v43  ;;  %v5606_v43 = vld [vmem:[#allocation7 + $0x48] ss:$12 sps:$4 sm:$0xff]  }
 0x732   : > { %2542 = vmatmul.mubr.f32.gmra.mrb[100].mxu0 %v6758_v55  ;;  %v5596_v55 = vld [vmem:[#allocation5 + $0x2f4] ss:$8 sps:$4 sm:$0xff]  }
 0x733   : > { %2547 = vmatprep.mubr.f32.mxu0 %v6069_v15  ;;  %2843 = vmatprep.subr.bf16.mxu1 %v5596_v55  ;;  %v5611_v55 = vld [vmem:[#allocation7 + $0x64] ss:$12 sps:$4 sm:$0xff]  }
 0x736   : > { %2548 = vmatmul.mubr.f32.gmra.mrb[102].mxu0 %v6763_v44  ;;  %v5594_v44 = vld [vmem:[#allocation5 + $0x2f0] ss:$8 sps:$4 sm:$0xff]  }
 0x737   : > { %2553 = vmatprep.mubr.f32.mxu0 %v6069_v15  ;;  %2844 = vmatpush1.bf16.msra.mxu1 %v5594_v44  ;;  %v5609_v44 = vld [vmem:[#allocation7 + $0x60] ss:$12 sps:$4 sm:$0xff]  }
 0x738   : > { %3380 = vmatprep.subr.bf16.mxu1 %v5599_v13 }
 0x73a   : > { %2554 = vmatmul.mubr.f32.gmra.mrb[104].mxu0 %v6768_v57 }
 0x73b   : > { %2559 = vmatprep.mubr.f32.mxu0 %v6069_v15 }
 0x73e   : > { %2560 = vmatmul.mubr.f32.gmra.mrb[106].mxu0 %v6773_v59 }
 0x73f   : > { %2565 = vmatprep.mubr.f32.mxu0 %v6069_v15 }
 0x742   : > { %2566 = vmatmul.mubr.f32.gmra.mrb[108].mxu0 %v6778_v60 }
 0x743   : > { %2571 = vmatprep.mubr.f32.mxu0 %v6069_v15 }
 0x746   : > { %2572 = vmatmul.mubr.f32.gmra.mrb[110].mxu0 %v6783_v53 }
 0x747   : > { %2577 = vmatprep.mubr.f32.mxu0 %v6069_v15 }
 0x74a   : > { %2578 = vmatmul.mubr.f32.gmra.mrb[112].mxu0 %v6788_v54 }
 0x74b   : > { %2583 = vmatprep.mubr.f32.mxu0 %v6069_v15 }
 0x74e   : > { %2584 = vmatmul.mubr.f32.gmra.mrb[114].mxu0 %v6793_v61 }
 0x74f   : > { %2589 = vmatprep.mubr.f32.mxu0 %v6069_v15 }
 0x752   : > { %2590 = vmatmul.mubr.f32.gmra.mrb[116].mxu0 %v6798_v17 }
 0x753   : > { %2595 = vmatprep.mubr.f32.mxu0 %v6069_v15 }
 0x756   : > { %2596 = vmatmul.mubr.f32.gmra.mrb[118].mxu0 %v6803_v56 }
 0x757   : > { %2601 = vmatprep.mubr.f32.mxu0 %v6069_v15 }
 0x75a   : > { %2602 = vmatmul.mubr.f32.gmra.mrb[120].mxu0 %v6808_v58 }
 0x75b   : > { %2607 = vmatprep.mubr.f32.mxu0 %v6069_v15 }
 0x75e   : > { %2608 = vmatmul.mubr.f32.gmra.mrb[122].mxu0 %v6813_v27 }
 0x75f   : > { %2613 = vmatprep.mubr.f32.mxu0 %v6069_v15 }
 0x762   : > { %2614 = vmatmul.mubr.f32.gmra.mrb[124].mxu0 %v6818_v29 }
 0x763   : > { %2619 = vmatprep.mubr.f32.mxu0 %v6069_v15 }
 0x766   : > { %2620 = vmatmul.mubr.f32.gmra.mrb[126].mxu0 %v6823_v5 }
 0x767   : > { %3024 = vmatprep.mubr.f32.mxu0 %v6069_v15 }
 0x7fd   : > { %v2531_v57 = vpop.f32.mrb[96].mxu0 }
 0x7fe   : > { %v2533_v59 = vpop.f32.mrb[97].mxu0 }
 0x801   : > { %v2537_v60 = vpop.f32.mrb[98].mxu0 }
 0x802   : > { %v2626_v53 = vpack.c.bf16 %v2537_v60, %v2531_v57  ;;  %v2539_v54 = vpop.f32.mrb[99].mxu0  ;;  %v5614_v57 = vld [vmem:[#allocation7 + $0x7c] ss:$12 sps:$4 sm:$0xff]   ;;  %v5617_v60 = vld [vmem:[#allocation7 + $0x94] ss:$12 sps:$4 sm:$0xff]  }
 0x803   : > { %v2627_v61 = vpack.c.bf16 %v2539_v54, %v2533_v59  ;;  %v5612_v59 = vld [vmem:[#allocation7 + $0x78] ss:$12 sps:$4 sm:$0xff]  }
 0x804   : > { %v5620_v54 = vld [vmem:[#allocation7 + $0xac] ss:$12 sps:$4 sm:$0xff]  }
 0x805   : > { %v2543_v17 = vpop.f32.mrb[100].mxu0  ;;  %2845 = vmatprep.mubr.bf16.mxu1 %v2627_v61  ;;  %v5618_v61 = vld [vmem:[#allocation7 + $0xa8] ss:$12 sps:$4 sm:$0xff]  }
 0x806   : > { %v2545_v56 = vpop.f32.mrb[101].mxu0  ;;  %2846 = vmatmul.mubr.bf16.vlgmr.msra.gmra.mrb[80].mxu1 %v2626_v53  ;;  %v5615_v53 = vld [vmem:[#allocation7 + $0x90] ss:$12 sps:$4 sm:$0xff]  }
 0x807   : > { %3381 = vmatpush1.bf16.msra.mxu1 %v5597_v12 }
 0x808   : > { %3382 = vmatprep.subr.bf16.mxu1 %v5602_v14 }
 0x809   : > { %v2549_v58 = vpop.f32.mrb[102].mxu0 }
 0x80a   : > { %v2628_v27 = vpack.c.bf16 %v2549_v58, %v2543_v17  ;;  %v2551_v29 = vpop.f32.mrb[103].mxu0  ;;  %v5623_v17 = vld [vmem:[#allocation7 + $0xc4] ss:$12 sps:$4 sm:$0xff]   ;;  %v5628_v58 = vld [vmem:[#allocation7 + $0xdc] ss:$12 sps:$4 sm:$0xff]  }
 0x80b   : > { %v2629_v5 = vpack.c.bf16 %v2551_v29, %v2545_v56  ;;  %3383 = vmatpush1.bf16.msra.mxu1 %v5600_v16  ;;  %v5621_v56 = vld [vmem:[#allocation7 + $0xc0] ss:$12 sps:$4 sm:$0xff]  }
 0x80c   : > { %3384 = vmatprep.subr.bf16.mxu1 %v5605_v18  ;;  %v5633_v29 = vld [vmem:[#allocation7 + $0xf4] ss:$12 sps:$4 sm:$0xff]  }
 0x80d   : > { %v2555_v35 = vpop.f32.mrb[104].mxu0  ;;  %2855 = vmatprep.mubr.bf16.mxu1 %v2629_v5  ;;  %v5631_v5 = vld [vmem:[#allocation7 + $0xf0] ss:$12 sps:$4 sm:$0xff]  }
 0x80e   : > { %v2557_v25 = vpop.f32.mrb[105].mxu0  ;;  %2856 = vmatmul.mubr.bf16.gmra.mrb[84].mxu1 %v2628_v27  ;;  %v5626_v27 = vld [vmem:[#allocation7 + $0xd8] ss:$12 sps:$4 sm:$0xff]  }
 0x80f   : > { %3385 = vmatpush1.bf16.msra.mxu1 %v5603_v19 }
 0x810   : > { %3386 = vmatprep.subr.bf16.mxu1 %v5608_v45 }
 0x811   : > { %v2561_v20 = vpop.f32.mrb[106].mxu0 }
 0x812   : > { %v2630_v21 = vpack.c.bf16 %v2561_v20, %v2555_v35  ;;  %v2563_v23 = vpop.f32.mrb[107].mxu0  ;;  %v5638_v35 = vld [vmem:[#allocation7 + $0x10c] ss:$12 sps:$4 sm:$0xff]   ;;  %v5643_v20 = vld [vmem:[#allocation7 + $0x124] ss:$12 sps:$4 sm:$0xff]  }
 0x813   : > { %v2631_v24 = vpack.c.bf16 %v2563_v23, %v2557_v25  ;;  %3387 = vmatpush1.bf16.msra.mxu1 %v5606_v43  ;;  %v5636_v25 = vld [vmem:[#allocation7 + $0x108] ss:$12 sps:$4 sm:$0xff]  }
 0x814   : > { %3388 = vmatprep.subr.bf16.mxu1 %v5611_v55  ;;  %v2464_v23 = vld [vmem:[%s7096_s1 + $0x7] sm:$0x3] }
 0x815   : > { %v2567_v26 = vpop.f32.mrb[108].mxu0  ;;  %2865 = vmatprep.mubr.bf16.mxu1 %v2631_v24  ;;  %v5648_v24 = vld [vmem:[#allocation7 + $0x13c] ss:$12 sps:$4 sm:$0xff]  }
 0x816   : > { %v2569_v30 = vpop.f32.mrb[109].mxu0  ;;  %2866 = vmatmul.mubr.bf16.gmra.mrb[88].mxu1 %v2630_v21  ;;  %v5641_v21 = vld [vmem:[#allocation7 + $0x120] ss:$12 sps:$4 sm:$0xff]  }
 0x817   : > { %3389 = vmatpush1.bf16.msra.mxu1 %v5609_v44 }
 0x818   : > { %3390 = vmatprep.subr.bf16.mxu1 %v5614_v57 }
 0x819   : > { %v2573_v46 = vpop.f32.mrb[110].mxu0 }
 0x81a   : > { %v2632_v47 = vpack.c.bf16 %v2573_v46, %v2567_v26  ;;  %v2575_v48 = vpop.f32.mrb[111].mxu0  ;;  %v6904_v26 = vrot.slane %v2464_v23, %v6621_v38  ;;  %v6907_v46 = vrot.slane %v2464_v23, %v6628_v52 }
 0x81b   : > { %v2633_v22 = vpack.c.bf16 %v2575_v48, %v2569_v30  ;;  %3391 = vmatpush1.bf16.msra.mxu1 %v5612_v59  ;;  %v5646_v30 = vld [vmem:[#allocation7 + $0x138] ss:$12 sps:$4 sm:$0xff]  }
 0x81c   : > { %3392 = vmatprep.subr.bf16.mxu1 %v5617_v60 }
 0x81d   : > { %v2579_v49 = vpop.f32.mrb[112].mxu0  ;;  %2875 = vmatprep.mubr.bf16.mxu1 %v2633_v22 }
 0x81e   : > { %v2581_v50 = vpop.f32.mrb[113].mxu0  ;;  %2876 = vmatmul.mubr.bf16.gmra.mrb[92].mxu1 %v2632_v47 }
 0x81f   : > { %3393 = vmatpush1.bf16.msra.mxu1 %v5615_v53 }
 0x820   : > { %3394 = vmatprep.subr.bf16.mxu1 %v5620_v54 }
 0x821   : > { %v2585_v51 = vpop.f32.mrb[114].mxu0 }
 0x822   : > { %v2634_v31 = vpack.c.bf16 %v2585_v51, %v2579_v49  ;;  %v2587_v32 = vpop.f32.mrb[115].mxu0 }
 0x823   : > { %v2635_v33 = vpack.c.bf16 %v2587_v32, %v2581_v50  ;;  %3395 = vmatpush1.bf16.msra.mxu1 %v5618_v61 }
 0x824   : > { %3396 = vmatprep.subr.bf16.mxu1 %v5623_v17 }
 0x825   : > { %v2591_v34 = vpop.f32.mrb[116].mxu0  ;;  %2885 = vmatprep.mubr.bf16.mxu1 %v2635_v33 }
 0x826   : > { %v2593_v36 = vpop.f32.mrb[117].mxu0  ;;  %2886 = vmatmul.mubr.bf16.gmra.mrb[96].mxu1 %v2634_v31 }
 0x827   : > { %3397 = vmatpush1.bf16.msra.mxu1 %v5621_v56 }
 0x828   : > { %3398 = vmatprep.subr.bf16.mxu1 %v5628_v58 }
 0x829   : > { %v2597_v42 = vpop.f32.mrb[118].mxu0 }
 0x82a   : > { %v2636_v7 = vpack.c.bf16 %v2597_v42, %v2591_v34  ;;  %v2599_v40 = vpop.f32.mrb[119].mxu0 }
 0x82b   : > { %v2637_v28 = vpack.c.bf16 %v2599_v40, %v2593_v36  ;;  %3399 = vmatpush1.bf16.msra.mxu1 %v5626_v27 }
 0x82c   : > { %3400 = vmatprep.subr.bf16.mxu1 %v5633_v29 }
 0x82d   : > { %v2603_v62 = vpop.f32.mrb[120].mxu0  ;;  %2895 = vmatprep.mubr.bf16.mxu1 %v2637_v28 }
 0x82e   : > { %v2605_v63 = vpop.f32.mrb[121].mxu0  ;;  %2896 = vmatmul.mubr.bf16.gmra.mrb[100].mxu1 %v2636_v7 }
 0x82f   : > { %3401 = vmatpush1.bf16.msra.mxu1 %v5631_v5 }
 0x830   : > { %3402 = vmatprep.subr.bf16.mxu1 %v5638_v35 }
 0x831   : > { %v2609_v0 = vpop.f32.mrb[122].mxu0 }
 0x832   : > { %v2638_v1 = vpack.c.bf16 %v2609_v0, %v2603_v62  ;;  %v2611_v2 = vpop.f32.mrb[123].mxu0 }
 0x833   : > { %v2639_v3 = vpack.c.bf16 %v2611_v2, %v2605_v63  ;;  %3403 = vmatpush1.bf16.msra.mxu1 %v5636_v25 }
 0x834   : > { %3404 = vmatprep.subr.bf16.mxu1 %v5643_v20 }
 0x835   : > { %v2615_v4 = vpop.f32.mrb[124].mxu0  ;;  %2905 = vmatprep.mubr.bf16.mxu1 %v2639_v3 }
 0x836   : > { %v2617_v6 = vpop.f32.mrb[125].mxu0  ;;  %2906 = vmatmul.mubr.bf16.gmra.mrb[104].mxu1 %v2638_v1 }
 0x837   : > { %3405 = vmatpush1.bf16.msra.mxu1 %v5641_v21 }
 0x838   : > { %3406 = vmatprep.subr.bf16.mxu1 %v5648_v24 }
 0x839   : > { %v2621_v8 = vpop.f32.mrb[126].mxu0 }
 0x83a   : > { %v2640_v9 = vpack.c.bf16 %v2621_v8, %v2615_v4  ;;  %v2623_v10 = vpop.f32.mrb[127].mxu0 }
 0x83b   : > { %v2641_v11 = vpack.c.bf16 %v2623_v10, %v2617_v6  ;;  %3407 = vmatpush1.bf16.msra.mxu1 %v5646_v30 }
 0x83d   : > { %2915 = vmatprep.mubr.bf16.mxu1 %v2641_v11 }
 0x83e   : > { %2916 = vmatmul.mubr.bf16.gmra.mrb[108].mxu1 %v2640_v9 }
 0x8d9   : > { %v2847_v47 = vpop.f32.mrb[80].mxu1 }
 0x8da   : > { %v2848_v48 = vadd.f32 %v2847_v47, %v6904_v26  ;;  %v2849_v22 = vpop.f32.mrb[81].mxu1 }
 0x8db   : > { %v2850_v49 = vadd.f32 %v2849_v22, %v6907_v46  ;;  %v2851_v50 = vpop.f32.mrb[82].mxu1 }
 0x8dc   : > { %v2852_v51 = vadd.f32 %v2851_v50, %v6904_v26  ;;  %v2853_v31 = vpop.f32.mrb[83].mxu1  ;;  %v2926_v33 = vmax.f32 %v2848_v48, 0.0 }
 0x8dd   : > { %v2854_v32 = vadd.f32 %v2853_v31, %v6907_v46  ;;  %v2927_v36 = vmax.f32 %v2850_v49, 0.0 }
 0x8de   : > { %v2928_v34 = vmax.f32 %v2852_v51, 0.0 }
 0x8df   : > { %v2929_v42 = vmax.f32 %v2854_v32, 0.0 }
 0x8e0   : > { %v5195_v7 = vpack.c.bf16 %v2928_v34, %v2926_v33 }
 0x8e1   : > { %v5193_v40 = vpack.c.bf16 %v2929_v42, %v2927_v36  ;;  %v2857_v28 = vpop.f32.mrb[84].mxu1 }
 0x8e2   : > { %v2858_v62 = vadd.f32 %v2857_v28, %v6904_v26  ;;  %v2859_v63 = vpop.f32.mrb[85].mxu1 }
 0x8e3   : > { %v2860_v0 = vadd.f32 %v2859_v63, %v6907_v46  ;;  %v2861_v1 = vpop.f32.mrb[86].mxu1  ;;  %5194 = vmatprep.subr.bf16.mxu0 %v5193_v40 }
 0x8e4   : > { %v2862_v2 = vadd.f32 %v2861_v1, %v6904_v26  ;;  %v2863_v3 = vpop.f32.mrb[87].mxu1  ;;  %5196 = vmatpush1.bf16.msra.mxu0 %v5195_v7  ;;  %v2930_v6 = vmax.f32 %v2858_v62, 0.0 }
 0x8e5   : > { %v2864_v4 = vadd.f32 %v2863_v3, %v6907_v46  ;;  %v2931_v9 = vmax.f32 %v2860_v0, 0.0 }
 0x8e6   : > { %v2932_v8 = vmax.f32 %v2862_v2, 0.0 }
 0x8e7   : > { %v2933_v10 = vmax.f32 %v2864_v4, 0.0 }
 0x8e8   : > { %v5199_v11 = vpack.c.bf16 %v2932_v8, %v2930_v6 }
 0x8e9   : > { %v5197_v12 = vpack.c.bf16 %v2933_v10, %v2931_v9  ;;  %v2867_v13 = vpop.f32.mrb[88].mxu1 }
 0x8ea   : > { %v2868_v14 = vadd.f32 %v2867_v13, %v6904_v26  ;;  %v2869_v16 = vpop.f32.mrb[89].mxu1 }
 0x8eb   : > { %v2870_v18 = vadd.f32 %v2869_v16, %v6907_v46  ;;  %v2871_v19 = vpop.f32.mrb[90].mxu1  ;;  %5198 = vmatprep.subr.bf16.mxu0 %v5197_v12 }
 0x8ec   : > { %v2872_v45 = vadd.f32 %v2871_v19, %v6904_v26  ;;  %v2873_v43 = vpop.f32.mrb[91].mxu1  ;;  %5200 = vmatpush1.bf16.msra.mxu0 %v5199_v11  ;;  %v2934_v44 = vmax.f32 %v2868_v14, 0.0 }
 0x8ed   : > { %v2874_v55 = vadd.f32 %v2873_v43, %v6907_v46  ;;  %v2935_v59 = vmax.f32 %v2870_v18, 0.0 }
 0x8ee   : > { %v2936_v57 = vmax.f32 %v2872_v45, 0.0 }
 0x8ef   : > { %v2937_v60 = vmax.f32 %v2874_v55, 0.0 }
 0x8f0   : > { %v5203_v53 = vpack.c.bf16 %v2936_v57, %v2934_v44 }
 0x8f1   : > { %v5201_v54 = vpack.c.bf16 %v2937_v60, %v2935_v59  ;;  %v2877_v61 = vpop.f32.mrb[92].mxu1 }
 0x8f2   : > { %v2878_v17 = vadd.f32 %v2877_v61, %v6904_v26  ;;  %v2879_v56 = vpop.f32.mrb[93].mxu1 }
 0x8f3   : > { %v2880_v58 = vadd.f32 %v2879_v56, %v6907_v46  ;;  %v2881_v27 = vpop.f32.mrb[94].mxu1  ;;  %5202 = vmatprep.subr.bf16.mxu0 %v5201_v54 }
 0x8f4   : > { %v2882_v29 = vadd.f32 %v2881_v27, %v6904_v26  ;;  %v2883_v5 = vpop.f32.mrb[95].mxu1  ;;  %5204 = vmatpush1.bf16.msra.mxu0 %v5203_v53  ;;  %v2938_v25 = vmax.f32 %v2878_v17, 0.0 }
 0x8f5   : > { %v2884_v35 = vadd.f32 %v2883_v5, %v6907_v46  ;;  %v2939_v21 = vmax.f32 %v2880_v58, 0.0 }
 0x8f6   : > { %v2940_v20 = vmax.f32 %v2882_v29, 0.0 }
 0x8f7   : > { %v2941_v23 = vmax.f32 %v2884_v35, 0.0 }
 0x8f8   : > { %v5207_v24 = vpack.c.bf16 %v2940_v20, %v2938_v25 }
 0x8f9   : > { %v5205_v30 = vpack.c.bf16 %v2941_v23, %v2939_v21  ;;  %v2887_v47 = vpop.f32.mrb[96].mxu1 }
 0x8fa   : > { %v2888_v48 = vadd.f32 %v2887_v47, %v6904_v26  ;;  %v2889_v22 = vpop.f32.mrb[97].mxu1  ;;  %v5624_v47 = vld [vmem:[#allocation7 + $0xc8] ss:$12 sps:$4 sm:$0xff]  }
 0x8fb   : > { %v2890_v49 = vadd.f32 %v2889_v22, %v6907_v46  ;;  %v2891_v50 = vpop.f32.mrb[98].mxu1  ;;  %5206 = vmatprep.subr.bf16.mxu0 %v5205_v30  ;;  %v5625_v22 = vld [vmem:[#allocation7 + $0x8] ss:$12 sps:$4 sm:$0xff]  }
 0x8fc   : > { %v2892_v51 = vadd.f32 %v2891_v50, %v6904_v26  ;;  %v2893_v31 = vpop.f32.mrb[99].mxu1  ;;  %5208 = vmatpush1.bf16.msra.mxu0 %v5207_v24  ;;  %v2942_v33 = vmax.f32 %v2888_v48, 0.0  ;;  %v2958_v48 = vld [vmem:[%s477_s27] sm:$0xff] }
 0x8fd   : > { %v2894_v32 = vadd.f32 %v2893_v31, %v6907_v46  ;;  %v2943_v36 = vmax.f32 %v2890_v49, 0.0  ;;  %v5629_v49 = vld [vmem:[#allocation7 + $0xe0] ss:$12 sps:$4 sm:$0xff]   ;;  %v5634_v50 = vld [vmem:[#allocation7 + $0xf8] ss:$12 sps:$4 sm:$0xff]  }
 0x8fe   : > { %v2944_v34 = vmax.f32 %v2892_v51, 0.0  ;;  %v5635_v51 = vld [vmem:[#allocation7 + $0x38] ss:$12 sps:$4 sm:$0xff]   ;;  %v5639_v31 = vld [vmem:[#allocation7 + $0x110] ss:$12 sps:$4 sm:$0xff]  }
 0x8ff   : > { %v2945_v42 = vmax.f32 %v2894_v32, 0.0  ;;  %v5640_v32 = vld [vmem:[#allocation7 + $0x50] ss:$12 sps:$4 sm:$0xff]  }
 0x900   : > { %v5211_v7 = vpack.c.bf16 %v2944_v34, %v2942_v33  ;;  %v5644_v33 = vld [vmem:[#allocation7 + $0x128] ss:$12 sps:$4 sm:$0xff]  }
 0x901   : > { %v5209_v40 = vpack.c.bf16 %v2945_v42, %v2943_v36  ;;  %v2897_v28 = vpop.f32.mrb[100].mxu1  ;;  %v5645_v34 = vld [vmem:[#allocation7 + $0x68] ss:$12 sps:$4 sm:$0xff]   ;;  %v5649_v36 = vld [vmem:[#allocation7 + $0x140] ss:$12 sps:$4 sm:$0xff]  }
 0x902   : > { %v2898_v62 = vadd.f32 %v2897_v28, %v6904_v26  ;;  %v2899_v63 = vpop.f32.mrb[101].mxu1  ;;  %v5650_v42 = vld [vmem:[#allocation7 + $0x80] ss:$12 sps:$4 sm:$0xff]   ;;  %v5651_v28 = vld [vmem:[#allocation7 + $0x150] ss:$12 sps:$4 sm:$0xff]  }
 0x903   : > { %v2900_v0 = vadd.f32 %v2899_v63, %v6907_v46  ;;  %v2901_v1 = vpop.f32.mrb[102].mxu1  ;;  %5210 = vmatprep.subr.bf16.mxu0 %v5209_v40  ;;  %v5654_v40 = vld [vmem:[#allocation7 + $0x158] ss:$12 sps:$4 sm:$0xff]  }
 0x904   : > { %v2902_v2 = vadd.f32 %v2901_v1, %v6904_v26  ;;  %v2903_v3 = vpop.f32.mrb[103].mxu1  ;;  %5212 = vmatpush1.bf16.msra.mxu0 %v5211_v7  ;;  %v2946_v6 = vmax.f32 %v2898_v62, 0.0  ;;  %v5653_v7 = vld [vmem:[#allocation7 + $0x154] ss:$12 sps:$4 sm:$0xff]   ;;  %v5655_v62 = vld [vmem:[#allocation7 + $0x98] ss:$12 sps:$4 sm:$0xff]  }
 0x905   : > { %v2904_v4 = vadd.f32 %v2903_v3, %v6907_v46  ;;  %v2947_v9 = vmax.f32 %v2900_v0, 0.0  ;;  %3408 = vmatprep.subr.bf16.mxu1 %v5653_v7  ;;  %v5658_v63 = vld [vmem:[#allocation7 + $0x16c] ss:$12 sps:$4 sm:$0xff]   ;;  %v5659_v0 = vld [vmem:[#allocation7 + $0x170] ss:$12 sps:$4 sm:$0xff]   ;;  %v5661_v3 = vld [vmem:[#allocation2 + $0x80] sm:$0xff]  }
 0x906   : > { %v2948_v8 = vmax.f32 %v2902_v2, 0.0  ;;  %3409 = vmatpush1.bf16.msra.mxu1 %v5651_v28  ;;  %v5656_v1 = vld [vmem:[#allocation7 + $0x168] ss:$12 sps:$4 sm:$0xff]   ;;  %v5660_v2 = vld [vmem:[#allocation7 + $0xb0] ss:$12 sps:$4 sm:$0xff]  }
 0x907   : > { %v2949_v10 = vmax.f32 %v2904_v4, 0.0  ;;  %3410 = vmatprep.subr.bf16.mxu1 %v5658_v63 }
 0x908   : > { %v5215_v11 = vpack.c.bf16 %v2948_v8, %v2946_v6 }
 0x909   : > { %v5213_v12 = vpack.c.bf16 %v2949_v10, %v2947_v9  ;;  %v2907_v13 = vpop.f32.mrb[104].mxu1 }
 0x90a   : > { %v2908_v14 = vadd.f32 %v2907_v13, %v6904_v26  ;;  %v2909_v16 = vpop.f32.mrb[105].mxu1  ;;  %3411 = vmatpush1.bf16.msra.mxu1 %v5656_v1 }
 0x90b   : > { %v2910_v18 = vadd.f32 %v2909_v16, %v6907_v46  ;;  %v2911_v19 = vpop.f32.mrb[106].mxu1  ;;  %5214 = vmatprep.subr.bf16.mxu0 %v5213_v12  ;;  %5025 = vmatprep.subr.bf16.mxu1 %v6069_v15 }
 0x90c   : > { %v2912_v45 = vadd.f32 %v2911_v19, %v6904_v26  ;;  %v2913_v43 = vpop.f32.mrb[107].mxu1  ;;  %5216 = vmatpush1.bf16.msra.mxu0 %v5215_v11  ;;  %v2950_v44 = vmax.f32 %v2908_v14, 0.0  ;;  %v5663_v19 = vld [vmem:[#allocation2 + $0xc0] sm:$0xff]  }
 0x90d   : > { %v2914_v55 = vadd.f32 %v2913_v43, %v6907_v46  ;;  %v2951_v59 = vmax.f32 %v2910_v18, 0.0  ;;  %v5662_v18 = vld [vmem:[#allocation2 + $0x40] sm:$0xff]   ;;  %v5665_v43 = vld [vmem:[#allocation2 + $0x48] sm:$0xff]  }
 0x90e   : > { %v2952_v57 = vmax.f32 %v2912_v45, 0.0  ;;  %v5664_v45 = vld [vmem:[#allocation2 + $0x88] sm:$0xff]  }
 0x90f   : > { %v2953_v60 = vmax.f32 %v2914_v55, 0.0  ;;  %v5666_v55 = vld [vmem:[#allocation2 + $0xc8] sm:$0xff]  }
 0x910   : > { %v5219_v53 = vpack.c.bf16 %v2952_v57, %v2950_v44  ;;  %v5667_v44 = vld [vmem:[#allocation2 + $0x90] sm:$0xff]  }
 0x911   : > { %v5217_v54 = vpack.c.bf16 %v2953_v60, %v2951_v59  ;;  %v2917_v61 = vpop.f32.mrb[108].mxu1  ;;  %v5668_v57 = vld [vmem:[#allocation2 + $0x50] sm:$0xff]   ;;  %v5670_v60 = vld [vmem:[#allocation2 + $0x98] sm:$0xff]  }
 0x912   : > { %v2918_v17 = vadd.f32 %v2917_v61, %v6904_v26  ;;  %v2919_v56 = vpop.f32.mrb[109].mxu1  ;;  %v5669_v59 = vld [vmem:[#allocation2 + $0xd0] sm:$0xff]   ;;  %v5673_v61 = vld [vmem:[#allocation2 + $0xa0] sm:$0xff]  }
 0x913   : > { %v2920_v58 = vadd.f32 %v2919_v56, %v6907_v46  ;;  %v2921_v27 = vpop.f32.mrb[110].mxu1  ;;  %5218 = vmatprep.subr.bf16.mxu0 %v5217_v54  ;;  %v5672_v54 = vld [vmem:[#allocation2 + $0xd8] sm:$0xff]   ;;  %v5675_v56 = vld [vmem:[#allocation2 + $0xe0] sm:$0xff]  }
 0x914   : > { %v2922_v29 = vadd.f32 %v2921_v27, %v6904_v26  ;;  %v2923_v5 = vpop.f32.mrb[111].mxu1  ;;  %5220 = vmatpush1.bf16.msra.mxu0 %v5219_v53  ;;  %v2954_v25 = vmax.f32 %v2918_v17, 0.0  ;;  %v2959_v26 = vld [vmem:[%s477_s27 + $0x8] sm:$0xff]  ;;  %v5674_v17 = vld [vmem:[#allocation2 + $0x60] sm:$0xff]   ;;  %s4455_s27 = sshll.u32 %s6165_s22, 1  ;;  %s4711_s22 = sld [smem:[#allocation13 + $0x1]] }
 0x915   : > { %v2924_v35 = vadd.f32 %v2923_v5, %v6907_v46  ;;  %v2955_v21 = vmax.f32 %v2920_v58, 0.0  ;;  %v5630_v46 = vld [vmem:[#allocation7 + $0x20] ss:$12 sps:$4 sm:$0xff]   ;;  %v5671_v53 = vld [vmem:[#allocation2 + $0x58] sm:$0xff]   ;;  %v5679_v5 = vld [vmem:[#allocation2 + $0xb0] sm:$0xff]   ;;  %p547_p2 = scmp.lt.s32.totalorder %s4455_s27, 3 }
 0x916   : > { %v2956_v20 = vmax.f32 %v2922_v29, 0.0  ;;  %v5676_v58 = vld [vmem:[#allocation2 + $0xa8] sm:$0xff]  }
 0x917   : > { %v2957_v23 = vmax.f32 %v2924_v35, 0.0  ;;  %v5677_v27 = vld [vmem:[#allocation2 + $0x68] sm:$0xff]   ;;  %v5680_v35 = vld [vmem:[#allocation2 + $0x70] sm:$0xff]   ;;  %s7107_s27 = smov (!%p547_p2, %s4455_s27), 3 }
 0x918   : > { %v5223_v24 = vpack.c.bf16 %v2956_v20, %v2954_v25  ;;  %v5678_v29 = vld [vmem:[#allocation2 + $0xe8] sm:$0xff]   ;;  %v5681_v25 = vld [vmem:[#allocation2 + $0xf0] sm:$0xff]   ;;  %v5682_v20 = vld [vmem:[#allocation2 + $0xb8] sm:$0xff]   ;;  %s4456_s0 = sshll.u32 %s7107_s27, 3 }
 0x919   : > { %v5221_v30 = vpack.c.bf16 %v2957_v23, %v2955_v21  ;;  %v5683_v21 = vld [vmem:[#allocation2 + $0x78] sm:$0xff]   ;;  %s550_s16 = scalar_lea.vmem %s7097_s20, %s4456_s0  ;;  %s556_s28 = scalar_lea.vmem %s7098_s10, %s4456_s0 }
 0x91a   : > { %v5684_v23 = vld [vmem:[#allocation2 + $0xf8] sm:$0xff]  }
 0x91b   : > { %5222 = vmatprep.subr.bf16.mxu0 %v5221_v30  ;;  %v3105_v30 = vld [vmem:[%s7096_s1 + $0x9] sm:$0x7] }
 0x91c   : > { %5224 = vmatpush1.bf16.msra.mxu0 %v5223_v24  ;;  %v5687_v24 = vld [vmem:[#allocation5 + $0x304] ss:$8 sps:$4 sm:$0xff]  }
 0x91d   : > { %4797 = vmatprep.subr.bf16.mxu0 %v5624_v47  ;;  %v3112_v47 = vrot.slane %v3105_v30, %v6621_v38 }
 0x91f   : > { %3025 = vmatmul.mubr.f32.vlgmr.msra.gmra.mrb[128].mxu0 %v2958_v48  ;;  %v3116_v48 = vrot.slane %v3105_v30, %v6628_v52 }
 0x920   : > { %3030 = vmatprep.mubr.f32.mxu0 %v6069_v15  ;;  %4798 = vmatpush3.bf16.msra.mxu0 %v5625_v22 }
 0x921   : > { %4799 = vmatprep.subr.bf16.mxu0 %v5629_v49 }
 0x923   : > { %3031 = vmatmul.mubr.f32.gmra.mrb[130].mxu0 %v2959_v26  ;;  %v3120_v26 = vrot.slane %v3105_v30, %v1125_v39 }
 0x924   : > { %4800 = vmatpush3.bf16.msra.mxu0 %v5630_v46 }
 0x925   : > { %4801 = vmatprep.subr.bf16.mxu0 %v5634_v50 }
 0x928   : > { %4802 = vmatpush3.bf16.msra.mxu0 %v5635_v51 }
 0x929   : > { %4803 = vmatprep.subr.bf16.mxu0 %v5639_v31 }
 0x92c   : > { %4804 = vmatpush3.bf16.msra.mxu0 %v5640_v32 }
 0x92d   : > { %4805 = vmatprep.subr.bf16.mxu0 %v5644_v33 }
 0x930   : > { %4806 = vmatpush3.bf16.msra.mxu0 %v5645_v34 }
 0x931   : > { %4807 = vmatprep.subr.bf16.mxu0 %v5649_v36 }
 0x934   : > { %4808 = vmatpush3.bf16.msra.mxu0 %v5650_v42 }
 0x935   : > { %4809 = vmatprep.subr.bf16.mxu0 %v5654_v40 }
 0x938   : > { %4810 = vmatpush3.bf16.msra.mxu0 %v5655_v62 }
 0x939   : > { %4811 = vmatprep.subr.bf16.mxu0 %v5659_v0 }
 0x93c   : > { %4812 = vmatpush3.bf16.msra.mxu0 %v5660_v2 }
 0x93d   : > { %4819 = vmatprep.subr.bf16.mxu0 %v5661_v3 }
 0x9f2   : > { %v3026_v4 = vpop.f32.mrb[128].mxu0 }
 0x9f3   : > { %v3028_v6 = vpop.f32.mrb[129].mxu0  ;;  %v3037_v9 = vmax.f32 %v3026_v4, 0.0 }
 0x9f4   : > { %v3038_v12 = vmax.f32 %v3028_v6, 0.0 }
 0x9f6   : > { %v3032_v8 = vpop.f32.mrb[130].mxu0 }
 0x9f7   : > { %v3039_v10 = vmax.f32 %v3032_v8, 0.0  ;;  %v3034_v11 = vpop.f32.mrb[131].mxu0  ;;  %v5685_v8 = vld [vmem:[#allocation5 + $0x300] ss:$8 sps:$4 sm:$0xff]  }
 0x9f8   : > { %v3040_v13 = vmax.f32 %v3034_v11, 0.0  ;;  %v5688_v11 = vld [vmem:[#allocation5 + $0x310] ss:$8 sps:$4 sm:$0xff]  }
 0x9f9   : > { %v3106_v14 = vpack.c.bf16 %v3039_v10, %v3037_v9  ;;  %v5690_v9 = vld [vmem:[#allocation5 + $0x314] ss:$8 sps:$4 sm:$0xff]  }
 0x9fa   : > { %v3107_v16 = vpack.c.bf16 %v3040_v13, %v3038_v12  ;;  %v5693_v12 = vld [vmem:[#allocation5 + $0x324] ss:$8 sps:$4 sm:$0xff]   ;;  %v5691_v13 = vld [vmem:[#allocation5 + $0x320] ss:$8 sps:$4 sm:$0xff]  }
 0x9fc   : > { %3412 = vmatprep.mubr.bf16.mxu1 %v3107_v16  ;;  %3455 = vmatprep.mubr.bf16.mxu0 %v3107_v16  ;;  %v5694_v16 = vld [vmem:[#allocation5 + $0x330] ss:$8 sps:$4 sm:$0xff]  }
 0x9fd   : > { %3413 = vmatmul.mubr.bf16.vlgmr.msra.gmra.mrb[112].mxu1 %v3106_v14  ;;  %3456 = vmatmul.mubr.bf16.vlgmr.msra.gmra.mrb[132].mxu0 %v3106_v14  ;;  %v5696_v14 = vld [vmem:[#allocation5 + $0x334] ss:$8 sps:$4 sm:$0xff]  }
 0x9fe   : > { %4820 = vmatpush3.bf16.msra.mxu0 %v5662_v18  ;;  %5026 = vmatpush3.bf16.msra.mxu1 %v5663_v19  ;;  %v5699_v18 = vld [vmem:[#allocation5 + $0x344] ss:$8 sps:$4 sm:$0xff]   ;;  %v5697_v19 = vld [vmem:[#allocation5 + $0x340] ss:$8 sps:$4 sm:$0xff]  }
 0x9ff   : > { %4821 = vmatprep.subr.bf16.mxu0 %v5664_v45  ;;  %5027 = vmatprep.subr.bf16.mxu1 %v6069_v15  ;;  %v5702_v45 = vld [vmem:[#allocation5 + $0x354] ss:$8 sps:$4 sm:$0xff]  }
 0xa00   : > { %5041 = vmatprep.mubr.msk.bf16.mxu1 %vm6070_vm0, %v6069_v15 }
 0xa02   : > { %4822 = vmatpush3.bf16.msra.mxu0 %v5665_v43  ;;  %5028 = vmatpush3.bf16.msra.mxu1 %v5666_v55  ;;  %v5700_v43 = vld [vmem:[#allocation5 + $0x350] ss:$8 sps:$4 sm:$0xff]   ;;  %v5705_v55 = vld [vmem:[#allocation5 + $0x364] ss:$8 sps:$4 sm:$0xff]  }
 0xa03   : > { %4823 = vmatprep.subr.bf16.mxu0 %v5667_v44  ;;  %5029 = vmatprep.subr.bf16.mxu1 %v6069_v15  ;;  %v5703_v44 = vld [vmem:[#allocation5 + $0x360] ss:$8 sps:$4 sm:$0xff]  }
 0xa06   : > { %4824 = vmatpush3.bf16.msra.mxu0 %v5668_v57  ;;  %5030 = vmatpush3.bf16.msra.mxu1 %v5669_v59  ;;  %v5706_v57 = vld [vmem:[#allocation5 + $0x370] ss:$8 sps:$4 sm:$0xff]   ;;  %v5709_v59 = vld [vmem:[#allocation2 + $0x140] sm:$0xff]  }
 0xa07   : > { %4825 = vmatprep.subr.bf16.mxu0 %v5670_v60  ;;  %5031 = vmatprep.subr.bf16.mxu1 %v6069_v15  ;;  %v5710_v60 = vld [vmem:[#allocation2 + $0x100] sm:$0xff]  }
 0xa0a   : > { %4826 = vmatpush3.bf16.msra.mxu0 %v5671_v53  ;;  %5032 = vmatpush3.bf16.msra.mxu1 %v5672_v54  ;;  %v5711_v53 = vld [vmem:[#allocation2 + $0x148] sm:$0xff]  }
 0xa0b   : > { %4827 = vmatprep.subr.bf16.mxu0 %v5673_v61  ;;  %5033 = vmatprep.subr.bf16.mxu1 %v6069_v15  ;;  %v5712_v54 = vld [vmem:[#allocation2 + $0x108] sm:$0xff]   ;;  %v5713_v61 = vld [vmem:[#allocation2 + $0x150] sm:$0xff]  }
 0xa0e   : > { %4828 = vmatpush3.bf16.msra.mxu0 %v5674_v17  ;;  %5034 = vmatpush3.bf16.msra.mxu1 %v5675_v56  ;;  %v5714_v17 = vld [vmem:[#allocation2 + $0x110] sm:$0xff]   ;;  %v5715_v56 = vld [vmem:[#allocation2 + $0x158] sm:$0xff]  }
 0xa0f   : > { %4829 = vmatprep.subr.bf16.mxu0 %v5676_v58  ;;  %5035 = vmatprep.subr.bf16.mxu1 %v6069_v15  ;;  %v5716_v58 = vld [vmem:[#allocation2 + $0x118] sm:$0xff]  }
 0xa12   : > { %4830 = vmatpush3.bf16.msra.mxu0 %v5677_v27  ;;  %5036 = vmatpush3.bf16.msra.mxu1 %v5678_v29  ;;  %v5717_v27 = vld [vmem:[#allocation2 + $0x160] sm:$0xff]  }
 0xa13   : > { %5037 = vmatprep.subr.bf16.mxu1 %v6069_v15  ;;  %4831 = vmatprep.subr.bf16.mxu0 %v5679_v5  ;;  %v5718_v29 = vld [vmem:[#allocation2 + $0x120] sm:$0xff]   ;;  %v5719_v5 = vld [vmem:[#allocation2 + $0x168] sm:$0xff]  }
 0xa16   : > { %4832 = vmatpush3.bf16.msra.mxu0 %v5680_v35  ;;  %5038 = vmatpush3.bf16.msra.mxu1 %v5681_v25 }
 0xa17   : > { %5039 = vmatprep.subr.bf16.mxu1 %v6069_v15  ;;  %4833 = vmatprep.subr.bf16.mxu0 %v5682_v20  ;;  %v4644_v20 = vld [vmem:[%s7096_s1 + $0xc] ss:$0 sm:$0xff] }
 0xa1a   : > { %4834 = vmatpush3.bf16.msra.mxu0 %v5683_v21  ;;  %5040 = vmatpush3.bf16.msra.mxu1 %v5684_v23 }
 0xa1b   : > { %3865 = vmatprep.subr.bf16.mxu0 %v5687_v24  ;;  %4850 = vmatprep.subr.bf16.mxu1 %v5709_v59 }
 0xad0   : > { %v3414_v22 = vpop.f32.mrb[112].mxu1  ;;  %v4813_v49 = vpop.f32.mrb[132].mxu0 }
 0xad1   : > { %v3415_v46 = vadd.f32 %v3414_v22, %v3112_v47  ;;  %v3416_v50 = vpop.f32.mrb[113].mxu1  ;;  %v4814_v51 = vpop.f32.mrb[133].mxu0 }
 0xad2   : > { %v3417_v31 = vadd.f32 %v3416_v50, %v3116_v48  ;;  %v4815_v32 = vadd.f32 %v4814_v51, %v4813_v49  ;;  %v3418_v33 = vpop.f32.mrb[114].mxu1  ;;  %v4816_v34 = vpop.f32.mrb[134].mxu0 }
 0xad3   : > { %v3419_v36 = vadd.f32 %v3418_v33, %v3112_v47  ;;  %v3420_v42 = vpop.f32.mrb[115].mxu1  ;;  %v4817_v7 = vpop.f32.mrb[135].mxu0  ;;  %v3464_v63 = vmax.f32 %v3415_v46, 0.0 }
 0xad4   : > { %v3458_v40 = vadd.f32 %v4815_v32, %v3120_v26  ;;  %v3421_v28 = vadd.f32 %v3420_v42, %v3116_v48  ;;  %v4818_v62 = vadd.f32 %v4817_v7, %v4816_v34  ;;  %v3465_v1 = vmax.f32 %v3417_v31, 0.0  ;;  %v5720_v34 = vld [vmem:[#allocation2 + $0x128] sm:$0xff]   ;;  %v5722_v42 = vld [vmem:[#allocation2 + $0x130] sm:$0xff]   ;;  %v5723_v7 = vld [vmem:[#allocation2 + $0x178] sm:$0xff]  }
 0xad5   : > { %v3467_v0 = vmax.f32 %v3419_v36, 0.0  ;;  %v5721_v36 = vld [vmem:[#allocation2 + $0x170] sm:$0xff]  }
 0xad6   : > { %v3468_v2 = vmax.f32 %v3421_v28, 0.0  ;;  %v3461_v3 = vadd.f32 %v4818_v62, %v3120_v26  ;;  %v3466_v39 = vmax.f32 %v3458_v40, 0.0  ;;  %v5724_v40 = vld [vmem:[#allocation2 + $0x138] sm:$0xff]   ;;  %v5725_v28 = vld [vmem:[#allocation2 + $0x180] sm:$0xff]   ;;  %v5726_v62 = vld [vmem:[#allocation2 + $0x188] sm:$0xff]  }
 0xad7   : > { %v3519_v37 = vpack.c.bf16 %v3467_v0, %v3464_v63  ;;  %v5727_v63 = vld [vmem:[#allocation2 + $0x190] sm:$0xff]   ;;  %v5728_v0 = vld [vmem:[#allocation2 + $0x198] sm:$0xff]  }
 0xad8   : > { %v3520_v4 = vpack.c.bf16 %v3468_v2, %v3465_v1  ;;  %v3469_v6 = vmax.f32 %v3461_v3, 0.0  ;;  %v5729_v1 = vld [vmem:[#allocation2 + $0x1a0] sm:$0xff]   ;;  %v3772_v2 = vld [vmem:[%s7096_s1 + $0xd] sm:$0x3] }
 0xad9   : > { %v3778_v3 = vrot.slane %v3772_v2, %v6621_v38  ;;  %v5731_v38 = vld [vmem:[#allocation2 + $0x1b0] sm:$0xff]  }
 0xada   : > { %v3521_v10 = vpack.c.bf16 %v3469_v6, %v3466_v39  ;;  %3704 = vmatprep.mubr.bf16.mxu0 %v3520_v4 }
 0xadb   : > { %3705 = vmatmul.mubr.bf16.vlgmr.msra.gmra.mrb[136].mxu0 %v3519_v37  ;;  %v3782_v37 = vrot.slane %v3772_v2, %v6628_v52  ;;  %v5732_v52 = vld [vmem:[#allocation2 + $0x1b8] sm:$0xff]  }
 0xadc   : > { %5042 = vmatmul.mubr.bf16.vlgmr.msra.gmra.mrb[116].mxu1 %v3521_v10  ;;  %3866 = vmatpush1.bf16.msra.mxu0 %v5685_v8 }
 0xadd   : > { %3867 = vmatprep.subr.bf16.mxu0 %v5690_v9  ;;  %3897 = vmatprep.mubr.bf16.mxu0 %v6068_v41  ;;  %v5708_v41 = vld [vmem:[#allocation5 + $0x374] ss:$8 sps:$4 sm:$0xff]  }
 0xade   : > { %4851 = vmatpush3.bf16.msra.mxu1 %v5710_v60 }
 0xadf   : > { %4852 = vmatprep.subr.bf16.mxu1 %v5711_v53 }
 0xae0   : > { %3868 = vmatpush1.bf16.msra.mxu0 %v5688_v11 }
 0xae1   : > { %3869 = vmatprep.subr.bf16.mxu0 %v5693_v12 }
 0xae2   : > { %4853 = vmatpush3.bf16.msra.mxu1 %v5712_v54 }
 0xae3   : > { %4854 = vmatprep.subr.bf16.mxu1 %v5713_v61 }
 0xae4   : > { %3870 = vmatpush1.bf16.msra.mxu0 %v5691_v13 }
 0xae5   : > { %3871 = vmatprep.subr.bf16.mxu0 %v5696_v14 }
 0xae6   : > { %4855 = vmatpush3.bf16.msra.mxu1 %v5714_v17 }
 0xae7   : > { %4856 = vmatprep.subr.bf16.mxu1 %v5715_v56 }
 0xae8   : > { %3872 = vmatpush1.bf16.msra.mxu0 %v5694_v16 }
 0xae9   : > { %3873 = vmatprep.subr.bf16.mxu0 %v5699_v18 }
 0xaea   : > { %4857 = vmatpush3.bf16.msra.mxu1 %v5716_v58 }
 0xaeb   : > { %4858 = vmatprep.subr.bf16.mxu1 %v5717_v27 }
 0xaec   : > { %3874 = vmatpush1.bf16.msra.mxu0 %v5697_v19 }
 0xaed   : > { %3875 = vmatprep.subr.bf16.mxu0 %v5702_v45 }
 0xaee   : > { %4859 = vmatpush3.bf16.msra.mxu1 %v5718_v29 }
 0xaef   : > { %4860 = vmatprep.subr.bf16.mxu1 %v5719_v5 }
 0xaf0   : > { %3876 = vmatpush1.bf16.msra.mxu0 %v5700_v43  ;;  %v5730_v43 = vld [vmem:[#allocation2 + $0x1a8] sm:$0xff]  }
 0xaf1   : > { %3877 = vmatprep.subr.bf16.mxu0 %v5705_v55 }
 0xaf2   : > { %4861 = vmatpush3.bf16.msra.mxu1 %v5720_v34 }
 0xaf3   : > { %4862 = vmatprep.subr.bf16.mxu1 %v5721_v36 }
 0xaf4   : > { %3878 = vmatpush1.bf16.msra.mxu0 %v5703_v44  ;;  %v4685_v44 = vld [vmem:[%s7096_s1 + $0xf] ss:$0 sm:$0xff] }
 0xaf5   : > { %3879 = vmatprep.subr.bf16.mxu0 %v5708_v41 }
 0xaf6   : > { %4863 = vmatpush3.bf16.msra.mxu1 %v5722_v42 }
 0xaf7   : > { %4864 = vmatprep.subr.bf16.mxu1 %v5723_v7 }
 0xaf8   : > { %3880 = vmatpush1.bf16.msra.mxu0 %v5706_v57 }
 0xaf9   : > { %5045 = vmatprep.subr.bf16.mxu0 %v6069_v15 }
 0xafa   : > { %4865 = vmatpush3.bf16.msra.mxu1 %v5724_v40 }
 0xbae   : > { %v4835_v35 = vpop.f32.mrb[136].mxu0 }
 0xbaf   : > { %v4836_v25 = vpop.f32.mrb[137].mxu0  ;;  %v3747_v21 = vpop.f32.mrb[116].mxu1 }
 0xbb0   : > { %v4837_v23 = vadd.f32 %v4836_v25, %v4835_v35  ;;  %v4838_v24 = vpop.f32.mrb[138].mxu0  ;;  %v5043_v30 = vpop.f32.mrb[117].mxu1 }
 0xbb1   : > { %v4839_v47 = vpop.f32.mrb[139].mxu0  ;;  %v3750_v48 = vpop.f32.mrb[118].mxu1  ;;  %v4206_v30 = vld [vmem:[%s550_s16 + $0x8] sm:$0xff] }
 0xbb2   : > { %v3707_v22 = vadd.f32 %v4837_v23, %v4644_v20  ;;  %v4840_v49 = vadd.f32 %v4839_v47, %v4838_v24  ;;  %v5044_v26 = vpop.f32.mrb[119].mxu1 }
 0xbb4   : > { %v3748_v46 = vadd.f32 %v3747_v21, %v3707_v22  ;;  %v3710_v50 = vadd.f32 %v4840_v49, %v4644_v20  ;;  %v4205_v21 = vld [vmem:[%s550_s16] sm:$0xff]  ;;  %v4241_v22 = vstv %s4711_s22 }
 0xbb5   : > { %5733 = vrcp.f32 %v4241_v22 }
 0xbb6   : > { %v3751_v51 = vadd.f32 %v3750_v48, %v3710_v50  ;;  %v3754_v31 = vmax.f32 %v3748_v46, 0.0 }
 0xbb8   : > { %v3755_v32 = vmax.f32 %v3751_v51, 0.0 }
 0xbba   : > { %v3773_v33 = vpack.c.bf16 %v3755_v32, %v3754_v31 }
 0xbbc   : > { %3898 = vmatmul.mubr.bf16.vlgmr.msra.gmra.mrb[140].mxu0 %v3773_v33  ;;  %v4244_v33 = vstv %s4239_s11 }
 0xbbd   : > { %5061 = vmatprep.mubr.msk.bf16.mxu0 %vm6070_vm0, %v6069_v15  ;;  %5046 = vmatpush3.bf16.msra.mxu0 %v5725_v28 }
 0xbbe   : > { %5047 = vmatprep.subr.bf16.mxu0 %v6069_v15 }
 0xbbf   : > { %v5734_v49 = vpop.eup %5733 }
 0xbc0   : > { %5257 = vpush %v5734_v49 }
 0xbc1   : > { %5048 = vmatpush3.bf16.msra.mxu0 %v5726_v62 }
 0xbc2   : > { %5049 = vmatprep.subr.bf16.mxu0 %v6069_v15 }
 0xbc5   : > { %5050 = vmatpush3.bf16.msra.mxu0 %v5727_v63 }
 0xbc6   : > { %5051 = vmatprep.subr.bf16.mxu0 %v6069_v15 }
 0xbc9   : > { %5052 = vmatpush3.bf16.msra.mxu0 %v5728_v0 }
 0xbca   : > { %5053 = vmatprep.subr.bf16.mxu0 %v6069_v15 }
 0xbcd   : > { %5054 = vmatpush3.bf16.msra.mxu0 %v5729_v1 }
 0xbce   : > { %5055 = vmatprep.subr.bf16.mxu0 %v6069_v15 }
 0xbd1   : > { %5056 = vmatpush3.bf16.msra.mxu0 %v5730_v43 }
 0xbd2   : > { %5057 = vmatprep.subr.bf16.mxu0 %v6069_v15 }
 0xbd5   : > { %5058 = vmatpush3.bf16.msra.mxu0 %v5731_v38 }
 0xbd6   : > { %5059 = vmatprep.subr.bf16.mxu0 %v6069_v15  ;;  %v4702_v15 = vld [vmem:[%s7096_s1 + $0x10] ss:$0 sm:$0xff] }
 0xbd9   : > { %5060 = vmatpush3.bf16.msra.mxu0 %v5732_v52 }
 0xbf1   : > { %s5258_s24 = spop %5257 }
 0xbf2   : > { %v4247_v42 = vstv %s5258_s24 }
 0xc8f   : > { %v3899_v39 = vpop.f32.mrb[140].mxu0 }
 0xc90   : > { %v3900_v4 = vadd.f32 %v3899_v39, %v3778_v3  ;;  %v3901_v6 = vpop.f32.mrb[141].mxu0 }
 0xc91   : > { %v3902_v8 = vadd.f32 %v3901_v6, %v3782_v37  ;;  %v3903_v9 = vpop.f32.mrb[142].mxu0 }
 0xc92   : > { %v3904_v10 = vadd.f32 %v3903_v9, %v3778_v3  ;;  %v3905_v11 = vpop.f32.mrb[143].mxu0  ;;  %v3908_v13 = vmax.f32 %v3900_v4, 0.0 }
 0xc93   : > { %v3906_v12 = vadd.f32 %v3905_v11, %v3782_v37  ;;  %v3909_v16 = vmax.f32 %v3902_v8, 0.0 }
 0xc94   : > { %v3910_v14 = vmax.f32 %v3904_v10, 0.0 }
 0xc95   : > { %v3911_v18 = vmax.f32 %v3906_v12, 0.0 }
 0xc96   : > { %v3945_v19 = vpack.c.bf16 %v3910_v14, %v3908_v13 }
 0xc97   : > { %v3946_v45 = vpack.c.bf16 %v3911_v18, %v3909_v16 }
 0xc99   : > { %4081 = vmatprep.mubr.bf16.mxu1 %v3946_v45 }
 0xc9a   : > { %4082 = vmatmul.mubr.bf16.vlgmr.msra.gmra.mrb[120].mxu1 %v3945_v19 }
 0xd6d   : > { %v4866_v55 = vpop.f32.mrb[120].mxu1 }
 0xd6e   : > { %v4867_v41 = vpop.f32.mrb[121].mxu1 }
 0xd6f   : > { %v4868_v57 = vadd.f32 %v4867_v41, %v4866_v55  ;;  %v4869_v59 = vpop.f32.mrb[122].mxu1 }
 0xd70   : > { %v4870_v60 = vpop.f32.mrb[123].mxu1 }
 0xd71   : > { %v4084_v53 = vadd.f32 %v4868_v57, %v4685_v44  ;;  %v4871_v54 = vadd.f32 %v4870_v60, %v4869_v59 }
 0xd73   : > { %v4087_v61 = vadd.f32 %v4871_v54, %v4685_v44  ;;  %v4090_v17 = vmax.f32 %v4084_v53, 0.0 }
 0xd75   : > { %v4091_v56 = vmax.f32 %v4087_v61, 0.0 }
 0xd77   : > { %v4108_v58 = vpack.c.bf16 %v4091_v56, %v4090_v17 }
 0xd79   : > { %5062 = vmatmul.mubr.bf16.vlgmr.msra.gmra.mrb[144].mxu0 %v4108_v58 }
 0xe4c   : > { %v4198_v27 = vpop.f32.mrb[144].mxu0 }
 0xe4d   : > { %v4199_v29 = vadd.f32 %v4702_v15, %v4198_v27  ;;  %v5063_v5 = vpop.f32.mrb[145].mxu0 }
 0xe4e   : > { %v4201_v35 = vpop.f32.mrb[146].mxu0 }
 0xe4f   : > { %4209 = vrot.lane.b32.xlu0 %v4199_v29, %s6071_s26  ;;  %v5064_v25 = vpop.f32.mrb[147].mxu0  ;;  %v4202_v20 = vadd.f32 %v4702_v15, %v4201_v35 }
 0xe53   : > { %4211 = vrot.lane.b32.xlu0 %v4202_v20, %s6071_s26 }
 0xec1   : > { %v4210_v23 = vpop.permute.xlu0 %4209 }
 0xec2   : > { %v4215_v24 = vadd.f32 %v4210_v23, %v4205_v21 }
 0xec4   : > { %4219 = vrot.lane.b32.xlu1 %v4215_v24, %s6072_s30 }
 0xec5   : > { %v4212_v47 = vpop.permute.xlu0 %4211 }
 0xec6   : > { %v4216_v48 = vadd.f32 %v4212_v47, %v4206_v30 }
 0xec8   : > { %4221 = vrot.lane.b32.xlu1 %v4216_v48, %s6072_s30 }
 0xf36   : > { %v4220_v26 = vpop.permute.xlu1 %4219 }
 0xf37   : > { %5735 = vrcp.f32 %v4220_v26 }
 0xf3a   : > { %v4222_v46 = vpop.permute.xlu1 %4221 }
 0xf3b   : > { %5737 = vrcp.f32 %v4222_v46 }
 0xf41   : > { %v5736_v50 = vpop.eup %5735 }
 0xf42   : > { %v4226_v51 = vmul.f32 %v5736_v50, %v4199_v29 }
 0xf44   : > { %4231 = vrot.lane.b32.xlu0 %v4226_v51, %s6073_s5 }
 0xf45   : > { %v5738_v31 = vpop.eup %5737 }
 0xf46   : > { %v4228_v32 = vmul.f32 %v5738_v31, %v4202_v20 }
 0xf48   : > { %4233 = vrot.lane.b32.xlu1 %v4228_v32, %s6073_s5 }
 0xfb6   : > { %v4232_v34 = vpop.permute.xlu0 %4231 }
 0xfb7   : > { %v4237_v36 = vsub.f32 %v4199_v29, %v4232_v34 }
 0xfb9   : > { %v4245_v7 = vsub.f32 %v4237_v36, %v4244_v33 }
 0xfba   : > { %v4234_v40 = vpop.permute.xlu1 %4233 }
 0xfbb   : > { %v4248_v28 = vmul.f32 %v4247_v42, %v4245_v7  ;;  %v4238_v62 = vsub.f32 %v4202_v20, %v4234_v40 }
 0xfbd   : > { %4251 = vst.msk [vmem:[%s556_s28] sm:$0xff] %vm4250_vm1, %v4248_v28  ;;  %v4246_v63 = vsub.f32 %v4238_v62, %v4244_v33 }
 0xfbf   : > { %v4249_v0 = vmul.f32 %v4247_v42, %v4246_v63 }
 0xfc1   : > { %4252 = vst.msk [vmem:[%s556_s28 + $0x8] sm:$0xff] %vm4250_vm1, %v4249_v0 }
 0xfc2 PF: > { %s7099_s19 = sld [smem:[#allocation22_spill]]  ;;  %s7100_s16 = sld [smem:[#allocation20_spill]] }
 0xfc3   : > { %s7101_s17 = sld [smem:[#allocation21_spill]]  ;;  %s7102_s18 = sld [smem:[#allocation23_spill]] }
 0xfc4   : > { %s7103_s13 = smov %s6030_s14  ;;  %s7104_s14 = smov %s6034_s15 }
 0xfc5   : > { %s7105_s15 = smov %s6411_s4 }
 0xfc8   : > { %p21_p9 = scmp.ge.s32.totalorder %s7099_s19, 4  }
 0xfca   :  { %23 = sbr.rel (!%p21_p9) target bundleno = 14 (0xe), region = 145 }
 0xfd1   :  { %4275 = vsyncpa [#allocation3], 1 }
 0xfd2   :  { %4277 = vsyncpa [#allocation3 + $0x1], 1 }
 0xfd3   :  { %4278 = vsyncpa [#allocation6], 1 }
 0xfd4   :  { %4279 = vsyncpa [#allocation9], 1 }
 0xfd5   :  { %4280 = vsyncpa [#allocation4], 1 }
 0xfd6   :  { %4282 = vsyncpa [#allocation4 + $0x1], 1 }

</bundles_post_ra>
